<compile_context>
chip_gen: v7x
topology: tpu7x:2x2x1
jax: 0.10.0
libtpu: 0.0.40
codegen_flags: <defaults>
</compile_context>

<pallas_src>
import jax
import jax.numpy as jnp
from jax.experimental import pallas as pl
from jax.experimental.pallas import tpu as pltpu

# ---- hyperparameters (match the module) ----
N_EMBD = 96
N_HEAD = 4
HEAD_SIZE = N_EMBD // N_HEAD       # 24
N_LAYER = 4
N_VOCAB = 65                       # len(chars) in the source is data-dependent
BLOCK_SIZE = 256
LN_EPS = 1e-5

BLOCK_PARAM_ORDER = (
    "ln1_g", "ln1_b", "wq", "wk", "wv", "wproj", "bproj",
    "ln2_g", "ln2_b", "w1", "b1", "w2", "b2",
)


# ----------------------------- shared math ---------------------------------
def _layer_norm(x, g, b):
    mu = jnp.mean(x, axis=-1, keepdims=True)
    var = jnp.mean((x - mu) ** 2, axis=-1, keepdims=True)
    return (x - mu) * jax.lax.rsqrt(var + LN_EPS) * g + b


# ------------------------------- kernels ------------------------------------
def blocks_kernel(x_ref,
                  ln1_g_ref, ln1_b_ref, wq_ref, wk_ref, wv_ref,
                  wproj_ref, bproj_ref, ln2_g_ref, ln2_b_ref,
                  w1_ref, b1_ref, w2_ref, b2_ref,
                  o_ref):
    """All N_LAYER transformer blocks for one batch element.

    grid = (B, N_LAYER). The activation lives in the (revisited) output VMEM block
    across the arbitrary layer axis; layer-l weights are selected by the layer grid
    index so layer l+1 weight DMA overlaps layer l compute.
    """
    layer = pl.program_id(1)

    @pl.when(layer == 0)
    def _():
        o_ref[...] = x_ref[...]

    x = o_ref[0]                                            # (T, C) f32, resident

    # ---- self-attention branch ------------------------------------------
    h = _layer_norm(x, ln1_g_ref[0], ln1_b_ref[0])           # (T, C)

    # Fused full-width projections (one (T,C)x(C,C) matmul per projection).
    q = jnp.dot(h, wq_ref[0], preferred_element_type=jnp.float32)       # (T, C)
    kT = jnp.dot(h, wk_ref[0], preferred_element_type=jnp.float32).T    # (C, T)
    v = jnp.dot(h, wv_ref[0], preferred_element_type=jnp.float32)       # (T, C)

    T = x.shape[0]
    wproj = wproj_ref[0]                                     # (C, C)
    sa = jnp.zeros_like(x)
    for hd in range(N_HEAD):                                 # static unroll
        lo = hd * HEAD_SIZE
        # Additive score with T on the lane axis: only a (T, T) temp is live.
        s = jnp.zeros((T, T), jnp.float32)
        for d in range(HEAD_SIZE):
            c = lo + d
            t = jnp.tanh((q[:, c:c + 1] + kT[c:c + 1, :]).astype(jnp.bfloat16))
            s = s + t.astype(jnp.float32)
        # Scores are bounded in [-HEAD_SIZE, HEAD_SIZE]: a constant shift keeps
        # exp() safe without a per-row max reduce (softmax is shift-invariant).
        p = jnp.exp(s - float(HEAD_SIZE))
        p = p * pl.reciprocal(jnp.sum(p, axis=-1, keepdims=True), approx=True)
        out_h = jnp.dot(p, v[:, lo:lo + HEAD_SIZE],
                        preferred_element_type=jnp.float32)             # (T, Dh)
        # concat(heads) @ wproj  ==  sum_h  out_h @ wproj[rows of head h]
        sa = sa + jnp.dot(out_h, wproj[lo:lo + HEAD_SIZE, :],
                          preferred_element_type=jnp.float32)
    x1 = x + sa + bproj_ref[0]                               # residual 1

    # ---- feed-forward branch --------------------------------------------
    h2 = _layer_norm(x1, ln2_g_ref[0], ln2_b_ref[0])
    ff = jnp.dot(h2, w1_ref[0], preferred_element_type=jnp.float32) + b1_ref[0]
    ff = jnp.maximum(ff, 0.0)
    ff = jnp.dot(ff, w2_ref[0], preferred_element_type=jnp.float32) + b2_ref[0]

    o_ref[0] = (x1 + ff).astype(o_ref.dtype)                 # residual 2


def lm_head_kernel(x_ref, g_ref, b_ref, w_ref, bias_ref, o_ref):
    """Final LayerNorm + lm_head projection (lane-dense, vocab padded to 128)."""
    x = x_ref[0]                                             # (T, C)
    h = _layer_norm(x, g_ref[...], b_ref[...])
    o_ref[0] = (jnp.dot(h, w_ref[...], preferred_element_type=jnp.float32)
                + bias_ref[...]).astype(o_ref.dtype)


# ------------------------------- wrappers ------------------------------------
def _full_spec(shape):
    return pl.BlockSpec(shape, lambda *_, n=len(shape): (0,) * n)


def transformer_blocks(x, blocks):
    """Run all N_LAYER blocks in a single pipelined pallas_call."""
    B, T, C = x.shape
    L = blocks["wq"].shape[0]
    weights = [blocks[name] for name in BLOCK_PARAM_ORDER]

    def layer_spec(arr):
        rest = arr.shape[1:]
        return pl.BlockSpec((1,) + rest,
                            lambda b, l, n=len(rest): (l,) + (0,) * n)

    in_specs = ([pl.BlockSpec((1, T, C), lambda b, l: (b, 0, 0))]
                + [layer_spec(w) for w in weights])
    return pl.pallas_call(
        blocks_kernel,
        out_shape=jax.ShapeDtypeStruct((B, T, C), x.dtype),
        grid=(B, L),
        in_specs=in_specs,
        out_specs=pl.BlockSpec((1, T, C), lambda b, l: (b, 0, 0)),
        compiler_params=pltpu.CompilerParams(
            dimension_semantics=("parallel", "arbitrary")),
    )(x, *weights)


def lm_head(x, lnf_g, lnf_b, lm_w, lm_b):
    B, T, C = x.shape
    V = lm_w.shape[1]
    VP = ((V + 127) // 128) * 128          # lane-dense output slab
    w_p = jnp.pad(lm_w, ((0, 0), (0, VP - V)))
    b_p = jnp.pad(lm_b, ((0, 0), (0, VP - V)))
    out = pl.pallas_call(
        lm_head_kernel,
        out_shape=jax.ShapeDtypeStruct((B, T, VP), x.dtype),
        grid=(B,),
        in_specs=[pl.BlockSpec((1, T, C), lambda b: (b, 0, 0)),
                  _full_spec(lnf_g.shape), _full_spec(lnf_b.shape),
                  _full_spec(w_p.shape), _full_spec(b_p.shape)],
        out_specs=pl.BlockSpec((1, T, VP), lambda b: (b, 0, 0)),
        compiler_params=pltpu.CompilerParams(
            dimension_semantics=("parallel",)),
    )(x, lnf_g, lnf_b, w_p, b_p)
    return out[:, :, :V]


def forward(idx, params, targets=None):
    """Mirrors SimilarTextGenerator.forward: idx (B, T) int32 -> (logits, loss)."""
    B, T = idx.shape
    tok_emb = jnp.take(params["tok_emb"], idx, axis=0)        # (B, T, C) gather (glue)
    pos_emb = params["pos_emb"][:T]
    x = (tok_emb + pos_emb[None, :, :]).astype(jnp.float32)

    x = transformer_blocks(x, params["blocks"])
    logits = lm_head(x, params["lnf_g"], params["lnf_b"],
                     params["lm_w"], params["lm_b"])

    if targets is None:
        loss = None
    else:                                                     # plain-JAX glue
        V = logits.shape[-1]
        logp = jax.nn.log_softmax(logits.reshape(-1, V).astype(jnp.float32), axis=-1)
        loss = -jnp.mean(jnp.take_along_axis(
            logp, targets.reshape(-1, 1).astype(jnp.int32), axis=1))
    return logits, loss


# --------------------------- deterministic init ------------------------------
def init_params(seed=0):
    key = jax.random.PRNGKey(seed)
    keys = iter(jax.random.split(key, 16))

    def nrm(shape, scale=0.02):
        return scale * jax.random.normal(next(keys), shape, dtype=jnp.float32)

    L, C, H = N_LAYER, N_EMBD, 4 * N_EMBD
    blocks = dict(
        ln1_g=jnp.ones((L, 1, C), jnp.float32),
        ln1_b=jnp.zeros((L, 1, C), jnp.float32),
        wq=nrm((L, C, C)), wk=nrm((L, C, C)), wv=nrm((L, C, C)),
        wproj=nrm((L, C, C)),
        bproj=jnp.zeros((L, 1, C), jnp.float32),
        ln2_g=jnp.ones((L, 1, C), jnp.float32),
        ln2_b=jnp.zeros((L, 1, C), jnp.float32),
        w1=nrm((L, C, H)), b1=jnp.zeros((L, 1, H), jnp.float32),
        w2=nrm((L, H, C)), b2=jnp.zeros((L, 1, C), jnp.float32),
    )
    return dict(
        tok_emb=nrm((N_VOCAB, C), 1.0),
        pos_emb=nrm((BLOCK_SIZE, C), 1.0),
        blocks=blocks,
        lnf_g=jnp.ones((1, C), jnp.float32),
        lnf_b=jnp.zeros((1, C), jnp.float32),
        lm_w=nrm((C, N_VOCAB)),
        lm_b=jnp.zeros((1, N_VOCAB), jnp.float32),
    )


# ------------------------- pure-JAX reference check --------------------------
def _reference_forward(idx, params):
    blk = params["blocks"]
    x = (jnp.take(params["tok_emb"], idx, axis=0)
         + params["pos_emb"][:idx.shape[1]][None]).astype(jnp.float32)
    for l in range(N_LAYER):
        h = _layer_norm(x, blk["ln1_g"][l], blk["ln1_b"][l])
        q = h @ blk["wq"][l]
        k = h @ blk["wk"][l]
        v = h @ blk["wv"][l]
        outs = []
        for hd in range(N_HEAD):
            sl = slice(hd * HEAD_SIZE, (hd + 1) * HEAD_SIZE)
            qh, kh, vh = q[..., sl], k[..., sl], v[..., sl]
            s = jnp.sum(jnp.tanh(qh[:, :, None, :] + kh[:, None, :, :]), axis=-1)
            outs.append(jax.nn.softmax(s, axis=-1) @ vh)
        x = x + jnp.concatenate(outs, -1) @ blk["wproj"][l] + blk["bproj"][l]
        h2 = _layer_norm(x, blk["ln2_g"][l], blk["ln2_b"][l])
        ff = jnp.maximum(h2 @ blk["w1"][l] + blk["b1"][l], 0.0) @ blk["w2"][l] + blk["b2"][l]
        x = x + ff
    x = _layer_norm(x, params["lnf_g"], params["lnf_b"])
    return x @ params["lm_w"] + params["lm_b"]


# ---------------------------------- main --------------------------------------
if __name__ == "__main__":
    B, T = 2, 16
    key = jax.random.PRNGKey(0)
    idx = jax.random.randint(key, (B, T), 0, N_VOCAB, dtype=jnp.int32)

    params = init_params(0)
    logits, loss = forward(idx, params, targets=None)
    logits = jax.block_until_ready(logits)

    assert logits.shape == (B, T, N_VOCAB), logits.shape
    assert loss is None
    assert bool(jnp.all(jnp.isfinite(logits)))

    ref = _reference_forward(idx, params)
    err = float(jnp.max(jnp.abs(logits - ref)))
    assert err < 5e-2, f"max abs error vs reference: {err}"

    print("KERNEL_OK")
</pallas_src>

<mosaic_0001>
module attributes {stable_mosaic.version = 11 : i64} {
  func.func @blocks_kernel(%arg0: i32, %arg1: i32, %arg2: memref<1x16x96xf32, #tpu.memory_space<vmem>>, %arg3: memref<1x1x96xf32, #tpu.memory_space<vmem>>, %arg4: memref<1x1x96xf32, #tpu.memory_space<vmem>>, %arg5: memref<1x96x96xf32, #tpu.memory_space<vmem>>, %arg6: memref<1x96x96xf32, #tpu.memory_space<vmem>>, %arg7: memref<1x96x96xf32, #tpu.memory_space<vmem>>, %arg8: memref<1x96x96xf32, #tpu.memory_space<vmem>>, %arg9: memref<1x1x96xf32, #tpu.memory_space<vmem>>, %arg10: memref<1x1x96xf32, #tpu.memory_space<vmem>>, %arg11: memref<1x1x96xf32, #tpu.memory_space<vmem>>, %arg12: memref<1x96x384xf32, #tpu.memory_space<vmem>>, %arg13: memref<1x1x384xf32, #tpu.memory_space<vmem>>, %arg14: memref<1x384x96xf32, #tpu.memory_space<vmem>>, %arg15: memref<1x1x96xf32, #tpu.memory_space<vmem>>, %arg16: memref<1x16x96xf32, #tpu.memory_space<vmem>>) attributes {dimension_semantics = [#tpu.dimension_semantics<parallel>, #tpu.dimension_semantics<arbitrary>], iteration_bounds = array<i64: 2, 4>, scalar_prefetch = 0 : i64, scratch_operands = 0 : i64, tpu.core_type = #tpu.core_type<tc>, window_params = [{transform_indices = @transform_0, window_bounds = array<i64: 1, 16, 96>}, {transform_indices = @transform_1, window_bounds = array<i64: 1, 1, 96>}, {transform_indices = @transform_2, window_bounds = array<i64: 1, 1, 96>}, {transform_indices = @transform_3, window_bounds = array<i64: 1, 96, 96>}, {transform_indices = @transform_4, window_bounds = array<i64: 1, 96, 96>}, {transform_indices = @transform_5, window_bounds = array<i64: 1, 96, 96>}, {transform_indices = @transform_6, window_bounds = array<i64: 1, 96, 96>}, {transform_indices = @transform_7, window_bounds = array<i64: 1, 1, 96>}, {transform_indices = @transform_8, window_bounds = array<i64: 1, 1, 96>}, {transform_indices = @transform_9, window_bounds = array<i64: 1, 1, 96>}, {transform_indices = @transform_10, window_bounds = array<i64: 1, 96, 384>}, {transform_indices = @transform_11, window_bounds = array<i64: 1, 1, 384>}, {transform_indices = @transform_12, window_bounds = array<i64: 1, 384, 96>}, {transform_indices = @transform_13, window_bounds = array<i64: 1, 1, 96>}, {transform_indices = @transform_14, window_bounds = array<i64: 1, 16, 96>}]} {
    %c0_i32 = arith.constant 0 : i32
    %0 = arith.cmpi eq, %arg1, %c0_i32 : i32
    %1 = arith.extui %0 : i1 to i32
    %c0_i32_0 = arith.constant 0 : i32
    %2 = arith.cmpi ne, %1, %c0_i32_0 : i32
    scf.if %2 {
      %c0_81 = arith.constant 0 : index
      %c0_82 = arith.constant 0 : index
      %c0_83 = arith.constant 0 : index
      %1015 = vector.load %arg2[%c0_81, %c0_82, %c0_83] : memref<1x16x96xf32, #tpu.memory_space<vmem>>, vector<1x16x96xf32>
      %c0_84 = arith.constant 0 : index
      %c0_85 = arith.constant 0 : index
      %c0_86 = arith.constant 0 : index
      %1016 = vector.load %arg16[%c0_84, %c0_85, %c0_86] : memref<1x16x96xf32, #tpu.memory_space<vmem>>, vector<1x16x96xf32>
      tpu.vector_store %arg16[%c0_84, %c0_85, %c0_86], %1015 {strides = array<i32>} : memref<1x16x96xf32, #tpu.memory_space<vmem>>, vector<1x16x96xf32>,
    } else {
    }
    %c0 = arith.constant 0 : index
    %c0_1 = arith.constant 0 : index
    %c0_2 = arith.constant 0 : index
    %3 = vector.load %arg16[%c0, %c0_1, %c0_2] : memref<1x16x96xf32, #tpu.memory_space<vmem>>, vector<1x16x96xf32>
    %4 = vector.shape_cast %3 : vector<1x16x96xf32> to vector<16x96xf32>
    %c0_3 = arith.constant 0 : index
    %c0_4 = arith.constant 0 : index
    %c0_5 = arith.constant 0 : index
    %5 = vector.load %arg3[%c0_3, %c0_4, %c0_5] : memref<1x1x96xf32, #tpu.memory_space<vmem>>, vector<1x1x96xf32>
    %6 = vector.shape_cast %5 : vector<1x1x96xf32> to vector<1x96xf32>
    %c0_6 = arith.constant 0 : index
    %c0_7 = arith.constant 0 : index
    %c0_8 = arith.constant 0 : index
    %7 = vector.load %arg4[%c0_6, %c0_7, %c0_8] : memref<1x1x96xf32, #tpu.memory_space<vmem>>, vector<1x1x96xf32>
    %8 = vector.shape_cast %7 : vector<1x1x96xf32> to vector<1x96xf32>
    %cst = arith.constant dense<0.000000e+00> : vector<16xf32>
    %9 = vector.multi_reduction <add>, %4, %cst [1] : vector<16x96xf32> to vector<16xf32>
    %10 = vector.shape_cast %9 : vector<16xf32> to vector<16x1xf32>
    %cst_9 = arith.constant 9.600000e+01 : f32
    %11 = vector.broadcast %cst_9 : f32 to vector<16x1xf32>
    %12 = arith.divf %10, %11 : vector<16x1xf32>
    %13 = vector.broadcast %12 : vector<16x1xf32> to vector<16x96xf32>
    %14 = arith.subf %4, %13 : vector<16x96xf32>
    %15 = arith.mulf %14, %14 : vector<16x96xf32>
    %cst_10 = arith.constant dense<0.000000e+00> : vector<16xf32>
    %16 = vector.multi_reduction <add>, %15, %cst_10 [1] : vector<16x96xf32> to vector<16xf32>
    %17 = vector.shape_cast %16 : vector<16xf32> to vector<16x1xf32>
    %cst_11 = arith.constant 9.600000e+01 : f32
    %18 = vector.broadcast %cst_11 : f32 to vector<16x1xf32>
    %19 = arith.divf %17, %18 : vector<16x1xf32>
    %20 = vector.broadcast %12 : vector<16x1xf32> to vector<16x96xf32>
    %21 = arith.subf %4, %20 : vector<16x96xf32>
    %cst_12 = arith.constant 9.99999974E-6 : f32
    %22 = vector.broadcast %cst_12 : f32 to vector<16x1xf32>
    %23 = arith.addf %19, %22 : vector<16x1xf32>
    %24 = math.rsqrt %23 : vector<16x1xf32>
    %25 = vector.broadcast %24 : vector<16x1xf32> to vector<16x96xf32>
    %26 = arith.mulf %21, %25 : vector<16x96xf32>
    %27 = vector.broadcast %6 : vector<1x96xf32> to vector<16x96xf32>
    %28 = arith.mulf %26, %27 : vector<16x96xf32>
    %29 = vector.broadcast %8 : vector<1x96xf32> to vector<16x96xf32>
    %30 = arith.addf %28, %29 : vector<16x96xf32>
    %c0_13 = arith.constant 0 : index
    %c0_14 = arith.constant 0 : index
    %c0_15 = arith.constant 0 : index
    %31 = vector.load %arg5[%c0_13, %c0_14, %c0_15] : memref<1x96x96xf32, #tpu.memory_space<vmem>>, vector<1x96x96xf32>
    %32 = vector.shape_cast %31 : vector<1x96x96xf32> to vector<96x96xf32>
    %cst_16 = arith.constant dense<0.000000e+00> : vector<16x96xf32>
    %33 = tpu.matmul %30, %32, %cst_16 {dimension_numbers = #tpu.dot_dimension_numbers<[1], [0], [0], [1], [0, 0, 1, 1], [], []>} : vector<16x96xf32>, vector<96x96xf32>, vector<16x96xf32> -> vector<16x96xf32>
    %c0_17 = arith.constant 0 : index
    %c0_18 = arith.constant 0 : index
    %c0_19 = arith.constant 0 : index
    %34 = vector.load %arg6[%c0_17, %c0_18, %c0_19] : memref<1x96x96xf32, #tpu.memory_space<vmem>>, vector<1x96x96xf32>
    %35 = vector.shape_cast %34 : vector<1x96x96xf32> to vector<96x96xf32>
    %cst_20 = arith.constant dense<0.000000e+00> : vector<16x96xf32>
    %36 = tpu.matmul %30, %35, %cst_20 {dimension_numbers = #tpu.dot_dimension_numbers<[1], [0], [0], [1], [0, 0, 1, 1], [], []>} : vector<16x96xf32>, vector<96x96xf32>, vector<16x96xf32> -> vector<16x96xf32>
    %37 = tpu.transpose %36, [1, 0] : vector<16x96xf32> -> vector<96x16xf32>
    %c0_21 = arith.constant 0 : index
    %c0_22 = arith.constant 0 : index
    %c0_23 = arith.constant 0 : index
    %38 = vector.load %arg7[%c0_21, %c0_22, %c0_23] : memref<1x96x96xf32, #tpu.memory_space<vmem>>, vector<1x96x96xf32>
    %39 = vector.shape_cast %38 : vector<1x96x96xf32> to vector<96x96xf32>
    %cst_24 = arith.constant dense<0.000000e+00> : vector<16x96xf32>
    %40 = tpu.matmul %30, %39, %cst_24 {dimension_numbers = #tpu.dot_dimension_numbers<[1], [0], [0], [1], [0, 0, 1, 1], [], []>} : vector<16x96xf32>, vector<96x96xf32>, vector<16x96xf32> -> vector<16x96xf32>
    %c0_25 = arith.constant 0 : index
    %c0_26 = arith.constant 0 : index
    %c0_27 = arith.constant 0 : index
    %41 = vector.load %arg8[%c0_25, %c0_26, %c0_27] : memref<1x96x96xf32, #tpu.memory_space<vmem>>, vector<1x96x96xf32>
    %42 = vector.shape_cast %41 : vector<1x96x96xf32> to vector<96x96xf32>
    %cst_28 = arith.constant 0.000000e+00 : f32
    %43 = vector.broadcast %cst_28 : f32 to vector<16x96xf32>
    %cst_29 = arith.constant 0.000000e+00 : f32
    %44 = vector.broadcast %cst_29 : f32 to vector<16x16xf32>
    %45 = vector.extract_strided_slice %33 {offsets = [0, 0], sizes = [16, 1], strides = [1, 1]} : vector<16x96xf32> to vector<16x1xf32>
    %46 = vector.extract_strided_slice %37 {offsets = [0, 0], sizes = [1, 16], strides = [1, 1]} : vector<96x16xf32> to vector<1x16xf32>
    %47 = vector.broadcast %45 : vector<16x1xf32> to vector<16x16xf32>
    %48 = vector.broadcast %46 : vector<1x16xf32> to vector<16x16xf32>
    %49 = arith.addf %47, %48 : vector<16x16xf32>
    %50 = arith.truncf %49 : vector<16x16xf32> to vector<16x16xbf16>
    %51 = math.tanh %50 : vector<16x16xbf16>
    %52 = arith.extf %51 : vector<16x16xbf16> to vector<16x16xf32>
    %53 = arith.addf %44, %52 : vector<16x16xf32>
    %54 = vector.extract_strided_slice %33 {offsets = [0, 1], sizes = [16, 1], strides = [1, 1]} : vector<16x96xf32> to vector<16x1xf32>
    %55 = vector.extract_strided_slice %37 {offsets = [1, 0], sizes = [1, 16], strides = [1, 1]} : vector<96x16xf32> to vector<1x16xf32>
    %56 = vector.broadcast %54 : vector<16x1xf32> to vector<16x16xf32>
    %57 = vector.broadcast %55 : vector<1x16xf32> to vector<16x16xf32>
    %58 = arith.addf %56, %57 : vector<16x16xf32>
    %59 = arith.truncf %58 : vector<16x16xf32> to vector<16x16xbf16>
    %60 = math.tanh %59 : vector<16x16xbf16>
    %61 = arith.extf %60 : vector<16x16xbf16> to vector<16x16xf32>
    %62 = arith.addf %53, %61 : vector<16x16xf32>
    %63 = vector.extract_strided_slice %33 {offsets = [0, 2], sizes = [16, 1], strides = [1, 1]} : vector<16x96xf32> to vector<16x1xf32>
    %64 = vector.extract_strided_slice %37 {offsets = [2, 0], sizes = [1, 16], strides = [1, 1]} : vector<96x16xf32> to vector<1x16xf32>
    %65 = vector.broadcast %63 : vector<16x1xf32> to vector<16x16xf32>
    %66 = vector.broadcast %64 : vector<1x16xf32> to vector<16x16xf32>
    %67 = arith.addf %65, %66 : vector<16x16xf32>
    %68 = arith.truncf %67 : vector<16x16xf32> to vector<16x16xbf16>
    %69 = math.tanh %68 : vector<16x16xbf16>
    %70 = arith.extf %69 : vector<16x16xbf16> to vector<16x16xf32>
    %71 = arith.addf %62, %70 : vector<16x16xf32>
    %72 = vector.extract_strided_slice %33 {offsets = [0, 3], sizes = [16, 1], strides = [1, 1]} : vector<16x96xf32> to vector<16x1xf32>
    %73 = vector.extract_strided_slice %37 {offsets = [3, 0], sizes = [1, 16], strides = [1, 1]} : vector<96x16xf32> to vector<1x16xf32>
    %74 = vector.broadcast %72 : vector<16x1xf32> to vector<16x16xf32>
    %75 = vector.broadcast %73 : vector<1x16xf32> to vector<16x16xf32>
    %76 = arith.addf %74, %75 : vector<16x16xf32>
    %77 = arith.truncf %76 : vector<16x16xf32> to vector<16x16xbf16>
    %78 = math.tanh %77 : vector<16x16xbf16>
    %79 = arith.extf %78 : vector<16x16xbf16> to vector<16x16xf32>
    %80 = arith.addf %71, %79 : vector<16x16xf32>
    %81 = vector.extract_strided_slice %33 {offsets = [0, 4], sizes = [16, 1], strides = [1, 1]} : vector<16x96xf32> to vector<16x1xf32>
    %82 = vector.extract_strided_slice %37 {offsets = [4, 0], sizes = [1, 16], strides = [1, 1]} : vector<96x16xf32> to vector<1x16xf32>
    %83 = vector.broadcast %81 : vector<16x1xf32> to vector<16x16xf32>
    %84 = vector.broadcast %82 : vector<1x16xf32> to vector<16x16xf32>
    %85 = arith.addf %83, %84 : vector<16x16xf32>
    %86 = arith.truncf %85 : vector<16x16xf32> to vector<16x16xbf16>
    %87 = math.tanh %86 : vector<16x16xbf16>
    %88 = arith.extf %87 : vector<16x16xbf16> to vector<16x16xf32>
    %89 = arith.addf %80, %88 : vector<16x16xf32>
    %90 = vector.extract_strided_slice %33 {offsets = [0, 5], sizes = [16, 1], strides = [1, 1]} : vector<16x96xf32> to vector<16x1xf32>
    %91 = vector.extract_strided_slice %37 {offsets = [5, 0], sizes = [1, 16], strides = [1, 1]} : vector<96x16xf32> to vector<1x16xf32>
    %92 = vector.broadcast %90 : vector<16x1xf32> to vector<16x16xf32>
    %93 = vector.broadcast %91 : vector<1x16xf32> to vector<16x16xf32>
    %94 = arith.addf %92, %93 : vector<16x16xf32>
    %95 = arith.truncf %94 : vector<16x16xf32> to vector<16x16xbf16>
    %96 = math.tanh %95 : vector<16x16xbf16>
    %97 = arith.extf %96 : vector<16x16xbf16> to vector<16x16xf32>
    %98 = arith.addf %89, %97 : vector<16x16xf32>
    %99 = vector.extract_strided_slice %33 {offsets = [0, 6], sizes = [16, 1], strides = [1, 1]} : vector<16x96xf32> to vector<16x1xf32>
    %100 = vector.extract_strided_slice %37 {offsets = [6, 0], sizes = [1, 16], strides = [1, 1]} : vector<96x16xf32> to vector<1x16xf32>
    %101 = vector.broadcast %99 : vector<16x1xf32> to vector<16x16xf32>
    %102 = vector.broadcast %100 : vector<1x16xf32> to vector<16x16xf32>
    %103 = arith.addf %101, %102 : vector<16x16xf32>
    %104 = arith.truncf %103 : vector<16x16xf32> to vector<16x16xbf16>
    %105 = math.tanh %104 : vector<16x16xbf16>
    %106 = arith.extf %105 : vector<16x16xbf16> to vector<16x16xf32>
    %107 = arith.addf %98, %106 : vector<16x16xf32>
    %108 = vector.extract_strided_slice %33 {offsets = [0, 7], sizes = [16, 1], strides = [1, 1]} : vector<16x96xf32> to vector<16x1xf32>
    %109 = vector.extract_strided_slice %37 {offsets = [7, 0], sizes = [1, 16], strides = [1, 1]} : vector<96x16xf32> to vector<1x16xf32>
    %110 = vector.broadcast %108 : vector<16x1xf32> to vector<16x16xf32>
    %111 = vector.broadcast %109 : vector<1x16xf32> to vector<16x16xf32>
    %112 = arith.addf %110, %111 : vector<16x16xf32>
    %113 = arith.truncf %112 : vector<16x16xf32> to vector<16x16xbf16>
    %114 = math.tanh %113 : vector<16x16xbf16>
    %115 = arith.extf %114 : vector<16x16xbf16> to vector<16x16xf32>
    %116 = arith.addf %107, %115 : vector<16x16xf32>
    %117 = vector.extract_strided_slice %33 {offsets = [0, 8], sizes = [16, 1], strides = [1, 1]} : vector<16x96xf32> to vector<16x1xf32>
    %118 = vector.extract_strided_slice %37 {offsets = [8, 0], sizes = [1, 16], strides = [1, 1]} : vector<96x16xf32> to vector<1x16xf32>
    %119 = vector.broadcast %117 : vector<16x1xf32> to vector<16x16xf32>
    %120 = vector.broadcast %118 : vector<1x16xf32> to vector<16x16xf32>
    %121 = arith.addf %119, %120 : vector<16x16xf32>
    %122 = arith.truncf %121 : vector<16x16xf32> to vector<16x16xbf16>
    %123 = math.tanh %122 : vector<16x16xbf16>
    %124 = arith.extf %123 : vector<16x16xbf16> to vector<16x16xf32>
    %125 = arith.addf %116, %124 : vector<16x16xf32>
    %126 = vector.extract_strided_slice %33 {offsets = [0, 9], sizes = [16, 1], strides = [1, 1]} : vector<16x96xf32> to vector<16x1xf32>
    %127 = vector.extract_strided_slice %37 {offsets = [9, 0], sizes = [1, 16], strides = [1, 1]} : vector<96x16xf32> to vector<1x16xf32>
    %128 = vector.broadcast %126 : vector<16x1xf32> to vector<16x16xf32>
    %129 = vector.broadcast %127 : vector<1x16xf32> to vector<16x16xf32>
    %130 = arith.addf %128, %129 : vector<16x16xf32>
    %131 = arith.truncf %130 : vector<16x16xf32> to vector<16x16xbf16>
    %132 = math.tanh %131 : vector<16x16xbf16>
    %133 = arith.extf %132 : vector<16x16xbf16> to vector<16x16xf32>
    %134 = arith.addf %125, %133 : vector<16x16xf32>
    %135 = vector.extract_strided_slice %33 {offsets = [0, 10], sizes = [16, 1], strides = [1, 1]} : vector<16x96xf32> to vector<16x1xf32>
    %136 = vector.extract_strided_slice %37 {offsets = [10, 0], sizes = [1, 16], strides = [1, 1]} : vector<96x16xf32> to vector<1x16xf32>
    %137 = vector.broadcast %135 : vector<16x1xf32> to vector<16x16xf32>
    %138 = vector.broadcast %136 : vector<1x16xf32> to vector<16x16xf32>
    %139 = arith.addf %137, %138 : vector<16x16xf32>
    %140 = arith.truncf %139 : vector<16x16xf32> to vector<16x16xbf16>
    %141 = math.tanh %140 : vector<16x16xbf16>
    %142 = arith.extf %141 : vector<16x16xbf16> to vector<16x16xf32>
    %143 = arith.addf %134, %142 : vector<16x16xf32>
    %144 = vector.extract_strided_slice %33 {offsets = [0, 11], sizes = [16, 1], strides = [1, 1]} : vector<16x96xf32> to vector<16x1xf32>
    %145 = vector.extract_strided_slice %37 {offsets = [11, 0], sizes = [1, 16], strides = [1, 1]} : vector<96x16xf32> to vector<1x16xf32>
    %146 = vector.broadcast %144 : vector<16x1xf32> to vector<16x16xf32>
    %147 = vector.broadcast %145 : vector<1x16xf32> to vector<16x16xf32>
    %148 = arith.addf %146, %147 : vector<16x16xf32>
    %149 = arith.truncf %148 : vector<16x16xf32> to vector<16x16xbf16>
    %150 = math.tanh %149 : vector<16x16xbf16>
    %151 = arith.extf %150 : vector<16x16xbf16> to vector<16x16xf32>
    %152 = arith.addf %143, %151 : vector<16x16xf32>
    %153 = vector.extract_strided_slice %33 {offsets = [0, 12], sizes = [16, 1], strides = [1, 1]} : vector<16x96xf32> to vector<16x1xf32>
    %154 = vector.extract_strided_slice %37 {offsets = [12, 0], sizes = [1, 16], strides = [1, 1]} : vector<96x16xf32> to vector<1x16xf32>
    %155 = vector.broadcast %153 : vector<16x1xf32> to vector<16x16xf32>
    %156 = vector.broadcast %154 : vector<1x16xf32> to vector<16x16xf32>
    %157 = arith.addf %155, %156 : vector<16x16xf32>
    %158 = arith.truncf %157 : vector<16x16xf32> to vector<16x16xbf16>
    %159 = math.tanh %158 : vector<16x16xbf16>
    %160 = arith.extf %159 : vector<16x16xbf16> to vector<16x16xf32>
    %161 = arith.addf %152, %160 : vector<16x16xf32>
    %162 = vector.extract_strided_slice %33 {offsets = [0, 13], sizes = [16, 1], strides = [1, 1]} : vector<16x96xf32> to vector<16x1xf32>
    %163 = vector.extract_strided_slice %37 {offsets = [13, 0], sizes = [1, 16], strides = [1, 1]} : vector<96x16xf32> to vector<1x16xf32>
    %164 = vector.broadcast %162 : vector<16x1xf32> to vector<16x16xf32>
    %165 = vector.broadcast %163 : vector<1x16xf32> to vector<16x16xf32>
    %166 = arith.addf %164, %165 : vector<16x16xf32>
    %167 = arith.truncf %166 : vector<16x16xf32> to vector<16x16xbf16>
    %168 = math.tanh %167 : vector<16x16xbf16>
    %169 = arith.extf %168 : vector<16x16xbf16> to vector<16x16xf32>
    %170 = arith.addf %161, %169 : vector<16x16xf32>
    %171 = vector.extract_strided_slice %33 {offsets = [0, 14], sizes = [16, 1], strides = [1, 1]} : vector<16x96xf32> to vector<16x1xf32>
    %172 = vector.extract_strided_slice %37 {offsets = [14, 0], sizes = [1, 16], strides = [1, 1]} : vector<96x16xf32> to vector<1x16xf32>
    %173 = vector.broadcast %171 : vector<16x1xf32> to vector<16x16xf32>
    %174 = vector.broadcast %172 : vector<1x16xf32> to vector<16x16xf32>
    %175 = arith.addf %173, %174 : vector<16x16xf32>
    %176 = arith.truncf %175 : vector<16x16xf32> to vector<16x16xbf16>
    %177 = math.tanh %176 : vector<16x16xbf16>
    %178 = arith.extf %177 : vector<16x16xbf16> to vector<16x16xf32>
    %179 = arith.addf %170, %178 : vector<16x16xf32>
    %180 = vector.extract_strided_slice %33 {offsets = [0, 15], sizes = [16, 1], strides = [1, 1]} : vector<16x96xf32> to vector<16x1xf32>
    %181 = vector.extract_strided_slice %37 {offsets = [15, 0], sizes = [1, 16], strides = [1, 1]} : vector<96x16xf32> to vector<1x16xf32>
    %182 = vector.broadcast %180 : vector<16x1xf32> to vector<16x16xf32>
    %183 = vector.broadcast %181 : vector<1x16xf32> to vector<16x16xf32>
    %184 = arith.addf %182, %183 : vector<16x16xf32>
    %185 = arith.truncf %184 : vector<16x16xf32> to vector<16x16xbf16>
    %186 = math.tanh %185 : vector<16x16xbf16>
    %187 = arith.extf %186 : vector<16x16xbf16> to vector<16x16xf32>
    %188 = arith.addf %179, %187 : vector<16x16xf32>
    %189 = vector.extract_strided_slice %33 {offsets = [0, 16], sizes = [16, 1], strides = [1, 1]} : vector<16x96xf32> to vector<16x1xf32>
    %190 = vector.extract_strided_slice %37 {offsets = [16, 0], sizes = [1, 16], strides = [1, 1]} : vector<96x16xf32> to vector<1x16xf32>
    %191 = vector.broadcast %189 : vector<16x1xf32> to vector<16x16xf32>
    %192 = vector.broadcast %190 : vector<1x16xf32> to vector<16x16xf32>
    %193 = arith.addf %191, %192 : vector<16x16xf32>
    %194 = arith.truncf %193 : vector<16x16xf32> to vector<16x16xbf16>
    %195 = math.tanh %194 : vector<16x16xbf16>
    %196 = arith.extf %195 : vector<16x16xbf16> to vector<16x16xf32>
    %197 = arith.addf %188, %196 : vector<16x16xf32>
    %198 = vector.extract_strided_slice %33 {offsets = [0, 17], sizes = [16, 1], strides = [1, 1]} : vector<16x96xf32> to vector<16x1xf32>
    %199 = vector.extract_strided_slice %37 {offsets = [17, 0], sizes = [1, 16], strides = [1, 1]} : vector<96x16xf32> to vector<1x16xf32>
    %200 = vector.broadcast %198 : vector<16x1xf32> to vector<16x16xf32>
    %201 = vector.broadcast %199 : vector<1x16xf32> to vector<16x16xf32>
    %202 = arith.addf %200, %201 : vector<16x16xf32>
    %203 = arith.truncf %202 : vector<16x16xf32> to vector<16x16xbf16>
    %204 = math.tanh %203 : vector<16x16xbf16>
    %205 = arith.extf %204 : vector<16x16xbf16> to vector<16x16xf32>
    %206 = arith.addf %197, %205 : vector<16x16xf32>
    %207 = vector.extract_strided_slice %33 {offsets = [0, 18], sizes = [16, 1], strides = [1, 1]} : vector<16x96xf32> to vector<16x1xf32>
    %208 = vector.extract_strided_slice %37 {offsets = [18, 0], sizes = [1, 16], strides = [1, 1]} : vector<96x16xf32> to vector<1x16xf32>
    %209 = vector.broadcast %207 : vector<16x1xf32> to vector<16x16xf32>
    %210 = vector.broadcast %208 : vector<1x16xf32> to vector<16x16xf32>
    %211 = arith.addf %209, %210 : vector<16x16xf32>
    %212 = arith.truncf %211 : vector<16x16xf32> to vector<16x16xbf16>
    %213 = math.tanh %212 : vector<16x16xbf16>
    %214 = arith.extf %213 : vector<16x16xbf16> to vector<16x16xf32>
    %215 = arith.addf %206, %214 : vector<16x16xf32>
    %216 = vector.extract_strided_slice %33 {offsets = [0, 19], sizes = [16, 1], strides = [1, 1]} : vector<16x96xf32> to vector<16x1xf32>
    %217 = vector.extract_strided_slice %37 {offsets = [19, 0], sizes = [1, 16], strides = [1, 1]} : vector<96x16xf32> to vector<1x16xf32>
    %218 = vector.broadcast %216 : vector<16x1xf32> to vector<16x16xf32>
    %219 = vector.broadcast %217 : vector<1x16xf32> to vector<16x16xf32>
    %220 = arith.addf %218, %219 : vector<16x16xf32>
    %221 = arith.truncf %220 : vector<16x16xf32> to vector<16x16xbf16>
    %222 = math.tanh %221 : vector<16x16xbf16>
    %223 = arith.extf %222 : vector<16x16xbf16> to vector<16x16xf32>
    %224 = arith.addf %215, %223 : vector<16x16xf32>
    %225 = vector.extract_strided_slice %33 {offsets = [0, 20], sizes = [16, 1], strides = [1, 1]} : vector<16x96xf32> to vector<16x1xf32>
    %226 = vector.extract_strided_slice %37 {offsets = [20, 0], sizes = [1, 16], strides = [1, 1]} : vector<96x16xf32> to vector<1x16xf32>
    %227 = vector.broadcast %225 : vector<16x1xf32> to vector<16x16xf32>
    %228 = vector.broadcast %226 : vector<1x16xf32> to vector<16x16xf32>
    %229 = arith.addf %227, %228 : vector<16x16xf32>
    %230 = arith.truncf %229 : vector<16x16xf32> to vector<16x16xbf16>
    %231 = math.tanh %230 : vector<16x16xbf16>
    %232 = arith.extf %231 : vector<16x16xbf16> to vector<16x16xf32>
    %233 = arith.addf %224, %232 : vector<16x16xf32>
    %234 = vector.extract_strided_slice %33 {offsets = [0, 21], sizes = [16, 1], strides = [1, 1]} : vector<16x96xf32> to vector<16x1xf32>
    %235 = vector.extract_strided_slice %37 {offsets = [21, 0], sizes = [1, 16], strides = [1, 1]} : vector<96x16xf32> to vector<1x16xf32>
    %236 = vector.broadcast %234 : vector<16x1xf32> to vector<16x16xf32>
    %237 = vector.broadcast %235 : vector<1x16xf32> to vector<16x16xf32>
    %238 = arith.addf %236, %237 : vector<16x16xf32>
    %239 = arith.truncf %238 : vector<16x16xf32> to vector<16x16xbf16>
    %240 = math.tanh %239 : vector<16x16xbf16>
    %241 = arith.extf %240 : vector<16x16xbf16> to vector<16x16xf32>
    %242 = arith.addf %233, %241 : vector<16x16xf32>
    %243 = vector.extract_strided_slice %33 {offsets = [0, 22], sizes = [16, 1], strides = [1, 1]} : vector<16x96xf32> to vector<16x1xf32>
    %244 = vector.extract_strided_slice %37 {offsets = [22, 0], sizes = [1, 16], strides = [1, 1]} : vector<96x16xf32> to vector<1x16xf32>
    %245 = vector.broadcast %243 : vector<16x1xf32> to vector<16x16xf32>
    %246 = vector.broadcast %244 : vector<1x16xf32> to vector<16x16xf32>
    %247 = arith.addf %245, %246 : vector<16x16xf32>
    %248 = arith.truncf %247 : vector<16x16xf32> to vector<16x16xbf16>
    %249 = math.tanh %248 : vector<16x16xbf16>
    %250 = arith.extf %249 : vector<16x16xbf16> to vector<16x16xf32>
    %251 = arith.addf %242, %250 : vector<16x16xf32>
    %252 = vector.extract_strided_slice %33 {offsets = [0, 23], sizes = [16, 1], strides = [1, 1]} : vector<16x96xf32> to vector<16x1xf32>
    %253 = vector.extract_strided_slice %37 {offsets = [23, 0], sizes = [1, 16], strides = [1, 1]} : vector<96x16xf32> to vector<1x16xf32>
    %254 = vector.broadcast %252 : vector<16x1xf32> to vector<16x16xf32>
    %255 = vector.broadcast %253 : vector<1x16xf32> to vector<16x16xf32>
    %256 = arith.addf %254, %255 : vector<16x16xf32>
    %257 = arith.truncf %256 : vector<16x16xf32> to vector<16x16xbf16>
    %258 = math.tanh %257 : vector<16x16xbf16>
    %259 = arith.extf %258 : vector<16x16xbf16> to vector<16x16xf32>
    %260 = arith.addf %251, %259 : vector<16x16xf32>
    %cst_30 = arith.constant 2.400000e+01 : f32
    %261 = vector.broadcast %cst_30 : f32 to vector<16x16xf32>
    %262 = arith.subf %260, %261 : vector<16x16xf32>
    %263 = math.exp %262 : vector<16x16xf32>
    %cst_31 = arith.constant dense<0.000000e+00> : vector<16xf32>
    %264 = vector.multi_reduction <add>, %263, %cst_31 [1] : vector<16x16xf32> to vector<16xf32>
    %265 = vector.shape_cast %264 : vector<16xf32> to vector<16x1xf32>
    %266 = tpu.reciprocal %265 {approx = true} : vector<16x1xf32> -> vector<16x1xf32>
    %267 = vector.broadcast %266 : vector<16x1xf32> to vector<16x16xf32>
    %268 = arith.mulf %263, %267 : vector<16x16xf32>
    %269 = vector.extract_strided_slice %40 {offsets = [0, 0], sizes = [16, 24], strides = [1, 1]} : vector<16x96xf32> to vector<16x24xf32>
    %cst_32 = arith.constant dense<0.000000e+00> : vector<16x24xf32>
    %270 = tpu.matmul %268, %269, %cst_32 {dimension_numbers = #tpu.dot_dimension_numbers<[1], [0], [0], [1], [0, 0, 1, 1], [], []>} : vector<16x16xf32>, vector<16x24xf32>, vector<16x24xf32> -> vector<16x24xf32>
    %271 = vector.extract_strided_slice %42 {offsets = [0, 0], sizes = [24, 96], strides = [1, 1]} : vector<96x96xf32> to vector<24x96xf32>
    %cst_33 = arith.constant dense<0.000000e+00> : vector<16x96xf32>
    %272 = tpu.matmul %270, %271, %cst_33 {dimension_numbers = #tpu.dot_dimension_numbers<[1], [0], [0], [1], [0, 0, 1, 1], [], []>} : vector<16x24xf32>, vector<24x96xf32>, vector<16x96xf32> -> vector<16x96xf32>
    %273 = arith.addf %43, %272 : vector<16x96xf32>
    %cst_34 = arith.constant 0.000000e+00 : f32
    %274 = vector.broadcast %cst_34 : f32 to vector<16x16xf32>
    %275 = vector.extract_strided_slice %33 {offsets = [0, 24], sizes = [16, 1], strides = [1, 1]} : vector<16x96xf32> to vector<16x1xf32>
    %276 = vector.extract_strided_slice %37 {offsets = [24, 0], sizes = [1, 16], strides = [1, 1]} : vector<96x16xf32> to vector<1x16xf32>
    %277 = vector.broadcast %275 : vector<16x1xf32> to vector<16x16xf32>
    %278 = vector.broadcast %276 : vector<1x16xf32> to vector<16x16xf32>
    %279 = arith.addf %277, %278 : vector<16x16xf32>
    %280 = arith.truncf %279 : vector<16x16xf32> to vector<16x16xbf16>
    %281 = math.tanh %280 : vector<16x16xbf16>
    %282 = arith.extf %281 : vector<16x16xbf16> to vector<16x16xf32>
    %283 = arith.addf %274, %282 : vector<16x16xf32>
    %284 = vector.extract_strided_slice %33 {offsets = [0, 25], sizes = [16, 1], strides = [1, 1]} : vector<16x96xf32> to vector<16x1xf32>
    %285 = vector.extract_strided_slice %37 {offsets = [25, 0], sizes = [1, 16], strides = [1, 1]} : vector<96x16xf32> to vector<1x16xf32>
    %286 = vector.broadcast %284 : vector<16x1xf32> to vector<16x16xf32>
    %287 = vector.broadcast %285 : vector<1x16xf32> to vector<16x16xf32>
    %288 = arith.addf %286, %287 : vector<16x16xf32>
    %289 = arith.truncf %288 : vector<16x16xf32> to vector<16x16xbf16>
    %290 = math.tanh %289 : vector<16x16xbf16>
    %291 = arith.extf %290 : vector<16x16xbf16> to vector<16x16xf32>
    %292 = arith.addf %283, %291 : vector<16x16xf32>
    %293 = vector.extract_strided_slice %33 {offsets = [0, 26], sizes = [16, 1], strides = [1, 1]} : vector<16x96xf32> to vector<16x1xf32>
    %294 = vector.extract_strided_slice %37 {offsets = [26, 0], sizes = [1, 16], strides = [1, 1]} : vector<96x16xf32> to vector<1x16xf32>
    %295 = vector.broadcast %293 : vector<16x1xf32> to vector<16x16xf32>
    %296 = vector.broadcast %294 : vector<1x16xf32> to vector<16x16xf32>
    %297 = arith.addf %295, %296 : vector<16x16xf32>
    %298 = arith.truncf %297 : vector<16x16xf32> to vector<16x16xbf16>
    %299 = math.tanh %298 : vector<16x16xbf16>
    %300 = arith.extf %299 : vector<16x16xbf16> to vector<16x16xf32>
    %301 = arith.addf %292, %300 : vector<16x16xf32>
    %302 = vector.extract_strided_slice %33 {offsets = [0, 27], sizes = [16, 1], strides = [1, 1]} : vector<16x96xf32> to vector<16x1xf32>
    %303 = vector.extract_strided_slice %37 {offsets = [27, 0], sizes = [1, 16], strides = [1, 1]} : vector<96x16xf32> to vector<1x16xf32>
    %304 = vector.broadcast %302 : vector<16x1xf32> to vector<16x16xf32>
    %305 = vector.broadcast %303 : vector<1x16xf32> to vector<16x16xf32>
    %306 = arith.addf %304, %305 : vector<16x16xf32>
    %307 = arith.truncf %306 : vector<16x16xf32> to vector<16x16xbf16>
    %308 = math.tanh %307 : vector<16x16xbf16>
    %309 = arith.extf %308 : vector<16x16xbf16> to vector<16x16xf32>
    %310 = arith.addf %301, %309 : vector<16x16xf32>
    %311 = vector.extract_strided_slice %33 {offsets = [0, 28], sizes = [16, 1], strides = [1, 1]} : vector<16x96xf32> to vector<16x1xf32>
    %312 = vector.extract_strided_slice %37 {offsets = [28, 0], sizes = [1, 16], strides = [1, 1]} : vector<96x16xf32> to vector<1x16xf32>
    %313 = vector.broadcast %311 : vector<16x1xf32> to vector<16x16xf32>
    %314 = vector.broadcast %312 : vector<1x16xf32> to vector<16x16xf32>
    %315 = arith.addf %313, %314 : vector<16x16xf32>
    %316 = arith.truncf %315 : vector<16x16xf32> to vector<16x16xbf16>
    %317 = math.tanh %316 : vector<16x16xbf16>
    %318 = arith.extf %317 : vector<16x16xbf16> to vector<16x16xf32>
    %319 = arith.addf %310, %318 : vector<16x16xf32>
    %320 = vector.extract_strided_slice %33 {offsets = [0, 29], sizes = [16, 1], strides = [1, 1]} : vector<16x96xf32> to vector<16x1xf32>
    %321 = vector.extract_strided_slice %37 {offsets = [29, 0], sizes = [1, 16], strides = [1, 1]} : vector<96x16xf32> to vector<1x16xf32>
    %322 = vector.broadcast %320 : vector<16x1xf32> to vector<16x16xf32>
    %323 = vector.broadcast %321 : vector<1x16xf32> to vector<16x16xf32>
    %324 = arith.addf %322, %323 : vector<16x16xf32>
    %325 = arith.truncf %324 : vector<16x16xf32> to vector<16x16xbf16>
    %326 = math.tanh %325 : vector<16x16xbf16>
    %327 = arith.extf %326 : vector<16x16xbf16> to vector<16x16xf32>
    %328 = arith.addf %319, %327 : vector<16x16xf32>
    %329 = vector.extract_strided_slice %33 {offsets = [0, 30], sizes = [16, 1], strides = [1, 1]} : vector<16x96xf32> to vector<16x1xf32>
    %330 = vector.extract_strided_slice %37 {offsets = [30, 0], sizes = [1, 16], strides = [1, 1]} : vector<96x16xf32> to vector<1x16xf32>
    %331 = vector.broadcast %329 : vector<16x1xf32> to vector<16x16xf32>
    %332 = vector.broadcast %330 : vector<1x16xf32> to vector<16x16xf32>
    %333 = arith.addf %331, %332 : vector<16x16xf32>
    %334 = arith.truncf %333 : vector<16x16xf32> to vector<16x16xbf16>
    %335 = math.tanh %334 : vector<16x16xbf16>
    %336 = arith.extf %335 : vector<16x16xbf16> to vector<16x16xf32>
    %337 = arith.addf %328, %336 : vector<16x16xf32>
    %338 = vector.extract_strided_slice %33 {offsets = [0, 31], sizes = [16, 1], strides = [1, 1]} : vector<16x96xf32> to vector<16x1xf32>
    %339 = vector.extract_strided_slice %37 {offsets = [31, 0], sizes = [1, 16], strides = [1, 1]} : vector<96x16xf32> to vector<1x16xf32>
    %340 = vector.broadcast %338 : vector<16x1xf32> to vector<16x16xf32>
    %341 = vector.broadcast %339 : vector<1x16xf32> to vector<16x16xf32>
    %342 = arith.addf %340, %341 : vector<16x16xf32>
    %343 = arith.truncf %342 : vector<16x16xf32> to vector<16x16xbf16>
    %344 = math.tanh %343 : vector<16x16xbf16>
    %345 = arith.extf %344 : vector<16x16xbf16> to vector<16x16xf32>
    %346 = arith.addf %337, %345 : vector<16x16xf32>
    %347 = vector.extract_strided_slice %33 {offsets = [0, 32], sizes = [16, 1], strides = [1, 1]} : vector<16x96xf32> to vector<16x1xf32>
    %348 = vector.extract_strided_slice %37 {offsets = [32, 0], sizes = [1, 16], strides = [1, 1]} : vector<96x16xf32> to vector<1x16xf32>
    %349 = vector.broadcast %347 : vector<16x1xf32> to vector<16x16xf32>
    %350 = vector.broadcast %348 : vector<1x16xf32> to vector<16x16xf32>
    %351 = arith.addf %349, %350 : vector<16x16xf32>
    %352 = arith.truncf %351 : vector<16x16xf32> to vector<16x16xbf16>
    %353 = math.tanh %352 : vector<16x16xbf16>
    %354 = arith.extf %353 : vector<16x16xbf16> to vector<16x16xf32>
    %355 = arith.addf %346, %354 : vector<16x16xf32>
    %356 = vector.extract_strided_slice %33 {offsets = [0, 33], sizes = [16, 1], strides = [1, 1]} : vector<16x96xf32> to vector<16x1xf32>
    %357 = vector.extract_strided_slice %37 {offsets = [33, 0], sizes = [1, 16], strides = [1, 1]} : vector<96x16xf32> to vector<1x16xf32>
    %358 = vector.broadcast %356 : vector<16x1xf32> to vector<16x16xf32>
    %359 = vector.broadcast %357 : vector<1x16xf32> to vector<16x16xf32>
    %360 = arith.addf %358, %359 : vector<16x16xf32>
    %361 = arith.truncf %360 : vector<16x16xf32> to vector<16x16xbf16>
    %362 = math.tanh %361 : vector<16x16xbf16>
    %363 = arith.extf %362 : vector<16x16xbf16> to vector<16x16xf32>
    %364 = arith.addf %355, %363 : vector<16x16xf32>
    %365 = vector.extract_strided_slice %33 {offsets = [0, 34], sizes = [16, 1], strides = [1, 1]} : vector<16x96xf32> to vector<16x1xf32>
    %366 = vector.extract_strided_slice %37 {offsets = [34, 0], sizes = [1, 16], strides = [1, 1]} : vector<96x16xf32> to vector<1x16xf32>
    %367 = vector.broadcast %365 : vector<16x1xf32> to vector<16x16xf32>
    %368 = vector.broadcast %366 : vector<1x16xf32> to vector<16x16xf32>
    %369 = arith.addf %367, %368 : vector<16x16xf32>
    %370 = arith.truncf %369 : vector<16x16xf32> to vector<16x16xbf16>
    %371 = math.tanh %370 : vector<16x16xbf16>
    %372 = arith.extf %371 : vector<16x16xbf16> to vector<16x16xf32>
    %373 = arith.addf %364, %372 : vector<16x16xf32>
    %374 = vector.extract_strided_slice %33 {offsets = [0, 35], sizes = [16, 1], strides = [1, 1]} : vector<16x96xf32> to vector<16x1xf32>
    %375 = vector.extract_strided_slice %37 {offsets = [35, 0], sizes = [1, 16], strides = [1, 1]} : vector<96x16xf32> to vector<1x16xf32>
    %376 = vector.broadcast %374 : vector<16x1xf32> to vector<16x16xf32>
    %377 = vector.broadcast %375 : vector<1x16xf32> to vector<16x16xf32>
    %378 = arith.addf %376, %377 : vector<16x16xf32>
    %379 = arith.truncf %378 : vector<16x16xf32> to vector<16x16xbf16>
    %380 = math.tanh %379 : vector<16x16xbf16>
    %381 = arith.extf %380 : vector<16x16xbf16> to vector<16x16xf32>
    %382 = arith.addf %373, %381 : vector<16x16xf32>
    %383 = vector.extract_strided_slice %33 {offsets = [0, 36], sizes = [16, 1], strides = [1, 1]} : vector<16x96xf32> to vector<16x1xf32>
    %384 = vector.extract_strided_slice %37 {offsets = [36, 0], sizes = [1, 16], strides = [1, 1]} : vector<96x16xf32> to vector<1x16xf32>
    %385 = vector.broadcast %383 : vector<16x1xf32> to vector<16x16xf32>
    %386 = vector.broadcast %384 : vector<1x16xf32> to vector<16x16xf32>
    %387 = arith.addf %385, %386 : vector<16x16xf32>
    %388 = arith.truncf %387 : vector<16x16xf32> to vector<16x16xbf16>
    %389 = math.tanh %388 : vector<16x16xbf16>
    %390 = arith.extf %389 : vector<16x16xbf16> to vector<16x16xf32>
    %391 = arith.addf %382, %390 : vector<16x16xf32>
    %392 = vector.extract_strided_slice %33 {offsets = [0, 37], sizes = [16, 1], strides = [1, 1]} : vector<16x96xf32> to vector<16x1xf32>
    %393 = vector.extract_strided_slice %37 {offsets = [37, 0], sizes = [1, 16], strides = [1, 1]} : vector<96x16xf32> to vector<1x16xf32>
    %394 = vector.broadcast %392 : vector<16x1xf32> to vector<16x16xf32>
    %395 = vector.broadcast %393 : vector<1x16xf32> to vector<16x16xf32>
    %396 = arith.addf %394, %395 : vector<16x16xf32>
    %397 = arith.truncf %396 : vector<16x16xf32> to vector<16x16xbf16>
    %398 = math.tanh %397 : vector<16x16xbf16>
    %399 = arith.extf %398 : vector<16x16xbf16> to vector<16x16xf32>
    %400 = arith.addf %391, %399 : vector<16x16xf32>
    %401 = vector.extract_strided_slice %33 {offsets = [0, 38], sizes = [16, 1], strides = [1, 1]} : vector<16x96xf32> to vector<16x1xf32>
    %402 = vector.extract_strided_slice %37 {offsets = [38, 0], sizes = [1, 16], strides = [1, 1]} : vector<96x16xf32> to vector<1x16xf32>
    %403 = vector.broadcast %401 : vector<16x1xf32> to vector<16x16xf32>
    %404 = vector.broadcast %402 : vector<1x16xf32> to vector<16x16xf32>
    %405 = arith.addf %403, %404 : vector<16x16xf32>
    %406 = arith.truncf %405 : vector<16x16xf32> to vector<16x16xbf16>
    %407 = math.tanh %406 : vector<16x16xbf16>
    %408 = arith.extf %407 : vector<16x16xbf16> to vector<16x16xf32>
    %409 = arith.addf %400, %408 : vector<16x16xf32>
    %410 = vector.extract_strided_slice %33 {offsets = [0, 39], sizes = [16, 1], strides = [1, 1]} : vector<16x96xf32> to vector<16x1xf32>
    %411 = vector.extract_strided_slice %37 {offsets = [39, 0], sizes = [1, 16], strides = [1, 1]} : vector<96x16xf32> to vector<1x16xf32>
    %412 = vector.broadcast %410 : vector<16x1xf32> to vector<16x16xf32>
    %413 = vector.broadcast %411 : vector<1x16xf32> to vector<16x16xf32>
    %414 = arith.addf %412, %413 : vector<16x16xf32>
    %415 = arith.truncf %414 : vector<16x16xf32> to vector<16x16xbf16>
    %416 = math.tanh %415 : vector<16x16xbf16>
    %417 = arith.extf %416 : vector<16x16xbf16> to vector<16x16xf32>
    %418 = arith.addf %409, %417 : vector<16x16xf32>
    %419 = vector.extract_strided_slice %33 {offsets = [0, 40], sizes = [16, 1], strides = [1, 1]} : vector<16x96xf32> to vector<16x1xf32>
    %420 = vector.extract_strided_slice %37 {offsets = [40, 0], sizes = [1, 16], strides = [1, 1]} : vector<96x16xf32> to vector<1x16xf32>
    %421 = vector.broadcast %419 : vector<16x1xf32> to vector<16x16xf32>
    %422 = vector.broadcast %420 : vector<1x16xf32> to vector<16x16xf32>
    %423 = arith.addf %421, %422 : vector<16x16xf32>
    %424 = arith.truncf %423 : vector<16x16xf32> to vector<16x16xbf16>
    %425 = math.tanh %424 : vector<16x16xbf16>
    %426 = arith.extf %425 : vector<16x16xbf16> to vector<16x16xf32>
    %427 = arith.addf %418, %426 : vector<16x16xf32>
    %428 = vector.extract_strided_slice %33 {offsets = [0, 41], sizes = [16, 1], strides = [1, 1]} : vector<16x96xf32> to vector<16x1xf32>
    %429 = vector.extract_strided_slice %37 {offsets = [41, 0], sizes = [1, 16], strides = [1, 1]} : vector<96x16xf32> to vector<1x16xf32>
    %430 = vector.broadcast %428 : vector<16x1xf32> to vector<16x16xf32>
    %431 = vector.broadcast %429 : vector<1x16xf32> to vector<16x16xf32>
    %432 = arith.addf %430, %431 : vector<16x16xf32>
    %433 = arith.truncf %432 : vector<16x16xf32> to vector<16x16xbf16>
    %434 = math.tanh %433 : vector<16x16xbf16>
    %435 = arith.extf %434 : vector<16x16xbf16> to vector<16x16xf32>
    %436 = arith.addf %427, %435 : vector<16x16xf32>
    %437 = vector.extract_strided_slice %33 {offsets = [0, 42], sizes = [16, 1], strides = [1, 1]} : vector<16x96xf32> to vector<16x1xf32>
    %438 = vector.extract_strided_slice %37 {offsets = [42, 0], sizes = [1, 16], strides = [1, 1]} : vector<96x16xf32> to vector<1x16xf32>
    %439 = vector.broadcast %437 : vector<16x1xf32> to vector<16x16xf32>
    %440 = vector.broadcast %438 : vector<1x16xf32> to vector<16x16xf32>
    %441 = arith.addf %439, %440 : vector<16x16xf32>
    %442 = arith.truncf %441 : vector<16x16xf32> to vector<16x16xbf16>
    %443 = math.tanh %442 : vector<16x16xbf16>
    %444 = arith.extf %443 : vector<16x16xbf16> to vector<16x16xf32>
    %445 = arith.addf %436, %444 : vector<16x16xf32>
    %446 = vector.extract_strided_slice %33 {offsets = [0, 43], sizes = [16, 1], strides = [1, 1]} : vector<16x96xf32> to vector<16x1xf32>
    %447 = vector.extract_strided_slice %37 {offsets = [43, 0], sizes = [1, 16], strides = [1, 1]} : vector<96x16xf32> to vector<1x16xf32>
    %448 = vector.broadcast %446 : vector<16x1xf32> to vector<16x16xf32>
    %449 = vector.broadcast %447 : vector<1x16xf32> to vector<16x16xf32>
    %450 = arith.addf %448, %449 : vector<16x16xf32>
    %451 = arith.truncf %450 : vector<16x16xf32> to vector<16x16xbf16>
    %452 = math.tanh %451 : vector<16x16xbf16>
    %453 = arith.extf %452 : vector<16x16xbf16> to vector<16x16xf32>
    %454 = arith.addf %445, %453 : vector<16x16xf32>
    %455 = vector.extract_strided_slice %33 {offsets = [0, 44], sizes = [16, 1], strides = [1, 1]} : vector<16x96xf32> to vector<16x1xf32>
    %456 = vector.extract_strided_slice %37 {offsets = [44, 0], sizes = [1, 16], strides = [1, 1]} : vector<96x16xf32> to vector<1x16xf32>
    %457 = vector.broadcast %455 : vector<16x1xf32> to vector<16x16xf32>
    %458 = vector.broadcast %456 : vector<1x16xf32> to vector<16x16xf32>
    %459 = arith.addf %457, %458 : vector<16x16xf32>
    %460 = arith.truncf %459 : vector<16x16xf32> to vector<16x16xbf16>
    %461 = math.tanh %460 : vector<16x16xbf16>
    %462 = arith.extf %461 : vector<16x16xbf16> to vector<16x16xf32>
    %463 = arith.addf %454, %462 : vector<16x16xf32>
    %464 = vector.extract_strided_slice %33 {offsets = [0, 45], sizes = [16, 1], strides = [1, 1]} : vector<16x96xf32> to vector<16x1xf32>
    %465 = vector.extract_strided_slice %37 {offsets = [45, 0], sizes = [1, 16], strides = [1, 1]} : vector<96x16xf32> to vector<1x16xf32>
    %466 = vector.broadcast %464 : vector<16x1xf32> to vector<16x16xf32>
    %467 = vector.broadcast %465 : vector<1x16xf32> to vector<16x16xf32>
    %468 = arith.addf %466, %467 : vector<16x16xf32>
    %469 = arith.truncf %468 : vector<16x16xf32> to vector<16x16xbf16>
    %470 = math.tanh %469 : vector<16x16xbf16>
    %471 = arith.extf %470 : vector<16x16xbf16> to vector<16x16xf32>
    %472 = arith.addf %463, %471 : vector<16x16xf32>
    %473 = vector.extract_strided_slice %33 {offsets = [0, 46], sizes = [16, 1], strides = [1, 1]} : vector<16x96xf32> to vector<16x1xf32>
    %474 = vector.extract_strided_slice %37 {offsets = [46, 0], sizes = [1, 16], strides = [1, 1]} : vector<96x16xf32> to vector<1x16xf32>
    %475 = vector.broadcast %473 : vector<16x1xf32> to vector<16x16xf32>
    %476 = vector.broadcast %474 : vector<1x16xf32> to vector<16x16xf32>
    %477 = arith.addf %475, %476 : vector<16x16xf32>
    %478 = arith.truncf %477 : vector<16x16xf32> to vector<16x16xbf16>
    %479 = math.tanh %478 : vector<16x16xbf16>
    %480 = arith.extf %479 : vector<16x16xbf16> to vector<16x16xf32>
    %481 = arith.addf %472, %480 : vector<16x16xf32>
    %482 = vector.extract_strided_slice %33 {offsets = [0, 47], sizes = [16, 1], strides = [1, 1]} : vector<16x96xf32> to vector<16x1xf32>
    %483 = vector.extract_strided_slice %37 {offsets = [47, 0], sizes = [1, 16], strides = [1, 1]} : vector<96x16xf32> to vector<1x16xf32>
    %484 = vector.broadcast %482 : vector<16x1xf32> to vector<16x16xf32>
    %485 = vector.broadcast %483 : vector<1x16xf32> to vector<16x16xf32>
    %486 = arith.addf %484, %485 : vector<16x16xf32>
    %487 = arith.truncf %486 : vector<16x16xf32> to vector<16x16xbf16>
    %488 = math.tanh %487 : vector<16x16xbf16>
    %489 = arith.extf %488 : vector<16x16xbf16> to vector<16x16xf32>
    %490 = arith.addf %481, %489 : vector<16x16xf32>
    %cst_35 = arith.constant 2.400000e+01 : f32
    %491 = vector.broadcast %cst_35 : f32 to vector<16x16xf32>
    %492 = arith.subf %490, %491 : vector<16x16xf32>
    %493 = math.exp %492 : vector<16x16xf32>
    %cst_36 = arith.constant dense<0.000000e+00> : vector<16xf32>
    %494 = vector.multi_reduction <add>, %493, %cst_36 [1] : vector<16x16xf32> to vector<16xf32>
    %495 = vector.shape_cast %494 : vector<16xf32> to vector<16x1xf32>
    %496 = tpu.reciprocal %495 {approx = true} : vector<16x1xf32> -> vector<16x1xf32>
    %497 = vector.broadcast %496 : vector<16x1xf32> to vector<16x16xf32>
    %498 = arith.mulf %493, %497 : vector<16x16xf32>
    %499 = vector.extract_strided_slice %40 {offsets = [0, 24], sizes = [16, 24], strides = [1, 1]} : vector<16x96xf32> to vector<16x24xf32>
    %cst_37 = arith.constant dense<0.000000e+00> : vector<16x24xf32>
    %500 = tpu.matmul %498, %499, %cst_37 {dimension_numbers = #tpu.dot_dimension_numbers<[1], [0], [0], [1], [0, 0, 1, 1], [], []>} : vector<16x16xf32>, vector<16x24xf32>, vector<16x24xf32> -> vector<16x24xf32>
    %501 = vector.extract_strided_slice %42 {offsets = [24, 0], sizes = [24, 96], strides = [1, 1]} : vector<96x96xf32> to vector<24x96xf32>
    %cst_38 = arith.constant dense<0.000000e+00> : vector<16x96xf32>
    %502 = tpu.matmul %500, %501, %cst_38 {dimension_numbers = #tpu.dot_dimension_numbers<[1], [0], [0], [1], [0, 0, 1, 1], [], []>} : vector<16x24xf32>, vector<24x96xf32>, vector<16x96xf32> -> vector<16x96xf32>
    %503 = arith.addf %273, %502 : vector<16x96xf32>
    %cst_39 = arith.constant 0.000000e+00 : f32
    %504 = vector.broadcast %cst_39 : f32 to vector<16x16xf32>
    %505 = vector.extract_strided_slice %33 {offsets = [0, 48], sizes = [16, 1], strides = [1, 1]} : vector<16x96xf32> to vector<16x1xf32>
    %506 = vector.extract_strided_slice %37 {offsets = [48, 0], sizes = [1, 16], strides = [1, 1]} : vector<96x16xf32> to vector<1x16xf32>
    %507 = vector.broadcast %505 : vector<16x1xf32> to vector<16x16xf32>
    %508 = vector.broadcast %506 : vector<1x16xf32> to vector<16x16xf32>
    %509 = arith.addf %507, %508 : vector<16x16xf32>
    %510 = arith.truncf %509 : vector<16x16xf32> to vector<16x16xbf16>
    %511 = math.tanh %510 : vector<16x16xbf16>
    %512 = arith.extf %511 : vector<16x16xbf16> to vector<16x16xf32>
    %513 = arith.addf %504, %512 : vector<16x16xf32>
    %514 = vector.extract_strided_slice %33 {offsets = [0, 49], sizes = [16, 1], strides = [1, 1]} : vector<16x96xf32> to vector<16x1xf32>
    %515 = vector.extract_strided_slice %37 {offsets = [49, 0], sizes = [1, 16], strides = [1, 1]} : vector<96x16xf32> to vector<1x16xf32>
    %516 = vector.broadcast %514 : vector<16x1xf32> to vector<16x16xf32>
    %517 = vector.broadcast %515 : vector<1x16xf32> to vector<16x16xf32>
    %518 = arith.addf %516, %517 : vector<16x16xf32>
    %519 = arith.truncf %518 : vector<16x16xf32> to vector<16x16xbf16>
    %520 = math.tanh %519 : vector<16x16xbf16>
    %521 = arith.extf %520 : vector<16x16xbf16> to vector<16x16xf32>
    %522 = arith.addf %513, %521 : vector<16x16xf32>
    %523 = vector.extract_strided_slice %33 {offsets = [0, 50], sizes = [16, 1], strides = [1, 1]} : vector<16x96xf32> to vector<16x1xf32>
    %524 = vector.extract_strided_slice %37 {offsets = [50, 0], sizes = [1, 16], strides = [1, 1]} : vector<96x16xf32> to vector<1x16xf32>
    %525 = vector.broadcast %523 : vector<16x1xf32> to vector<16x16xf32>
    %526 = vector.broadcast %524 : vector<1x16xf32> to vector<16x16xf32>
    %527 = arith.addf %525, %526 : vector<16x16xf32>
    %528 = arith.truncf %527 : vector<16x16xf32> to vector<16x16xbf16>
    %529 = math.tanh %528 : vector<16x16xbf16>
    %530 = arith.extf %529 : vector<16x16xbf16> to vector<16x16xf32>
    %531 = arith.addf %522, %530 : vector<16x16xf32>
    %532 = vector.extract_strided_slice %33 {offsets = [0, 51], sizes = [16, 1], strides = [1, 1]} : vector<16x96xf32> to vector<16x1xf32>
    %533 = vector.extract_strided_slice %37 {offsets = [51, 0], sizes = [1, 16], strides = [1, 1]} : vector<96x16xf32> to vector<1x16xf32>
    %534 = vector.broadcast %532 : vector<16x1xf32> to vector<16x16xf32>
    %535 = vector.broadcast %533 : vector<1x16xf32> to vector<16x16xf32>
    %536 = arith.addf %534, %535 : vector<16x16xf32>
    %537 = arith.truncf %536 : vector<16x16xf32> to vector<16x16xbf16>
    %538 = math.tanh %537 : vector<16x16xbf16>
    %539 = arith.extf %538 : vector<16x16xbf16> to vector<16x16xf32>
    %540 = arith.addf %531, %539 : vector<16x16xf32>
    %541 = vector.extract_strided_slice %33 {offsets = [0, 52], sizes = [16, 1], strides = [1, 1]} : vector<16x96xf32> to vector<16x1xf32>
    %542 = vector.extract_strided_slice %37 {offsets = [52, 0], sizes = [1, 16], strides = [1, 1]} : vector<96x16xf32> to vector<1x16xf32>
    %543 = vector.broadcast %541 : vector<16x1xf32> to vector<16x16xf32>
    %544 = vector.broadcast %542 : vector<1x16xf32> to vector<16x16xf32>
    %545 = arith.addf %543, %544 : vector<16x16xf32>
    %546 = arith.truncf %545 : vector<16x16xf32> to vector<16x16xbf16>
    %547 = math.tanh %546 : vector<16x16xbf16>
    %548 = arith.extf %547 : vector<16x16xbf16> to vector<16x16xf32>
    %549 = arith.addf %540, %548 : vector<16x16xf32>
    %550 = vector.extract_strided_slice %33 {offsets = [0, 53], sizes = [16, 1], strides = [1, 1]} : vector<16x96xf32> to vector<16x1xf32>
    %551 = vector.extract_strided_slice %37 {offsets = [53, 0], sizes = [1, 16], strides = [1, 1]} : vector<96x16xf32> to vector<1x16xf32>
    %552 = vector.broadcast %550 : vector<16x1xf32> to vector<16x16xf32>
    %553 = vector.broadcast %551 : vector<1x16xf32> to vector<16x16xf32>
    %554 = arith.addf %552, %553 : vector<16x16xf32>
    %555 = arith.truncf %554 : vector<16x16xf32> to vector<16x16xbf16>
    %556 = math.tanh %555 : vector<16x16xbf16>
    %557 = arith.extf %556 : vector<16x16xbf16> to vector<16x16xf32>
    %558 = arith.addf %549, %557 : vector<16x16xf32>
    %559 = vector.extract_strided_slice %33 {offsets = [0, 54], sizes = [16, 1], strides = [1, 1]} : vector<16x96xf32> to vector<16x1xf32>
    %560 = vector.extract_strided_slice %37 {offsets = [54, 0], sizes = [1, 16], strides = [1, 1]} : vector<96x16xf32> to vector<1x16xf32>
    %561 = vector.broadcast %559 : vector<16x1xf32> to vector<16x16xf32>
    %562 = vector.broadcast %560 : vector<1x16xf32> to vector<16x16xf32>
    %563 = arith.addf %561, %562 : vector<16x16xf32>
    %564 = arith.truncf %563 : vector<16x16xf32> to vector<16x16xbf16>
    %565 = math.tanh %564 : vector<16x16xbf16>
    %566 = arith.extf %565 : vector<16x16xbf16> to vector<16x16xf32>
    %567 = arith.addf %558, %566 : vector<16x16xf32>
    %568 = vector.extract_strided_slice %33 {offsets = [0, 55], sizes = [16, 1], strides = [1, 1]} : vector<16x96xf32> to vector<16x1xf32>
    %569 = vector.extract_strided_slice %37 {offsets = [55, 0], sizes = [1, 16], strides = [1, 1]} : vector<96x16xf32> to vector<1x16xf32>
    %570 = vector.broadcast %568 : vector<16x1xf32> to vector<16x16xf32>
    %571 = vector.broadcast %569 : vector<1x16xf32> to vector<16x16xf32>
    %572 = arith.addf %570, %571 : vector<16x16xf32>
    %573 = arith.truncf %572 : vector<16x16xf32> to vector<16x16xbf16>
    %574 = math.tanh %573 : vector<16x16xbf16>
    %575 = arith.extf %574 : vector<16x16xbf16> to vector<16x16xf32>
    %576 = arith.addf %567, %575 : vector<16x16xf32>
    %577 = vector.extract_strided_slice %33 {offsets = [0, 56], sizes = [16, 1], strides = [1, 1]} : vector<16x96xf32> to vector<16x1xf32>
    %578 = vector.extract_strided_slice %37 {offsets = [56, 0], sizes = [1, 16], strides = [1, 1]} : vector<96x16xf32> to vector<1x16xf32>
    %579 = vector.broadcast %577 : vector<16x1xf32> to vector<16x16xf32>
    %580 = vector.broadcast %578 : vector<1x16xf32> to vector<16x16xf32>
    %581 = arith.addf %579, %580 : vector<16x16xf32>
    %582 = arith.truncf %581 : vector<16x16xf32> to vector<16x16xbf16>
    %583 = math.tanh %582 : vector<16x16xbf16>
    %584 = arith.extf %583 : vector<16x16xbf16> to vector<16x16xf32>
    %585 = arith.addf %576, %584 : vector<16x16xf32>
    %586 = vector.extract_strided_slice %33 {offsets = [0, 57], sizes = [16, 1], strides = [1, 1]} : vector<16x96xf32> to vector<16x1xf32>
    %587 = vector.extract_strided_slice %37 {offsets = [57, 0], sizes = [1, 16], strides = [1, 1]} : vector<96x16xf32> to vector<1x16xf32>
    %588 = vector.broadcast %586 : vector<16x1xf32> to vector<16x16xf32>
    %589 = vector.broadcast %587 : vector<1x16xf32> to vector<16x16xf32>
    %590 = arith.addf %588, %589 : vector<16x16xf32>
    %591 = arith.truncf %590 : vector<16x16xf32> to vector<16x16xbf16>
    %592 = math.tanh %591 : vector<16x16xbf16>
    %593 = arith.extf %592 : vector<16x16xbf16> to vector<16x16xf32>
    %594 = arith.addf %585, %593 : vector<16x16xf32>
    %595 = vector.extract_strided_slice %33 {offsets = [0, 58], sizes = [16, 1], strides = [1, 1]} : vector<16x96xf32> to vector<16x1xf32>
    %596 = vector.extract_strided_slice %37 {offsets = [58, 0], sizes = [1, 16], strides = [1, 1]} : vector<96x16xf32> to vector<1x16xf32>
    %597 = vector.broadcast %595 : vector<16x1xf32> to vector<16x16xf32>
    %598 = vector.broadcast %596 : vector<1x16xf32> to vector<16x16xf32>
    %599 = arith.addf %597, %598 : vector<16x16xf32>
    %600 = arith.truncf %599 : vector<16x16xf32> to vector<16x16xbf16>
    %601 = math.tanh %600 : vector<16x16xbf16>
    %602 = arith.extf %601 : vector<16x16xbf16> to vector<16x16xf32>
    %603 = arith.addf %594, %602 : vector<16x16xf32>
    %604 = vector.extract_strided_slice %33 {offsets = [0, 59], sizes = [16, 1], strides = [1, 1]} : vector<16x96xf32> to vector<16x1xf32>
    %605 = vector.extract_strided_slice %37 {offsets = [59, 0], sizes = [1, 16], strides = [1, 1]} : vector<96x16xf32> to vector<1x16xf32>
    %606 = vector.broadcast %604 : vector<16x1xf32> to vector<16x16xf32>
    %607 = vector.broadcast %605 : vector<1x16xf32> to vector<16x16xf32>
    %608 = arith.addf %606, %607 : vector<16x16xf32>
    %609 = arith.truncf %608 : vector<16x16xf32> to vector<16x16xbf16>
    %610 = math.tanh %609 : vector<16x16xbf16>
    %611 = arith.extf %610 : vector<16x16xbf16> to vector<16x16xf32>
    %612 = arith.addf %603, %611 : vector<16x16xf32>
    %613 = vector.extract_strided_slice %33 {offsets = [0, 60], sizes = [16, 1], strides = [1, 1]} : vector<16x96xf32> to vector<16x1xf32>
    %614 = vector.extract_strided_slice %37 {offsets = [60, 0], sizes = [1, 16], strides = [1, 1]} : vector<96x16xf32> to vector<1x16xf32>
    %615 = vector.broadcast %613 : vector<16x1xf32> to vector<16x16xf32>
    %616 = vector.broadcast %614 : vector<1x16xf32> to vector<16x16xf32>
    %617 = arith.addf %615, %616 : vector<16x16xf32>
    %618 = arith.truncf %617 : vector<16x16xf32> to vector<16x16xbf16>
    %619 = math.tanh %618 : vector<16x16xbf16>
    %620 = arith.extf %619 : vector<16x16xbf16> to vector<16x16xf32>
    %621 = arith.addf %612, %620 : vector<16x16xf32>
    %622 = vector.extract_strided_slice %33 {offsets = [0, 61], sizes = [16, 1], strides = [1, 1]} : vector<16x96xf32> to vector<16x1xf32>
    %623 = vector.extract_strided_slice %37 {offsets = [61, 0], sizes = [1, 16], strides = [1, 1]} : vector<96x16xf32> to vector<1x16xf32>
    %624 = vector.broadcast %622 : vector<16x1xf32> to vector<16x16xf32>
    %625 = vector.broadcast %623 : vector<1x16xf32> to vector<16x16xf32>
    %626 = arith.addf %624, %625 : vector<16x16xf32>
    %627 = arith.truncf %626 : vector<16x16xf32> to vector<16x16xbf16>
    %628 = math.tanh %627 : vector<16x16xbf16>
    %629 = arith.extf %628 : vector<16x16xbf16> to vector<16x16xf32>
    %630 = arith.addf %621, %629 : vector<16x16xf32>
    %631 = vector.extract_strided_slice %33 {offsets = [0, 62], sizes = [16, 1], strides = [1, 1]} : vector<16x96xf32> to vector<16x1xf32>
    %632 = vector.extract_strided_slice %37 {offsets = [62, 0], sizes = [1, 16], strides = [1, 1]} : vector<96x16xf32> to vector<1x16xf32>
    %633 = vector.broadcast %631 : vector<16x1xf32> to vector<16x16xf32>
    %634 = vector.broadcast %632 : vector<1x16xf32> to vector<16x16xf32>
    %635 = arith.addf %633, %634 : vector<16x16xf32>
    %636 = arith.truncf %635 : vector<16x16xf32> to vector<16x16xbf16>
    %637 = math.tanh %636 : vector<16x16xbf16>
    %638 = arith.extf %637 : vector<16x16xbf16> to vector<16x16xf32>
    %639 = arith.addf %630, %638 : vector<16x16xf32>
    %640 = vector.extract_strided_slice %33 {offsets = [0, 63], sizes = [16, 1], strides = [1, 1]} : vector<16x96xf32> to vector<16x1xf32>
    %641 = vector.extract_strided_slice %37 {offsets = [63, 0], sizes = [1, 16], strides = [1, 1]} : vector<96x16xf32> to vector<1x16xf32>
    %642 = vector.broadcast %640 : vector<16x1xf32> to vector<16x16xf32>
    %643 = vector.broadcast %641 : vector<1x16xf32> to vector<16x16xf32>
    %644 = arith.addf %642, %643 : vector<16x16xf32>
    %645 = arith.truncf %644 : vector<16x16xf32> to vector<16x16xbf16>
    %646 = math.tanh %645 : vector<16x16xbf16>
    %647 = arith.extf %646 : vector<16x16xbf16> to vector<16x16xf32>
    %648 = arith.addf %639, %647 : vector<16x16xf32>
    %649 = vector.extract_strided_slice %33 {offsets = [0, 64], sizes = [16, 1], strides = [1, 1]} : vector<16x96xf32> to vector<16x1xf32>
    %650 = vector.extract_strided_slice %37 {offsets = [64, 0], sizes = [1, 16], strides = [1, 1]} : vector<96x16xf32> to vector<1x16xf32>
    %651 = vector.broadcast %649 : vector<16x1xf32> to vector<16x16xf32>
    %652 = vector.broadcast %650 : vector<1x16xf32> to vector<16x16xf32>
    %653 = arith.addf %651, %652 : vector<16x16xf32>
    %654 = arith.truncf %653 : vector<16x16xf32> to vector<16x16xbf16>
    %655 = math.tanh %654 : vector<16x16xbf16>
    %656 = arith.extf %655 : vector<16x16xbf16> to vector<16x16xf32>
    %657 = arith.addf %648, %656 : vector<16x16xf32>
    %658 = vector.extract_strided_slice %33 {offsets = [0, 65], sizes = [16, 1], strides = [1, 1]} : vector<16x96xf32> to vector<16x1xf32>
    %659 = vector.extract_strided_slice %37 {offsets = [65, 0], sizes = [1, 16], strides = [1, 1]} : vector<96x16xf32> to vector<1x16xf32>
    %660 = vector.broadcast %658 : vector<16x1xf32> to vector<16x16xf32>
    %661 = vector.broadcast %659 : vector<1x16xf32> to vector<16x16xf32>
    %662 = arith.addf %660, %661 : vector<16x16xf32>
    %663 = arith.truncf %662 : vector<16x16xf32> to vector<16x16xbf16>
    %664 = math.tanh %663 : vector<16x16xbf16>
    %665 = arith.extf %664 : vector<16x16xbf16> to vector<16x16xf32>
    %666 = arith.addf %657, %665 : vector<16x16xf32>
    %667 = vector.extract_strided_slice %33 {offsets = [0, 66], sizes = [16, 1], strides = [1, 1]} : vector<16x96xf32> to vector<16x1xf32>
    %668 = vector.extract_strided_slice %37 {offsets = [66, 0], sizes = [1, 16], strides = [1, 1]} : vector<96x16xf32> to vector<1x16xf32>
    %669 = vector.broadcast %667 : vector<16x1xf32> to vector<16x16xf32>
    %670 = vector.broadcast %668 : vector<1x16xf32> to vector<16x16xf32>
    %671 = arith.addf %669, %670 : vector<16x16xf32>
    %672 = arith.truncf %671 : vector<16x16xf32> to vector<16x16xbf16>
    %673 = math.tanh %672 : vector<16x16xbf16>
    %674 = arith.extf %673 : vector<16x16xbf16> to vector<16x16xf32>
    %675 = arith.addf %666, %674 : vector<16x16xf32>
    %676 = vector.extract_strided_slice %33 {offsets = [0, 67], sizes = [16, 1], strides = [1, 1]} : vector<16x96xf32> to vector<16x1xf32>
    %677 = vector.extract_strided_slice %37 {offsets = [67, 0], sizes = [1, 16], strides = [1, 1]} : vector<96x16xf32> to vector<1x16xf32>
    %678 = vector.broadcast %676 : vector<16x1xf32> to vector<16x16xf32>
    %679 = vector.broadcast %677 : vector<1x16xf32> to vector<16x16xf32>
    %680 = arith.addf %678, %679 : vector<16x16xf32>
    %681 = arith.truncf %680 : vector<16x16xf32> to vector<16x16xbf16>
    %682 = math.tanh %681 : vector<16x16xbf16>
    %683 = arith.extf %682 : vector<16x16xbf16> to vector<16x16xf32>
    %684 = arith.addf %675, %683 : vector<16x16xf32>
    %685 = vector.extract_strided_slice %33 {offsets = [0, 68], sizes = [16, 1], strides = [1, 1]} : vector<16x96xf32> to vector<16x1xf32>
    %686 = vector.extract_strided_slice %37 {offsets = [68, 0], sizes = [1, 16], strides = [1, 1]} : vector<96x16xf32> to vector<1x16xf32>
    %687 = vector.broadcast %685 : vector<16x1xf32> to vector<16x16xf32>
    %688 = vector.broadcast %686 : vector<1x16xf32> to vector<16x16xf32>
    %689 = arith.addf %687, %688 : vector<16x16xf32>
    %690 = arith.truncf %689 : vector<16x16xf32> to vector<16x16xbf16>
    %691 = math.tanh %690 : vector<16x16xbf16>
    %692 = arith.extf %691 : vector<16x16xbf16> to vector<16x16xf32>
    %693 = arith.addf %684, %692 : vector<16x16xf32>
    %694 = vector.extract_strided_slice %33 {offsets = [0, 69], sizes = [16, 1], strides = [1, 1]} : vector<16x96xf32> to vector<16x1xf32>
    %695 = vector.extract_strided_slice %37 {offsets = [69, 0], sizes = [1, 16], strides = [1, 1]} : vector<96x16xf32> to vector<1x16xf32>
    %696 = vector.broadcast %694 : vector<16x1xf32> to vector<16x16xf32>
    %697 = vector.broadcast %695 : vector<1x16xf32> to vector<16x16xf32>
    %698 = arith.addf %696, %697 : vector<16x16xf32>
    %699 = arith.truncf %698 : vector<16x16xf32> to vector<16x16xbf16>
    %700 = math.tanh %699 : vector<16x16xbf16>
    %701 = arith.extf %700 : vector<16x16xbf16> to vector<16x16xf32>
    %702 = arith.addf %693, %701 : vector<16x16xf32>
    %703 = vector.extract_strided_slice %33 {offsets = [0, 70], sizes = [16, 1], strides = [1, 1]} : vector<16x96xf32> to vector<16x1xf32>
    %704 = vector.extract_strided_slice %37 {offsets = [70, 0], sizes = [1, 16], strides = [1, 1]} : vector<96x16xf32> to vector<1x16xf32>
    %705 = vector.broadcast %703 : vector<16x1xf32> to vector<16x16xf32>
    %706 = vector.broadcast %704 : vector<1x16xf32> to vector<16x16xf32>
    %707 = arith.addf %705, %706 : vector<16x16xf32>
    %708 = arith.truncf %707 : vector<16x16xf32> to vector<16x16xbf16>
    %709 = math.tanh %708 : vector<16x16xbf16>
    %710 = arith.extf %709 : vector<16x16xbf16> to vector<16x16xf32>
    %711 = arith.addf %702, %710 : vector<16x16xf32>
    %712 = vector.extract_strided_slice %33 {offsets = [0, 71], sizes = [16, 1], strides = [1, 1]} : vector<16x96xf32> to vector<16x1xf32>
    %713 = vector.extract_strided_slice %37 {offsets = [71, 0], sizes = [1, 16], strides = [1, 1]} : vector<96x16xf32> to vector<1x16xf32>
    %714 = vector.broadcast %712 : vector<16x1xf32> to vector<16x16xf32>
    %715 = vector.broadcast %713 : vector<1x16xf32> to vector<16x16xf32>
    %716 = arith.addf %714, %715 : vector<16x16xf32>
    %717 = arith.truncf %716 : vector<16x16xf32> to vector<16x16xbf16>
    %718 = math.tanh %717 : vector<16x16xbf16>
    %719 = arith.extf %718 : vector<16x16xbf16> to vector<16x16xf32>
    %720 = arith.addf %711, %719 : vector<16x16xf32>
    %cst_40 = arith.constant 2.400000e+01 : f32
    %721 = vector.broadcast %cst_40 : f32 to vector<16x16xf32>
    %722 = arith.subf %720, %721 : vector<16x16xf32>
    %723 = math.exp %722 : vector<16x16xf32>
    %cst_41 = arith.constant dense<0.000000e+00> : vector<16xf32>
    %724 = vector.multi_reduction <add>, %723, %cst_41 [1] : vector<16x16xf32> to vector<16xf32>
    %725 = vector.shape_cast %724 : vector<16xf32> to vector<16x1xf32>
    %726 = tpu.reciprocal %725 {approx = true} : vector<16x1xf32> -> vector<16x1xf32>
    %727 = vector.broadcast %726 : vector<16x1xf32> to vector<16x16xf32>
    %728 = arith.mulf %723, %727 : vector<16x16xf32>
    %729 = vector.extract_strided_slice %40 {offsets = [0, 48], sizes = [16, 24], strides = [1, 1]} : vector<16x96xf32> to vector<16x24xf32>
    %cst_42 = arith.constant dense<0.000000e+00> : vector<16x24xf32>
    %730 = tpu.matmul %728, %729, %cst_42 {dimension_numbers = #tpu.dot_dimension_numbers<[1], [0], [0], [1], [0, 0, 1, 1], [], []>} : vector<16x16xf32>, vector<16x24xf32>, vector<16x24xf32> -> vector<16x24xf32>
    %731 = vector.extract_strided_slice %42 {offsets = [48, 0], sizes = [24, 96], strides = [1, 1]} : vector<96x96xf32> to vector<24x96xf32>
    %cst_43 = arith.constant dense<0.000000e+00> : vector<16x96xf32>
    %732 = tpu.matmul %730, %731, %cst_43 {dimension_numbers = #tpu.dot_dimension_numbers<[1], [0], [0], [1], [0, 0, 1, 1], [], []>} : vector<16x24xf32>, vector<24x96xf32>, vector<16x96xf32> -> vector<16x96xf32>
    %733 = arith.addf %503, %732 : vector<16x96xf32>
    %cst_44 = arith.constant 0.000000e+00 : f32
    %734 = vector.broadcast %cst_44 : f32 to vector<16x16xf32>
    %735 = vector.extract_strided_slice %33 {offsets = [0, 72], sizes = [16, 1], strides = [1, 1]} : vector<16x96xf32> to vector<16x1xf32>
    %736 = vector.extract_strided_slice %37 {offsets = [72, 0], sizes = [1, 16], strides = [1, 1]} : vector<96x16xf32> to vector<1x16xf32>
    %737 = vector.broadcast %735 : vector<16x1xf32> to vector<16x16xf32>
    %738 = vector.broadcast %736 : vector<1x16xf32> to vector<16x16xf32>
    %739 = arith.addf %737, %738 : vector<16x16xf32>
    %740 = arith.truncf %739 : vector<16x16xf32> to vector<16x16xbf16>
    %741 = math.tanh %740 : vector<16x16xbf16>
    %742 = arith.extf %741 : vector<16x16xbf16> to vector<16x16xf32>
    %743 = arith.addf %734, %742 : vector<16x16xf32>
    %744 = vector.extract_strided_slice %33 {offsets = [0, 73], sizes = [16, 1], strides = [1, 1]} : vector<16x96xf32> to vector<16x1xf32>
    %745 = vector.extract_strided_slice %37 {offsets = [73, 0], sizes = [1, 16], strides = [1, 1]} : vector<96x16xf32> to vector<1x16xf32>
    %746 = vector.broadcast %744 : vector<16x1xf32> to vector<16x16xf32>
    %747 = vector.broadcast %745 : vector<1x16xf32> to vector<16x16xf32>
    %748 = arith.addf %746, %747 : vector<16x16xf32>
    %749 = arith.truncf %748 : vector<16x16xf32> to vector<16x16xbf16>
    %750 = math.tanh %749 : vector<16x16xbf16>
    %751 = arith.extf %750 : vector<16x16xbf16> to vector<16x16xf32>
    %752 = arith.addf %743, %751 : vector<16x16xf32>
    %753 = vector.extract_strided_slice %33 {offsets = [0, 74], sizes = [16, 1], strides = [1, 1]} : vector<16x96xf32> to vector<16x1xf32>
    %754 = vector.extract_strided_slice %37 {offsets = [74, 0], sizes = [1, 16], strides = [1, 1]} : vector<96x16xf32> to vector<1x16xf32>
    %755 = vector.broadcast %753 : vector<16x1xf32> to vector<16x16xf32>
    %756 = vector.broadcast %754 : vector<1x16xf32> to vector<16x16xf32>
    %757 = arith.addf %755, %756 : vector<16x16xf32>
    %758 = arith.truncf %757 : vector<16x16xf32> to vector<16x16xbf16>
    %759 = math.tanh %758 : vector<16x16xbf16>
    %760 = arith.extf %759 : vector<16x16xbf16> to vector<16x16xf32>
    %761 = arith.addf %752, %760 : vector<16x16xf32>
    %762 = vector.extract_strided_slice %33 {offsets = [0, 75], sizes = [16, 1], strides = [1, 1]} : vector<16x96xf32> to vector<16x1xf32>
    %763 = vector.extract_strided_slice %37 {offsets = [75, 0], sizes = [1, 16], strides = [1, 1]} : vector<96x16xf32> to vector<1x16xf32>
    %764 = vector.broadcast %762 : vector<16x1xf32> to vector<16x16xf32>
    %765 = vector.broadcast %763 : vector<1x16xf32> to vector<16x16xf32>
    %766 = arith.addf %764, %765 : vector<16x16xf32>
    %767 = arith.truncf %766 : vector<16x16xf32> to vector<16x16xbf16>
    %768 = math.tanh %767 : vector<16x16xbf16>
    %769 = arith.extf %768 : vector<16x16xbf16> to vector<16x16xf32>
    %770 = arith.addf %761, %769 : vector<16x16xf32>
    %771 = vector.extract_strided_slice %33 {offsets = [0, 76], sizes = [16, 1], strides = [1, 1]} : vector<16x96xf32> to vector<16x1xf32>
    %772 = vector.extract_strided_slice %37 {offsets = [76, 0], sizes = [1, 16], strides = [1, 1]} : vector<96x16xf32> to vector<1x16xf32>
    %773 = vector.broadcast %771 : vector<16x1xf32> to vector<16x16xf32>
    %774 = vector.broadcast %772 : vector<1x16xf32> to vector<16x16xf32>
    %775 = arith.addf %773, %774 : vector<16x16xf32>
    %776 = arith.truncf %775 : vector<16x16xf32> to vector<16x16xbf16>
    %777 = math.tanh %776 : vector<16x16xbf16>
    %778 = arith.extf %777 : vector<16x16xbf16> to vector<16x16xf32>
    %779 = arith.addf %770, %778 : vector<16x16xf32>
    %780 = vector.extract_strided_slice %33 {offsets = [0, 77], sizes = [16, 1], strides = [1, 1]} : vector<16x96xf32> to vector<16x1xf32>
    %781 = vector.extract_strided_slice %37 {offsets = [77, 0], sizes = [1, 16], strides = [1, 1]} : vector<96x16xf32> to vector<1x16xf32>
    %782 = vector.broadcast %780 : vector<16x1xf32> to vector<16x16xf32>
    %783 = vector.broadcast %781 : vector<1x16xf32> to vector<16x16xf32>
    %784 = arith.addf %782, %783 : vector<16x16xf32>
    %785 = arith.truncf %784 : vector<16x16xf32> to vector<16x16xbf16>
    %786 = math.tanh %785 : vector<16x16xbf16>
    %787 = arith.extf %786 : vector<16x16xbf16> to vector<16x16xf32>
    %788 = arith.addf %779, %787 : vector<16x16xf32>
    %789 = vector.extract_strided_slice %33 {offsets = [0, 78], sizes = [16, 1], strides = [1, 1]} : vector<16x96xf32> to vector<16x1xf32>
    %790 = vector.extract_strided_slice %37 {offsets = [78, 0], sizes = [1, 16], strides = [1, 1]} : vector<96x16xf32> to vector<1x16xf32>
    %791 = vector.broadcast %789 : vector<16x1xf32> to vector<16x16xf32>
    %792 = vector.broadcast %790 : vector<1x16xf32> to vector<16x16xf32>
    %793 = arith.addf %791, %792 : vector<16x16xf32>
    %794 = arith.truncf %793 : vector<16x16xf32> to vector<16x16xbf16>
    %795 = math.tanh %794 : vector<16x16xbf16>
    %796 = arith.extf %795 : vector<16x16xbf16> to vector<16x16xf32>
    %797 = arith.addf %788, %796 : vector<16x16xf32>
    %798 = vector.extract_strided_slice %33 {offsets = [0, 79], sizes = [16, 1], strides = [1, 1]} : vector<16x96xf32> to vector<16x1xf32>
    %799 = vector.extract_strided_slice %37 {offsets = [79, 0], sizes = [1, 16], strides = [1, 1]} : vector<96x16xf32> to vector<1x16xf32>
    %800 = vector.broadcast %798 : vector<16x1xf32> to vector<16x16xf32>
    %801 = vector.broadcast %799 : vector<1x16xf32> to vector<16x16xf32>
    %802 = arith.addf %800, %801 : vector<16x16xf32>
    %803 = arith.truncf %802 : vector<16x16xf32> to vector<16x16xbf16>
    %804 = math.tanh %803 : vector<16x16xbf16>
    %805 = arith.extf %804 : vector<16x16xbf16> to vector<16x16xf32>
    %806 = arith.addf %797, %805 : vector<16x16xf32>
    %807 = vector.extract_strided_slice %33 {offsets = [0, 80], sizes = [16, 1], strides = [1, 1]} : vector<16x96xf32> to vector<16x1xf32>
    %808 = vector.extract_strided_slice %37 {offsets = [80, 0], sizes = [1, 16], strides = [1, 1]} : vector<96x16xf32> to vector<1x16xf32>
    %809 = vector.broadcast %807 : vector<16x1xf32> to vector<16x16xf32>
    %810 = vector.broadcast %808 : vector<1x16xf32> to vector<16x16xf32>
    %811 = arith.addf %809, %810 : vector<16x16xf32>
    %812 = arith.truncf %811 : vector<16x16xf32> to vector<16x16xbf16>
    %813 = math.tanh %812 : vector<16x16xbf16>
    %814 = arith.extf %813 : vector<16x16xbf16> to vector<16x16xf32>
    %815 = arith.addf %806, %814 : vector<16x16xf32>
    %816 = vector.extract_strided_slice %33 {offsets = [0, 81], sizes = [16, 1], strides = [1, 1]} : vector<16x96xf32> to vector<16x1xf32>
    %817 = vector.extract_strided_slice %37 {offsets = [81, 0], sizes = [1, 16], strides = [1, 1]} : vector<96x16xf32> to vector<1x16xf32>
    %818 = vector.broadcast %816 : vector<16x1xf32> to vector<16x16xf32>
    %819 = vector.broadcast %817 : vector<1x16xf32> to vector<16x16xf32>
    %820 = arith.addf %818, %819 : vector<16x16xf32>
    %821 = arith.truncf %820 : vector<16x16xf32> to vector<16x16xbf16>
    %822 = math.tanh %821 : vector<16x16xbf16>
    %823 = arith.extf %822 : vector<16x16xbf16> to vector<16x16xf32>
    %824 = arith.addf %815, %823 : vector<16x16xf32>
    %825 = vector.extract_strided_slice %33 {offsets = [0, 82], sizes = [16, 1], strides = [1, 1]} : vector<16x96xf32> to vector<16x1xf32>
    %826 = vector.extract_strided_slice %37 {offsets = [82, 0], sizes = [1, 16], strides = [1, 1]} : vector<96x16xf32> to vector<1x16xf32>
    %827 = vector.broadcast %825 : vector<16x1xf32> to vector<16x16xf32>
    %828 = vector.broadcast %826 : vector<1x16xf32> to vector<16x16xf32>
    %829 = arith.addf %827, %828 : vector<16x16xf32>
    %830 = arith.truncf %829 : vector<16x16xf32> to vector<16x16xbf16>
    %831 = math.tanh %830 : vector<16x16xbf16>
    %832 = arith.extf %831 : vector<16x16xbf16> to vector<16x16xf32>
    %833 = arith.addf %824, %832 : vector<16x16xf32>
    %834 = vector.extract_strided_slice %33 {offsets = [0, 83], sizes = [16, 1], strides = [1, 1]} : vector<16x96xf32> to vector<16x1xf32>
    %835 = vector.extract_strided_slice %37 {offsets = [83, 0], sizes = [1, 16], strides = [1, 1]} : vector<96x16xf32> to vector<1x16xf32>
    %836 = vector.broadcast %834 : vector<16x1xf32> to vector<16x16xf32>
    %837 = vector.broadcast %835 : vector<1x16xf32> to vector<16x16xf32>
    %838 = arith.addf %836, %837 : vector<16x16xf32>
    %839 = arith.truncf %838 : vector<16x16xf32> to vector<16x16xbf16>
    %840 = math.tanh %839 : vector<16x16xbf16>
    %841 = arith.extf %840 : vector<16x16xbf16> to vector<16x16xf32>
    %842 = arith.addf %833, %841 : vector<16x16xf32>
    %843 = vector.extract_strided_slice %33 {offsets = [0, 84], sizes = [16, 1], strides = [1, 1]} : vector<16x96xf32> to vector<16x1xf32>
    %844 = vector.extract_strided_slice %37 {offsets = [84, 0], sizes = [1, 16], strides = [1, 1]} : vector<96x16xf32> to vector<1x16xf32>
    %845 = vector.broadcast %843 : vector<16x1xf32> to vector<16x16xf32>
    %846 = vector.broadcast %844 : vector<1x16xf32> to vector<16x16xf32>
    %847 = arith.addf %845, %846 : vector<16x16xf32>
    %848 = arith.truncf %847 : vector<16x16xf32> to vector<16x16xbf16>
    %849 = math.tanh %848 : vector<16x16xbf16>
    %850 = arith.extf %849 : vector<16x16xbf16> to vector<16x16xf32>
    %851 = arith.addf %842, %850 : vector<16x16xf32>
    %852 = vector.extract_strided_slice %33 {offsets = [0, 85], sizes = [16, 1], strides = [1, 1]} : vector<16x96xf32> to vector<16x1xf32>
    %853 = vector.extract_strided_slice %37 {offsets = [85, 0], sizes = [1, 16], strides = [1, 1]} : vector<96x16xf32> to vector<1x16xf32>
    %854 = vector.broadcast %852 : vector<16x1xf32> to vector<16x16xf32>
    %855 = vector.broadcast %853 : vector<1x16xf32> to vector<16x16xf32>
    %856 = arith.addf %854, %855 : vector<16x16xf32>
    %857 = arith.truncf %856 : vector<16x16xf32> to vector<16x16xbf16>
    %858 = math.tanh %857 : vector<16x16xbf16>
    %859 = arith.extf %858 : vector<16x16xbf16> to vector<16x16xf32>
    %860 = arith.addf %851, %859 : vector<16x16xf32>
    %861 = vector.extract_strided_slice %33 {offsets = [0, 86], sizes = [16, 1], strides = [1, 1]} : vector<16x96xf32> to vector<16x1xf32>
    %862 = vector.extract_strided_slice %37 {offsets = [86, 0], sizes = [1, 16], strides = [1, 1]} : vector<96x16xf32> to vector<1x16xf32>
    %863 = vector.broadcast %861 : vector<16x1xf32> to vector<16x16xf32>
    %864 = vector.broadcast %862 : vector<1x16xf32> to vector<16x16xf32>
    %865 = arith.addf %863, %864 : vector<16x16xf32>
    %866 = arith.truncf %865 : vector<16x16xf32> to vector<16x16xbf16>
    %867 = math.tanh %866 : vector<16x16xbf16>
    %868 = arith.extf %867 : vector<16x16xbf16> to vector<16x16xf32>
    %869 = arith.addf %860, %868 : vector<16x16xf32>
    %870 = vector.extract_strided_slice %33 {offsets = [0, 87], sizes = [16, 1], strides = [1, 1]} : vector<16x96xf32> to vector<16x1xf32>
    %871 = vector.extract_strided_slice %37 {offsets = [87, 0], sizes = [1, 16], strides = [1, 1]} : vector<96x16xf32> to vector<1x16xf32>
    %872 = vector.broadcast %870 : vector<16x1xf32> to vector<16x16xf32>
    %873 = vector.broadcast %871 : vector<1x16xf32> to vector<16x16xf32>
    %874 = arith.addf %872, %873 : vector<16x16xf32>
    %875 = arith.truncf %874 : vector<16x16xf32> to vector<16x16xbf16>
    %876 = math.tanh %875 : vector<16x16xbf16>
    %877 = arith.extf %876 : vector<16x16xbf16> to vector<16x16xf32>
    %878 = arith.addf %869, %877 : vector<16x16xf32>
    %879 = vector.extract_strided_slice %33 {offsets = [0, 88], sizes = [16, 1], strides = [1, 1]} : vector<16x96xf32> to vector<16x1xf32>
    %880 = vector.extract_strided_slice %37 {offsets = [88, 0], sizes = [1, 16], strides = [1, 1]} : vector<96x16xf32> to vector<1x16xf32>
    %881 = vector.broadcast %879 : vector<16x1xf32> to vector<16x16xf32>
    %882 = vector.broadcast %880 : vector<1x16xf32> to vector<16x16xf32>
    %883 = arith.addf %881, %882 : vector<16x16xf32>
    %884 = arith.truncf %883 : vector<16x16xf32> to vector<16x16xbf16>
    %885 = math.tanh %884 : vector<16x16xbf16>
    %886 = arith.extf %885 : vector<16x16xbf16> to vector<16x16xf32>
    %887 = arith.addf %878, %886 : vector<16x16xf32>
    %888 = vector.extract_strided_slice %33 {offsets = [0, 89], sizes = [16, 1], strides = [1, 1]} : vector<16x96xf32> to vector<16x1xf32>
    %889 = vector.extract_strided_slice %37 {offsets = [89, 0], sizes = [1, 16], strides = [1, 1]} : vector<96x16xf32> to vector<1x16xf32>
    %890 = vector.broadcast %888 : vector<16x1xf32> to vector<16x16xf32>
    %891 = vector.broadcast %889 : vector<1x16xf32> to vector<16x16xf32>
    %892 = arith.addf %890, %891 : vector<16x16xf32>
    %893 = arith.truncf %892 : vector<16x16xf32> to vector<16x16xbf16>
    %894 = math.tanh %893 : vector<16x16xbf16>
    %895 = arith.extf %894 : vector<16x16xbf16> to vector<16x16xf32>
    %896 = arith.addf %887, %895 : vector<16x16xf32>
    %897 = vector.extract_strided_slice %33 {offsets = [0, 90], sizes = [16, 1], strides = [1, 1]} : vector<16x96xf32> to vector<16x1xf32>
    %898 = vector.extract_strided_slice %37 {offsets = [90, 0], sizes = [1, 16], strides = [1, 1]} : vector<96x16xf32> to vector<1x16xf32>
    %899 = vector.broadcast %897 : vector<16x1xf32> to vector<16x16xf32>
    %900 = vector.broadcast %898 : vector<1x16xf32> to vector<16x16xf32>
    %901 = arith.addf %899, %900 : vector<16x16xf32>
    %902 = arith.truncf %901 : vector<16x16xf32> to vector<16x16xbf16>
    %903 = math.tanh %902 : vector<16x16xbf16>
    %904 = arith.extf %903 : vector<16x16xbf16> to vector<16x16xf32>
    %905 = arith.addf %896, %904 : vector<16x16xf32>
    %906 = vector.extract_strided_slice %33 {offsets = [0, 91], sizes = [16, 1], strides = [1, 1]} : vector<16x96xf32> to vector<16x1xf32>
    %907 = vector.extract_strided_slice %37 {offsets = [91, 0], sizes = [1, 16], strides = [1, 1]} : vector<96x16xf32> to vector<1x16xf32>
    %908 = vector.broadcast %906 : vector<16x1xf32> to vector<16x16xf32>
    %909 = vector.broadcast %907 : vector<1x16xf32> to vector<16x16xf32>
    %910 = arith.addf %908, %909 : vector<16x16xf32>
    %911 = arith.truncf %910 : vector<16x16xf32> to vector<16x16xbf16>
    %912 = math.tanh %911 : vector<16x16xbf16>
    %913 = arith.extf %912 : vector<16x16xbf16> to vector<16x16xf32>
    %914 = arith.addf %905, %913 : vector<16x16xf32>
    %915 = vector.extract_strided_slice %33 {offsets = [0, 92], sizes = [16, 1], strides = [1, 1]} : vector<16x96xf32> to vector<16x1xf32>
    %916 = vector.extract_strided_slice %37 {offsets = [92, 0], sizes = [1, 16], strides = [1, 1]} : vector<96x16xf32> to vector<1x16xf32>
    %917 = vector.broadcast %915 : vector<16x1xf32> to vector<16x16xf32>
    %918 = vector.broadcast %916 : vector<1x16xf32> to vector<16x16xf32>
    %919 = arith.addf %917, %918 : vector<16x16xf32>
    %920 = arith.truncf %919 : vector<16x16xf32> to vector<16x16xbf16>
    %921 = math.tanh %920 : vector<16x16xbf16>
    %922 = arith.extf %921 : vector<16x16xbf16> to vector<16x16xf32>
    %923 = arith.addf %914, %922 : vector<16x16xf32>
    %924 = vector.extract_strided_slice %33 {offsets = [0, 93], sizes = [16, 1], strides = [1, 1]} : vector<16x96xf32> to vector<16x1xf32>
    %925 = vector.extract_strided_slice %37 {offsets = [93, 0], sizes = [1, 16], strides = [1, 1]} : vector<96x16xf32> to vector<1x16xf32>
    %926 = vector.broadcast %924 : vector<16x1xf32> to vector<16x16xf32>
    %927 = vector.broadcast %925 : vector<1x16xf32> to vector<16x16xf32>
    %928 = arith.addf %926, %927 : vector<16x16xf32>
    %929 = arith.truncf %928 : vector<16x16xf32> to vector<16x16xbf16>
    %930 = math.tanh %929 : vector<16x16xbf16>
    %931 = arith.extf %930 : vector<16x16xbf16> to vector<16x16xf32>
    %932 = arith.addf %923, %931 : vector<16x16xf32>
    %933 = vector.extract_strided_slice %33 {offsets = [0, 94], sizes = [16, 1], strides = [1, 1]} : vector<16x96xf32> to vector<16x1xf32>
    %934 = vector.extract_strided_slice %37 {offsets = [94, 0], sizes = [1, 16], strides = [1, 1]} : vector<96x16xf32> to vector<1x16xf32>
    %935 = vector.broadcast %933 : vector<16x1xf32> to vector<16x16xf32>
    %936 = vector.broadcast %934 : vector<1x16xf32> to vector<16x16xf32>
    %937 = arith.addf %935, %936 : vector<16x16xf32>
    %938 = arith.truncf %937 : vector<16x16xf32> to vector<16x16xbf16>
    %939 = math.tanh %938 : vector<16x16xbf16>
    %940 = arith.extf %939 : vector<16x16xbf16> to vector<16x16xf32>
    %941 = arith.addf %932, %940 : vector<16x16xf32>
    %942 = vector.extract_strided_slice %33 {offsets = [0, 95], sizes = [16, 1], strides = [1, 1]} : vector<16x96xf32> to vector<16x1xf32>
    %943 = vector.extract_strided_slice %37 {offsets = [95, 0], sizes = [1, 16], strides = [1, 1]} : vector<96x16xf32> to vector<1x16xf32>
    %944 = vector.broadcast %942 : vector<16x1xf32> to vector<16x16xf32>
    %945 = vector.broadcast %943 : vector<1x16xf32> to vector<16x16xf32>
    %946 = arith.addf %944, %945 : vector<16x16xf32>
    %947 = arith.truncf %946 : vector<16x16xf32> to vector<16x16xbf16>
    %948 = math.tanh %947 : vector<16x16xbf16>
    %949 = arith.extf %948 : vector<16x16xbf16> to vector<16x16xf32>
    %950 = arith.addf %941, %949 : vector<16x16xf32>
    %cst_45 = arith.constant 2.400000e+01 : f32
    %951 = vector.broadcast %cst_45 : f32 to vector<16x16xf32>
    %952 = arith.subf %950, %951 : vector<16x16xf32>
    %953 = math.exp %952 : vector<16x16xf32>
    %cst_46 = arith.constant dense<0.000000e+00> : vector<16xf32>
    %954 = vector.multi_reduction <add>, %953, %cst_46 [1] : vector<16x16xf32> to vector<16xf32>
    %955 = vector.shape_cast %954 : vector<16xf32> to vector<16x1xf32>
    %956 = tpu.reciprocal %955 {approx = true} : vector<16x1xf32> -> vector<16x1xf32>
    %957 = vector.broadcast %956 : vector<16x1xf32> to vector<16x16xf32>
    %958 = arith.mulf %953, %957 : vector<16x16xf32>
    %959 = vector.extract_strided_slice %40 {offsets = [0, 72], sizes = [16, 24], strides = [1, 1]} : vector<16x96xf32> to vector<16x24xf32>
    %cst_47 = arith.constant dense<0.000000e+00> : vector<16x24xf32>
    %960 = tpu.matmul %958, %959, %cst_47 {dimension_numbers = #tpu.dot_dimension_numbers<[1], [0], [0], [1], [0, 0, 1, 1], [], []>} : vector<16x16xf32>, vector<16x24xf32>, vector<16x24xf32> -> vector<16x24xf32>
    %961 = vector.extract_strided_slice %42 {offsets = [72, 0], sizes = [24, 96], strides = [1, 1]} : vector<96x96xf32> to vector<24x96xf32>
    %cst_48 = arith.constant dense<0.000000e+00> : vector<16x96xf32>
    %962 = tpu.matmul %960, %961, %cst_48 {dimension_numbers = #tpu.dot_dimension_numbers<[1], [0], [0], [1], [0, 0, 1, 1], [], []>} : vector<16x24xf32>, vector<24x96xf32>, vector<16x96xf32> -> vector<16x96xf32>
    %963 = arith.addf %733, %962 : vector<16x96xf32>
    %964 = arith.addf %4, %963 : vector<16x96xf32>
    %c0_49 = arith.constant 0 : index
    %c0_50 = arith.constant 0 : index
    %c0_51 = arith.constant 0 : index
    %965 = vector.load %arg9[%c0_49, %c0_50, %c0_51] : memref<1x1x96xf32, #tpu.memory_space<vmem>>, vector<1x1x96xf32>
    %966 = vector.shape_cast %965 : vector<1x1x96xf32> to vector<1x96xf32>
    %967 = vector.broadcast %966 : vector<1x96xf32> to vector<16x96xf32>
    %968 = arith.addf %964, %967 : vector<16x96xf32>
    %c0_52 = arith.constant 0 : index
    %c0_53 = arith.constant 0 : index
    %c0_54 = arith.constant 0 : index
    %969 = vector.load %arg10[%c0_52, %c0_53, %c0_54] : memref<1x1x96xf32, #tpu.memory_space<vmem>>, vector<1x1x96xf32>
    %970 = vector.shape_cast %969 : vector<1x1x96xf32> to vector<1x96xf32>
    %c0_55 = arith.constant 0 : index
    %c0_56 = arith.constant 0 : index
    %c0_57 = arith.constant 0 : index
    %971 = vector.load %arg11[%c0_55, %c0_56, %c0_57] : memref<1x1x96xf32, #tpu.memory_space<vmem>>, vector<1x1x96xf32>
    %972 = vector.shape_cast %971 : vector<1x1x96xf32> to vector<1x96xf32>
    %cst_58 = arith.constant dense<0.000000e+00> : vector<16xf32>
    %973 = vector.multi_reduction <add>, %968, %cst_58 [1] : vector<16x96xf32> to vector<16xf32>
    %974 = vector.shape_cast %973 : vector<16xf32> to vector<16x1xf32>
    %cst_59 = arith.constant 9.600000e+01 : f32
    %975 = vector.broadcast %cst_59 : f32 to vector<16x1xf32>
    %976 = arith.divf %974, %975 : vector<16x1xf32>
    %977 = vector.broadcast %976 : vector<16x1xf32> to vector<16x96xf32>
    %978 = arith.subf %968, %977 : vector<16x96xf32>
    %979 = arith.mulf %978, %978 : vector<16x96xf32>
    %cst_60 = arith.constant dense<0.000000e+00> : vector<16xf32>
    %980 = vector.multi_reduction <add>, %979, %cst_60 [1] : vector<16x96xf32> to vector<16xf32>
    %981 = vector.shape_cast %980 : vector<16xf32> to vector<16x1xf32>
    %cst_61 = arith.constant 9.600000e+01 : f32
    %982 = vector.broadcast %cst_61 : f32 to vector<16x1xf32>
    %983 = arith.divf %981, %982 : vector<16x1xf32>
    %984 = vector.broadcast %976 : vector<16x1xf32> to vector<16x96xf32>
    %985 = arith.subf %968, %984 : vector<16x96xf32>
    %cst_62 = arith.constant 9.99999974E-6 : f32
    %986 = vector.broadcast %cst_62 : f32 to vector<16x1xf32>
    %987 = arith.addf %983, %986 : vector<16x1xf32>
    %988 = math.rsqrt %987 : vector<16x1xf32>
    %989 = vector.broadcast %988 : vector<16x1xf32> to vector<16x96xf32>
    %990 = arith.mulf %985, %989 : vector<16x96xf32>
    %991 = vector.broadcast %970 : vector<1x96xf32> to vector<16x96xf32>
    %992 = arith.mulf %990, %991 : vector<16x96xf32>
    %993 = vector.broadcast %972 : vector<1x96xf32> to vector<16x96xf32>
    %994 = arith.addf %992, %993 : vector<16x96xf32>
    %c0_63 = arith.constant 0 : index
    %c0_64 = arith.constant 0 : index
    %c0_65 = arith.constant 0 : index
    %995 = vector.load %arg12[%c0_63, %c0_64, %c0_65] : memref<1x96x384xf32, #tpu.memory_space<vmem>>, vector<1x96x384xf32>
    %996 = vector.shape_cast %995 : vector<1x96x384xf32> to vector<96x384xf32>
    %cst_66 = arith.constant dense<0.000000e+00> : vector<16x384xf32>
    %997 = tpu.matmul %994, %996, %cst_66 {dimension_numbers = #tpu.dot_dimension_numbers<[1], [0], [0], [1], [0, 0, 1, 1], [], []>} : vector<16x96xf32>, vector<96x384xf32>, vector<16x384xf32> -> vector<16x384xf32>
    %c0_67 = arith.constant 0 : index
    %c0_68 = arith.constant 0 : index
    %c0_69 = arith.constant 0 : index
    %998 = vector.load %arg13[%c0_67, %c0_68, %c0_69] : memref<1x1x384xf32, #tpu.memory_space<vmem>>, vector<1x1x384xf32>
    %999 = vector.shape_cast %998 : vector<1x1x384xf32> to vector<1x384xf32>
    %1000 = vector.broadcast %999 : vector<1x384xf32> to vector<16x384xf32>
    %1001 = arith.addf %997, %1000 : vector<16x384xf32>
    %cst_70 = arith.constant 0.000000e+00 : f32
    %1002 = vector.broadcast %cst_70 : f32 to vector<16x384xf32>
    %1003 = arith.maximumf %1001, %1002 : vector<16x384xf32>
    %c0_71 = arith.constant 0 : index
    %c0_72 = arith.constant 0 : index
    %c0_73 = arith.constant 0 : index
    %1004 = vector.load %arg14[%c0_71, %c0_72, %c0_73] : memref<1x384x96xf32, #tpu.memory_space<vmem>>, vector<1x384x96xf32>
    %1005 = vector.shape_cast %1004 : vector<1x384x96xf32> to vector<384x96xf32>
    %cst_74 = arith.constant dense<0.000000e+00> : vector<16x96xf32>
    %1006 = tpu.matmul %1003, %1005, %cst_74 {dimension_numbers = #tpu.dot_dimension_numbers<[1], [0], [0], [1], [0, 0, 1, 1], [], []>} : vector<16x384xf32>, vector<384x96xf32>, vector<16x96xf32> -> vector<16x96xf32>
    %c0_75 = arith.constant 0 : index
    %c0_76 = arith.constant 0 : index
    %c0_77 = arith.constant 0 : index
    %1007 = vector.load %arg15[%c0_75, %c0_76, %c0_77] : memref<1x1x96xf32, #tpu.memory_space<vmem>>, vector<1x1x96xf32>
    %1008 = vector.shape_cast %1007 : vector<1x1x96xf32> to vector<1x96xf32>
    %1009 = vector.broadcast %1008 : vector<1x96xf32> to vector<16x96xf32>
    %1010 = arith.addf %1006, %1009 : vector<16x96xf32>
    %1011 = arith.addf %968, %1010 : vector<16x96xf32>
    %c0_78 = arith.constant 0 : index
    %c0_79 = arith.constant 0 : index
    %c0_80 = arith.constant 0 : index
    %1012 = vector.load %arg16[%c0_78, %c0_79, %c0_80] : memref<1x16x96xf32, #tpu.memory_space<vmem>>, vector<1x16x96xf32>
    %1013 = vector.shape_cast %1012 : vector<1x16x96xf32> to vector<16x96xf32>
    %1014 = vector.shape_cast %1011 : vector<16x96xf32> to vector<1x16x96xf32>
    tpu.vector_store %arg16[%c0_78, %c0_79, %c0_80], %1014 {strides = array<i32>} : memref<1x16x96xf32, #tpu.memory_space<vmem>>, vector<1x16x96xf32>,
    return
  }
  func.func @transform_0(%arg0: i32, %arg1: i32) -> (i32, i32, i32) {
    %c0_i32 = arith.constant 0 : i32
    %c0_i32_0 = arith.constant 0 : i32
    %c0_i32_1 = arith.constant 0 : i32
    return %arg0, %c0_i32, %c0_i32_0 : i32, i32, i32
  }
  func.func @transform_1(%arg0: i32, %arg1: i32) -> (i32, i32, i32) {
    %c0_i32 = arith.constant 0 : i32
    %c0_i32_0 = arith.constant 0 : i32
    %c0_i32_1 = arith.constant 0 : i32
    return %arg1, %c0_i32, %c0_i32_0 : i32, i32, i32
  }
  func.func @transform_2(%arg0: i32, %arg1: i32) -> (i32, i32, i32) {
    %c0_i32 = arith.constant 0 : i32
    %c0_i32_0 = arith.constant 0 : i32
    %c0_i32_1 = arith.constant 0 : i32
    return %arg1, %c0_i32, %c0_i32_0 : i32, i32, i32
  }
  func.func @transform_3(%arg0: i32, %arg1: i32) -> (i32, i32, i32) {
    %c0_i32 = arith.constant 0 : i32
    %c0_i32_0 = arith.constant 0 : i32
    %c0_i32_1 = arith.constant 0 : i32
    return %arg1, %c0_i32, %c0_i32_0 : i32, i32, i32
  }
  func.func @transform_4(%arg0: i32, %arg1: i32) -> (i32, i32, i32) {
    %c0_i32 = arith.constant 0 : i32
    %c0_i32_0 = arith.constant 0 : i32
    %c0_i32_1 = arith.constant 0 : i32
    return %arg1, %c0_i32, %c0_i32_0 : i32, i32, i32
  }
  func.func @transform_5(%arg0: i32, %arg1: i32) -> (i32, i32, i32) {
    %c0_i32 = arith.constant 0 : i32
    %c0_i32_0 = arith.constant 0 : i32
    %c0_i32_1 = arith.constant 0 : i32
    return %arg1, %c0_i32, %c0_i32_0 : i32, i32, i32
  }
  func.func @transform_6(%arg0: i32, %arg1: i32) -> (i32, i32, i32) {
    %c0_i32 = arith.constant 0 : i32
    %c0_i32_0 = arith.constant 0 : i32
    %c0_i32_1 = arith.constant 0 : i32
    return %arg1, %c0_i32, %c0_i32_0 : i32, i32, i32
  }
  func.func @transform_7(%arg0: i32, %arg1: i32) -> (i32, i32, i32) {
    %c0_i32 = arith.constant 0 : i32
    %c0_i32_0 = arith.constant 0 : i32
    %c0_i32_1 = arith.constant 0 : i32
    return %arg1, %c0_i32, %c0_i32_0 : i32, i32, i32
  }
  func.func @transform_8(%arg0: i32, %arg1: i32) -> (i32, i32, i32) {
    %c0_i32 = arith.constant 0 : i32
    %c0_i32_0 = arith.constant 0 : i32
    %c0_i32_1 = arith.constant 0 : i32
    return %arg1, %c0_i32, %c0_i32_0 : i32, i32, i32
  }
  func.func @transform_9(%arg0: i32, %arg1: i32) -> (i32, i32, i32) {
    %c0_i32 = arith.constant 0 : i32
    %c0_i32_0 = arith.constant 0 : i32
    %c0_i32_1 = arith.constant 0 : i32
    return %arg1, %c0_i32, %c0_i32_0 : i32, i32, i32
  }
  func.func @transform_10(%arg0: i32, %arg1: i32) -> (i32, i32, i32) {
    %c0_i32 = arith.constant 0 : i32
    %c0_i32_0 = arith.constant 0 : i32
    %c0_i32_1 = arith.constant 0 : i32
    return %arg1, %c0_i32, %c0_i32_0 : i32, i32, i32
  }
  func.func @transform_11(%arg0: i32, %arg1: i32) -> (i32, i32, i32) {
    %c0_i32 = arith.constant 0 : i32
    %c0_i32_0 = arith.constant 0 : i32
    %c0_i32_1 = arith.constant 0 : i32
    return %arg1, %c0_i32, %c0_i32_0 : i32, i32, i32
  }
  func.func @transform_12(%arg0: i32, %arg1: i32) -> (i32, i32, i32) {
    %c0_i32 = arith.constant 0 : i32
    %c0_i32_0 = arith.constant 0 : i32
    %c0_i32_1 = arith.constant 0 : i32
    return %arg1, %c0_i32, %c0_i32_0 : i32, i32, i32
  }
  func.func @transform_13(%arg0: i32, %arg1: i32) -> (i32, i32, i32) {
    %c0_i32 = arith.constant 0 : i32
    %c0_i32_0 = arith.constant 0 : i32
    %c0_i32_1 = arith.constant 0 : i32
    return %arg1, %c0_i32, %c0_i32_0 : i32, i32, i32
  }
  func.func @transform_14(%arg0: i32, %arg1: i32) -> (i32, i32, i32) {
    %c0_i32 = arith.constant 0 : i32
    %c0_i32_0 = arith.constant 0 : i32
    %c0_i32_1 = arith.constant 0 : i32
    return %arg0, %c0_i32, %c0_i32_0 : i32, i32, i32
  }
}

</mosaic_0001>

<bundles_post_ra>
// kernel: tpu_custom_call.1
= control target key start
LH: loop header
LB: loop body
LE: loop exit
PB: predicated region body
PF: predicated region fallthrough
CT: control target
= control target key end

     0   :  { %s8285_s0 = inlined_call_operand.hbm [shape: f32[2,16,96], index: 0, kind: input, shape index: {}]   ;;  %s8286_s1 = inlined_call_operand.hbm [shape: f32[4,1,96], index: 1, kind: input, shape index: {}]   ;;  %s8287_s2 = inlined_call_operand.hbm [shape: f32[4,1,96], index: 2, kind: input, shape index: {}]   ;;  %s8288_s3 = inlined_call_operand.vmem [shape: f32[4,96,96], index: 3, kind: input, shape index: {}]   ;;  %s8289_s4 = inlined_call_operand.vmem [shape: f32[4,96,96], index: 4, kind: input, shape index: {}]   ;;  %s8290_s5 = inlined_call_operand.vmem [shape: f32[4,96,96], index: 5, kind: input, shape index: {}]   ;;  %s8291_s6 = inlined_call_operand.vmem [shape: f32[4,96,96], index: 6, kind: input, shape index: {}]   ;;  %s8292_s7 = inlined_call_operand.hbm [shape: f32[4,1,96], index: 7, kind: input, shape index: {}]   ;;  %s8293_s8 = inlined_call_operand.vmem [shape: f32[4,1,96], index: 8, kind: input, shape index: {}]   ;;  %s8294_s9 = inlined_call_operand.vmem [shape: f32[4,1,96], index: 9, kind: input, shape index: {}]   ;;  %s8295_s10 = inlined_call_operand.vmem [shape: f32[4,96,384], index: 10, kind: input, shape index: {}]   ;;  %s8296_s11 = inlined_call_operand.vmem [shape: f32[4,1,384], index: 11, kind: input, shape index: {}]   ;;  %s8297_s12 = inlined_call_operand.vmem [shape: f32[4,384,96], index: 12, kind: input, shape index: {}]   ;;  %s8298_s13 = inlined_call_operand.vmem [shape: f32[4,1,96], index: 13, kind: input, shape index: {}]   ;;  %s8299_s14 = inlined_call_operand.hbm [shape: f32[2,16,96], index: 14, kind: output, shape index: {}]  }
   0x1   :  { %8379 = sst [smem:[#allocation128_spill]] %s8285_s0 }
   0x2   :  { %8380 = sst [smem:[#allocation129_spill]] %s8286_s1 }
   0x3   :  { %8381 = sst [smem:[#allocation130_spill]] %s8287_s2 }
   0x4   :  { %8382 = sst [smem:[#allocation131_spill]] %s8288_s3 }
   0x5   :  { %8383 = sst [smem:[#allocation132_spill]] %s8289_s4 }
   0x6   :  { %8384 = sst [smem:[#allocation133_spill]] %s8290_s5 }
   0x7   :  { %8385 = sst [smem:[#allocation134_spill]] %s8291_s6 }
   0x8   :  { %8386 = sst [smem:[#allocation135_spill]] %s8292_s7 }
   0x9   :  { %8387 = sst [smem:[#allocation136_spill]] %s8293_s8 }
   0xa   :  { %8388 = sst [smem:[#allocation137_spill]] %s8294_s9 }
   0xb   :  { %8389 = sst [smem:[#allocation138_spill]] %s8295_s10 }
   0xc   :  { %8390 = sst [smem:[#allocation139_spill]] %s8296_s11 }
   0xd   :  { %8391 = sst [smem:[#allocation140_spill]] %s8297_s12 }
   0xe   :  { %8392 = sst [smem:[#allocation141_spill]] %s8298_s13 }
   0xf   :  { %8393 = sst [smem:[#allocation142_spill]] %s8299_s14 }
  0x10   :  { %19 = vsyncpa [#allocation3], 0 }
  0x11   :  { %21 = vsyncpa [#allocation3 + $0x1], 0 }
  0x12   :  { %22 = vsyncpa [#allocation6], 0 }
  0x13   :  { %24 = vsyncpa [#allocation6 + $0x1], 0 }
  0x14   :  { %25 = vsyncpa [#allocation9], 0 }
  0x15   :  { %27 = vsyncpa [#allocation9 + $0x1], 0 }
  0x16   :  { %28 = vsyncpa [#allocation4], 0 }
  0x17   :  { %30 = vsyncpa [#allocation4 + $0x1], 0  ;;  %s6289_s29 = smov 0   ;;  %s6291_s30 = smov 0  }
  0x18   :  { %s6293_s15 = smov 0   ;;  %s6295_s16 = smov 0  }
  0x19   :  { %s6297_s17 = smov 0   ;;  %s6299_s18 = smov 0  }
  0x1a   :  { %s6301_s19 = smov 0   ;;  %s6303_s20 = smov 0  }
  0x1b   :  { %s6305_s21 = smov 0   ;;  %s6307_s22 = smov 0  }
  0x1c   :  { %s6309_s23 = smov 0  }
  0x1d LB: > { %8394 = sst [smem:[#allocation15_spill]] %s6071_s15  ;;  %s6345_s24 = sadd.s32 4294967295, %s6103_s23   ;;  %s6103_s23 = sphi %s6309_s23, %s36_s23   ;;  %s6099_s22 = sphi %s6307_s22, %s8738_s22   ;;  %s6095_s21 = sphi %s6305_s21, %s8737_s21   ;;  %s6091_s20 = sphi %s6303_s20, %s8736_s20   ;;  %s6087_s19 = sphi %s6301_s19, %s8735_s19   ;;  %s6083_s18 = sphi %s6299_s18, %s8734_s18   ;;  %s6079_s17 = sphi %s6297_s17, %s8742_s17   ;;  %s6075_s16 = sphi %s6295_s16, %s8741_s16   ;;  %s6071_s15 = sphi %s6293_s15, %s8732_s15   ;;  %s6067_s30 = sphi %s6291_s30, %s8740_s30   ;;  %s6063_s29 = sphi %s6289_s29, %s8739_s29  }
  0x1e   : > { %8395 = sst [smem:[#allocation16_spill]] %s6075_s16  ;;  %s4552_s25 = sadd.s32 4294967294, %s6103_s23  }
  0x1f   : > { %8396 = sst [smem:[#allocation17_spill]] %s6083_s18  ;;  %s45_s26 = sadd.s32 1, %s6095_s21 }
  0x20   : > { %8397 = sst [smem:[#allocation18_spill]] %s6091_s20  ;;  %p6350_p0 = scmp.ge.s32.totalorder %s45_s26, 4 }
  0x21   : > { %8398 = sst [smem:[#allocation19_spill]] %s6095_s21  ;;  %p62_p1 = scmp.ne.s32.totalorder %s6083_s18, %s6079_s17 }
  0x22   : > { %8399 = sst [smem:[#allocation20_spill]] %s6099_s22  ;;  %p63_p2 = scmp.eq.s32.totalorder %s6103_s23, 0 }
  0x23   : > { %8400 = sst [smem:[#allocation21_spill]] %s6103_s23  ;;  %p8302_p3 = scmp.ne.s32.totalorder %s6079_s17, %s6075_s16 }
  0x24   : > { %s8401_s28 = scalar_select %p6350_p0, 1, 0 }
  0x25   : > { %s8744_s26 = smov (%p6350_p0, %s45_s26), 0  ;;  %p6366_p4 = por %p63_p2, %p62_p1 }
  0x26   : > { %8402 = sst [smem:[#allocation22_spill]] %s8744_s26  ;;  %p69_p5 = scmp.eq.s32.totalorder %s6345_s24, 0 }
  0x27   : > { %s78_s14 = ssub.s32 %s6095_s21, %s8744_s26  ;;  %s81_s20 = sadd.s32 1, %s6071_s15 }
  0x28   : > { %p6377_p6 = por %p69_p5, %p8302_p3  ;;  %p79_p7 = scmp.eq.s32.totalorder %s78_s14, 0 }
  0x29   : > { %p88_p8 = scmp.ne.s32.totalorder %s6071_s15, %s6067_s30  ;;  %p94_p9 = scmp.ne.s32.totalorder %s6067_s30, %s6063_s29 }
  0x2a   : > { %s8404_s12 = scalar_select %p6377_p6, 1, 0 }
  0x2b   : > { %s6386_s11 = scalar_select %p79_p7, %s6071_s15, %s81_s20  }
  0x2c   : > { %p6388_p10 = por %p88_p8, %p63_p2  ;;  %p6392_p11 = por %p94_p9, %p69_p5 }
  0x2d   : > { %8405 = sst [smem:[#allocation23_spill]] %s6386_s11  ;;  %p430_p12 = scmp.eq.s32.totalorder %s6345_s24, 7 }
  0x2e   : > { %s8407_s26 = scalar_select %p6392_p11, 1, 0 }
  0x2f   : > { %p436_p13 = scmp.eq.s32.totalorder %s4552_s25, 7  ;;  %p5226_p3 = scmp.lt.s32.totalorder %s6103_s23, 8 }
  0x30   : > { %p6401_p6 = por %p430_p12, %p62_p1  ;;  %p8410_p7 = scmp.ne.s32.totalorder %s6079_s17, %s6075_s16 }
  0x31   : > { %p6414_p8 = pnand %p5226_p3, %p6366_p4  ;;  %s477_s11 = sand.u32 1, %s6103_s23  }
  0x32   : > { %s8408_s14 = scalar_select %p6401_p6, 1, 0 }
  0x33   : > { %p6408_p2 = por %p436_p13, %p8410_p7  ;;  %s6420_s10 = sand.u32 1, %s6071_s15  }
  0x34   : > { %8409 = sst [smem:[#allocation24_spill]] %s8408_s14  ;;  %s6423_s25 = sshll.u32 %s6095_s21, 4 }
  0x35   : > { %s8411_s29 = scalar_select %p6408_p2, 1, 0 }
  0x36   : > { %s8413_s20 = scalar_select %p6414_p8, 1, 0 }
  0x37   : > { %8412 = sst [smem:[#allocation25_spill]] %s8411_s29  ;;  %s480_s6 = scalar_lea.vmem [#allocation5], %s6420_s10 }
  0x38   : > { %s487_s5 = sshll.u32 %s480_s6, 4  ;;  %s8414_s1 = sld [smem:[#allocation129_spill]]  ;;  %s6432_s5 = int_to_ptr.vmem [resolvable:$true] %s487_s5 }
  0x39   : > { %p6436_p1 = pnand %p5226_p3, %p6388_p10  ;;  %s6442_s6 = scalar_lea.sflag [#allocation6], %s477_s11 }
  0x3b   : > { %s8415_s27 = scalar_select %p6436_p1, 1, 0 }
  0x3c   : > { %p6448_p12 = pneg %p6436_p1 }
  0x3e   : > { %s6430_s4 = scalar_lea.hbm %s8414_s1, %s6423_s25  ;;  %s5858_s15 = scalar_lea.hbm %s8414_s1, 64 }
  0x3f   : > { %s5853_s21 = scalar_lea.hbm %s6430_s4, 16  ;;  %p5859_p3 = scmp.lt.u32.totalorder %s6430_s4, %s8414_s1 }
  0x40   : > { %p5854_p9 = scmp.ne.s32.totalorder %s6430_s4, %s5853_s21  ;;  %p5860_p10 = scmp.lt.u32.totalorder %s5858_s15, %s5853_s21 }
  0x41   : > { %p5862_p5 = scmp.lt.u32.totalorder %s5853_s21, %s6430_s4 }
  0x42   : > { %p5856_p13 = pnand %p6448_p12, %p5854_p9  ;;  %p5861_p4 = por %p5860_p10, %p5859_p3 }
  0x44   : > { %p5857_p7 = pneg %p5856_p13  ;;  %p5863_p2 = por %p5862_p5, %p5861_p4 }
  0x46   : > { %p5864_p6 = pnand %p5863_p2, %p5857_p7 }
  0x48   : > { %5867 = shalt.err (!%p5864_p6)
}
  0x49   : > { %s5868_s11 = scalar_lea.vmem %s6432_s5, 16  ;;  %s6105_s13 = smov [#allocation5]  }
  0x4a   : > { %p5869_p9 = scmp.ne.s32.totalorder %s6432_s5, %s5868_s11  ;;  %s5873_s14 = sshll.u32 %s6105_s13, 4  ;;  %s5874_s14 = int_to_ptr.vmem [resolvable:$false] %s5873_s14 }
  0x4b   : > { %s5875_s3 = scalar_lea.vmem %s5874_s14, 32  ;;  %p5876_p8 = scmp.lt.s32.totalorder %s6432_s5, %s5874_s14 }
  0x4c   : > { %p5871_p13 = pnand %p5869_p9, %p6448_p12  ;;  %p5877_p0 = scmp.lt.s32.totalorder %s5875_s3, %s5868_s11 }
  0x4e   : > { %p5872_p11 = pneg %p5871_p13  ;;  %p5878_p3 = por %p5877_p0, %p5876_p8 }
  0x50   : > { %p5879_p10 = pnand %p5878_p3, %p5872_p11 }
  0x52   : > { %5882 = shalt.err (!%p5879_p10)
}
  0x53   : > { %5215 = dma.hbm_to_vmem [thread:$0]  (!%p6436_p1), %s6430_s4, 16, %s6432_s5, %s6442_s6  }
  0x54   : > { %p8417_p6 = scmp.lt.s32.totalorder %s6103_s23, 9  ;;  %p8418_p0 = scmp.ge.s32.totalorder %s6103_s23, 1 }
  0x55   : > { %s48_s21 = sadd.s32 1, %s6099_s22  ;;  %p8420_p2 = scmp.ne.s32.totalorder %s8401_s28, 0 }
  0x56   : > { %p6476_p11 = pnand %p8418_p0, %p8417_p6  ;;  %s456_s29 = sand.u32 1, %s6083_s18  }
  0x57   : > { %s8746_s21 = smov (!%p8420_p2, %s48_s21), %s6099_s22  ;;  %s4616_s11 = sshll.u32 %s6099_s22, 8 }
  0x58   : > { %s8419_s15 = scalar_select %p6476_p11, 1, 0 }
  0x59   : > { %p50_p8 = scmp.ge.s32.totalorder %s8746_s21, 2  ;;  %s4555_s13 = sshll.u32 %s456_s29, 4 }
  0x5a   : > { %s8421_s0 = sld [smem:[#allocation128_spill]]  ;;  %s460_s5 = scalar_lea.vmem [#allocation2], %s4555_s13 }
  0x5b   : > { %s8748_s21 = smov (%p50_p8, %s8746_s21), 0  ;;  %s467_s28 = sshll.u32 %s460_s5, 4  ;;  %s6495_s28 = int_to_ptr.vmem [resolvable:$true] %s467_s28 }
  0x5c   : > { %8422 = sst [smem:[#allocation26_spill]] %s8748_s21  ;;  %s52_s4 = ssub.s32 %s6099_s22, %s8748_s21 }
  0x5d   : > { %p53_p4 = scmp.eq.s32.totalorder %s52_s4, 0  ;;  %s8423_s23 = sadd.s32 1, %s6083_s18 }
  0x5e   : > { %s6502_s8 = scalar_lea.sflag [#allocation3], %s456_s29  ;;  %p8425_p7 = scmp.ne.s32.totalorder %s8413_s20, 0 }
  0x5f   : > { %s6500_s9 = scalar_select %p53_p4, %s6083_s18, %s8423_s23  }
  0x60   : > { %s6489_s1 = scalar_lea.hbm %s8421_s0, %s4616_s11  ;;  %p5885_p9 = pneg %p8425_p7 }
  0x61   : > { %8424 = sst [smem:[#allocation27_spill]] %s6500_s9  ;;  %s5883_s11 = scalar_lea.hbm %s6489_s1, 256 }
  0x62   : > { %p5884_p5 = scmp.ne.s32.totalorder %s6489_s1, %s5883_s11  ;;  %s5888_s13 = scalar_lea.hbm %s8421_s0, 512 }
  0x63   : > { %p5889_p10 = scmp.lt.u32.totalorder %s6489_s1, %s8421_s0  ;;  %p5890_p6 = scmp.lt.u32.totalorder %s5888_s13, %s5883_s11 }
  0x64   : > { %p5886_p13 = pnand %p5885_p9, %p5884_p5  ;;  %p5892_p2 = scmp.lt.u32.totalorder %s5883_s11, %s6489_s1 }
  0x65   : > { %p5891_p0 = por %p5890_p6, %p5889_p10 }
  0x66   : > { %p5887_p3 = pneg %p5886_p13 }
  0x67   : > { %p5893_p8 = por %p5892_p2, %p5891_p0 }
  0x69   : > { %p5894_p4 = pnand %p5893_p8, %p5887_p3 }
  0x6b   : > { %5897 = shalt.err (!%p5894_p4)
}
  0x6c   : > { %s5898_s23 = scalar_lea.vmem %s6495_s28, 256  ;;  %s6106_s29 = smov [#allocation2]  }
  0x6d   : > { %p5899_p5 = scmp.ne.s32.totalorder %s6495_s28, %s5898_s23  ;;  %s5903_s14 = sshll.u32 %s6106_s29, 4  ;;  %s5904_s14 = int_to_ptr.vmem [resolvable:$false] %s5903_s14 }
  0x6e   : > { %s5905_s3 = scalar_lea.vmem %s5904_s14, 512  ;;  %p5906_p1 = scmp.lt.s32.totalorder %s6495_s28, %s5904_s14 }
  0x6f   : > { %p5901_p13 = pnand %p5899_p5, %p5885_p9  ;;  %p5907_p10 = scmp.lt.s32.totalorder %s5905_s3, %s5898_s23 }
  0x71   : > { %p5902_p11 = pneg %p5901_p13  ;;  %p5908_p6 = por %p5907_p10, %p5906_p1 }
  0x73   : > { %p5909_p0 = pnand %p5908_p6, %p5902_p11 }
  0x75   : > { %5912 = shalt.err (!%p5909_p0)
}
  0x76   : > { %s6107_s11 = smov 128   ;;  %s6108_s13 = smov 8  }
  0x77   : > { %5212 = dma.hbm_to_vmem [thread:$0]  (!%p8425_p7), %s6489_s1, 256, %s6495_s28, %s6502_s8, %s6107_s11, %s6107_s11, %s6108_s13  }
  0x78   : > { %s8426_s2 = sld [smem:[#allocation130_spill]]  ;;  %s497_s23 = scalar_lea.vmem [#allocation7], %s6420_s10 }
  0x79   : > { %s504_s14 = sshll.u32 %s497_s23, 4  ;;  %s505_s14 = int_to_ptr.vmem [resolvable:$true] %s504_s14 }
  0x7e   : > { %s6534_s29 = scalar_lea.hbm %s8426_s2, %s6423_s25  ;;  %s5918_s1 = scalar_lea.hbm %s8426_s2, 64 }
  0x7f   : > { %s5913_s3 = scalar_lea.hbm %s6534_s29, 16  ;;  %p5919_p7 = scmp.lt.u32.totalorder %s6534_s29, %s8426_s2 }
  0x80   : > { %p5914_p1 = scmp.ne.s32.totalorder %s6534_s29, %s5913_s3  ;;  %p5920_p3 = scmp.lt.u32.totalorder %s5918_s1, %s5913_s3 }
  0x81   : > { %p5922_p8 = scmp.lt.u32.totalorder %s5913_s3, %s6534_s29 }
  0x82   : > { %p5916_p11 = pnand %p5914_p1, %p6448_p12  ;;  %p5921_p2 = por %p5920_p3, %p5919_p7 }
  0x84   : > { %p5917_p9 = pneg %p5916_p11  ;;  %p5923_p4 = por %p5922_p8, %p5921_p2 }
  0x86   : > { %p5924_p5 = pnand %p5923_p4, %p5917_p9 }
  0x88   : > { %5927 = shalt.err (!%p5924_p5)
}
  0x89   : > { %s5928_s11 = scalar_lea.vmem %s505_s14, 16  ;;  %s6109_s13 = smov [#allocation7]  }
  0x8a   : > { %p5929_p13 = scmp.ne.s32.totalorder %s505_s14, %s5928_s11  ;;  %s5933_s4 = sshll.u32 %s6109_s13, 4  ;;  %s5934_s4 = int_to_ptr.vmem [resolvable:$false] %s5933_s4 }
  0x8b   : > { %s5935_s0 = scalar_lea.vmem %s5934_s4, 32  ;;  %p5936_p0 = scmp.lt.s32.totalorder %s505_s14, %s5934_s4 }
  0x8c   : > { %p5931_p10 = pnand %p5929_p13, %p6448_p12  ;;  %p5937_p1 = scmp.lt.s32.totalorder %s5935_s0, %s5928_s11 }
  0x8e   : > { %p5932_p6 = pneg %p5931_p10  ;;  %p5938_p11 = por %p5937_p1, %p5936_p0 }
  0x90   : > { %p5939_p3 = pnand %p5938_p11, %p5932_p6 }
  0x92   : > { %5942 = shalt.err (!%p5939_p3)
}
  0x93   : > { %p8427_p7 = scmp.ne.s32.totalorder %s8415_s27, 0  ;;  %s8428_s7 = sld [smem:[#allocation135_spill]] }
  0x94   : > { %s546_s20 = scalar_lea.vmem [#allocation8], %s6420_s10  ;;  %s544_s8 = scalar_lea.sflag [#allocation9], %s6420_s10 }
  0x95   : > { %5218 = dma.hbm_to_vmem [thread:$0]  (!%p8427_p7), %s6534_s29, 16, %s505_s14, %s6442_s6  }
  0x96   : > { %s553_s1 = sshll.u32 %s546_s20, 4  ;;  %s554_s1 = int_to_ptr.vmem [resolvable:$true] %s553_s1 }
  0x99   : > { %s6559_s3 = scalar_lea.hbm %s8428_s7, %s6423_s25  ;;  %s5948_s29 = scalar_lea.hbm %s8428_s7, 64 }
  0x9a   : > { %s5943_s28 = scalar_lea.hbm %s6559_s3, 16  ;;  %p5949_p4 = scmp.lt.u32.totalorder %s6559_s3, %s8428_s7 }
  0x9b   : > { %p5944_p9 = scmp.ne.s32.totalorder %s6559_s3, %s5943_s28  ;;  %p5950_p5 = scmp.lt.u32.totalorder %s5948_s29, %s5943_s28 }
  0x9c   : > { %p5952_p10 = scmp.lt.u32.totalorder %s5943_s28, %s6559_s3 }
  0x9d   : > { %p5946_p2 = pnand %p5944_p9, %p6448_p12  ;;  %p5951_p13 = por %p5950_p5, %p5949_p4 }
  0x9f   : > { %p5947_p8 = pneg %p5946_p2  ;;  %p5953_p6 = por %p5952_p10, %p5951_p13 }
  0xa1   : > { %p5954_p0 = pnand %p5953_p6, %p5947_p8 }
  0xa3   : > { %5957 = shalt.err (!%p5954_p0)
}
  0xa4   : > { %s5958_s10 = scalar_lea.vmem %s554_s1, 16  ;;  %s6110_s13 = smov [#allocation8]  }
  0xa5   : > { %p5959_p1 = scmp.ne.s32.totalorder %s554_s1, %s5958_s10  ;;  %s5963_s4 = sshll.u32 %s6110_s13, 4  ;;  %s5964_s4 = int_to_ptr.vmem [resolvable:$false] %s5963_s4 }
  0xa6   : > { %s5965_s0 = scalar_lea.vmem %s5964_s4, 32  ;;  %p5966_p9 = scmp.lt.s32.totalorder %s554_s1, %s5964_s4 }
  0xa7   : > { %p5961_p11 = pnand %p5959_p1, %p6448_p12  ;;  %p5967_p2 = scmp.lt.s32.totalorder %s5965_s0, %s5958_s10 }
  0xa9   : > { %p5962_p3 = pneg %p5961_p11  ;;  %p5968_p7 = por %p5967_p2, %p5966_p9 }
  0xab   : > { %p5969_p4 = pnand %p5968_p7, %p5962_p3 }
  0xad   : > { %5972 = shalt.err (!%p5969_p4)
}
  0xae   : > { %p8429_p5 = scmp.ne.s32.totalorder %s8415_s27, 0  ;;  %p8430_p8 = scmp.ne.s32.totalorder %s8419_s15, 0 }
  0xb0   : > { %5221 = dma.hbm_to_vmem [thread:$0]  (!%p8429_p5), %s6559_s3, 16, %s554_s1, %s544_s8  }
  0xb1   : > { %603 = sbr.rel (%p8430_p8) target bundleno = 3186 (0xc72), region = 76 }
  0xb8   : > { %s6583_s16 = sand.u32 1, %s6079_s17   ;;  %p8431_p12 = scmp.ne.s32.totalorder %s8404_s12, 0 }
  0xb9   : > { %s8318_s5 = sshll.u32 %s6583_s16, 4  ;;  %s606_s23 = scalar_lea.sflag [#allocation3], %s6583_s16 }
  0xba   : > { %s6589_s20 = scalar_lea.vmem [#allocation2], %s8318_s5 }
  0xbb   : > { %6046 = dma.done.wait (%p8431_p12), %s606_s23, 256  }
  0xbc   : > { %6048 = vsyncadd (%p8431_p12), %s606_s23, 4294967040  ;;  %s614_s27 = sand.u32 1, %s6345_s24   ;;  %s6597_s15 = sand.u32 1, %s6067_s30  }
  0xbd   : > { %s615_s3 = scalar_lea.sflag [#allocation6], %s614_s27  ;;  %p8432_p7 = scmp.ne.s32.totalorder %s8407_s26, 0 }
  0xbf   : > { %6050 = dma.done.wait (%p8432_p7), %s615_s3, 32  }
  0xc0   : > { %6052 = vsyncadd (%p8432_p7), %s615_s3, 4294967264  ;;  %s631_s8 = scalar_lea.sflag [#allocation9], %s6597_s15 }
  0xc1   : > { %6054 = dma.done.wait (%p8432_p7), %s631_s8, 16  }
  0xc2   : > { %6056 = vsyncadd (%p8432_p7), %s631_s8, 4294967280  ;;  %p733_p13 = scmp.lt.s32.totalorder %s6087_s19, 3  ;;  %s8435_s3 = sld [smem:[#allocation131_spill]] }
  0xc3   : > { %s8436_s1 = sld [smem:[#allocation132_spill]]  ;;  %s8437_s21 = sld [smem:[#allocation133_spill]] }
  0xc4   : > { %s6613_s24 = scalar_select %p733_p13, %s6087_s19, 3 }
  0xc5   : > { %s8438_s26 = sld [smem:[#allocation134_spill]]  ;;  %s8439_s23 = sld [smem:[#allocation138_spill]] }
  0xc6   : > { %s5195_s11 = smul.u32 96, %s6613_s24  ;;  %s8440_s28 = sld [smem:[#allocation141_spill]] }
  0xc7   : > { %s5196_s0 = smul.u32 288, %s6613_s24  ;;  %s8441_s7 = sld [smem:[#allocation139_spill]] }
  0xc8   : > { %s6628_s8 = scalar_lea.vmem %s8435_s3, %s5195_s11  ;;  %s5197_s3 = smul.u32 3, %s6613_s24 }
  0xc9   : > { %s6633_s5 = scalar_lea.vmem %s8436_s1, %s5195_s11  ;;  %s6638_s6 = scalar_lea.vmem %s8437_s21, %s5195_s11 }
  0xca   : > { %s5198_s25 = smul.u32 384, %s6613_s24  ;;  %p4570_p10 = scmp.ne.s32.totalorder %s6087_s19, 0 }
  0xcb   : > { %s6643_s10 = scalar_lea.vmem %s8438_s26, %s5195_s11  ;;  %s6648_s27 = scalar_lea.vmem %s8439_s23, %s5196_s0  ;;  %v780_v0 = vld [vmem:[%s6589_s20] sm:$0xff] (!%p4570_p10)  ;;  %vm782_vm0 = vcmask (!%p4570_p10), 785408   ;;  %v781_v1 = vld [vmem:[%s6589_s20 + $0x8] sm:$0xff] (!%p4570_p10) }
  0xcc   : > { %s775_s22 = scalar_lea.vmem %s8440_s28, %s6613_s24  ;;  %s8442_s11 = sld [smem:[#allocation140_spill]] }
  0xcd   : > { %s6659_s21 = scalar_lea.vmem %s8441_s7, %s5197_s3  ;;  %s8443_s26 = sshll.u32 %s6583_s16, 4 }
  0xce   : > { %s6668_s4 = scalar_lea.vmem [#allocation10], %s8443_s26  ;;  %779 = sbr.rel (%p4570_p10) target bundleno = 213 (0xd5), region = 96 }
  0xcf   : > { %783 = vst.msk [vmem:[%s6668_s4] sm:$0xff] (!%p4570_p10), %vm782_vm0, %v780_v0  ;;  %784 = vst.msk [vmem:[%s6668_s4 + $0x8] sm:$0xff] (!%p4570_p10), %vm782_vm0, %v781_v1 }
  0xd2   : > { %s6664_s14 = scalar_lea.vmem %s8442_s11, %s5198_s25 }
  0xd5 PF: > { %vm789_vm1 = vcmask 785408   ;;  %v833_v16 = vld [vmem:[%s6628_s8] sm:$0xff]  ;;  %v834_v17 = vld [vmem:[%s6628_s8 + $0x8] sm:$0xff]  ;;  %v835_v22 = vld [vmem:[%s6628_s8 + $0x10] sm:$0xff]  ;;  %v6111_v55 = vmov 24   ;;  %v6112_v56 = vmov 0  }
  0xd6   : > { %v785_v2 = vld [vmem:[%s6668_s4] sm:$0xff]  ;;  %v786_v3 = vld [vmem:[%s6668_s4 + $0x8] sm:$0xff]  ;;  %v4973_v18 = vpack.c.bf16 %v834_v17, %v833_v16  ;;  %5424 = vset.pattern.permute.xlu0 %v6111_v55  ;;  %5420 = vset.pattern.permute.xlu1 %v6112_v56  ;;  %s8444_s9 = scalar_lea.vmem [#allocation5], %s6597_s15  ;;  %s8445_s18 = scalar_lea.vmem [#allocation7], %s6597_s15  ;;  %vm1632_vm2 = vcmask 130048   ;;  %vm2309_vm3 = vcmask 195584  }
  0xd7   : > { %v790_v4 = vsel %vm789_vm1, %v785_v2, 0.0  ;;  %v793_v5 = vsel %vm789_vm1, %v786_v3, 0.0  ;;  %v926_v19 = vld [vmem:[%s6633_s5] sm:$0xff]  ;;  %v927_v20 = vld [vmem:[%s6633_s5 + $0x8] sm:$0xff]  ;;  %v836_v23 = vld [vmem:[%s6628_s8 + $0x18] sm:$0xff]  ;;  %s6186_s19 = smov 104  }
  0xd8   : > { %791 = vadd.xlane.f32.xlu0 %v790_v4  ;;  %v4997_v21 = vpack.c.bf16 %v927_v20, %v926_v19  ;;  %4974 = vmatprep.subr.bf16.mxu0 %v4973_v18  ;;  %v4977_v24 = vpack.c.bf16 %v836_v23, %v835_v22  ;;  %v928_v25 = vld [vmem:[%s6633_s5 + $0x10] sm:$0xff]  ;;  %v929_v26 = vld [vmem:[%s6633_s5 + $0x18] sm:$0xff]  ;;  %v837_v28 = vld [vmem:[%s6628_s8 + $0x20] sm:$0xff]  ;;  %s6209_s20 = smov 56   ;;  %s8716_s25 = scalar_lea.vmem [#allocation8], %s6597_s15 }
  0xd9   : > { %4976 = vmatpush3.bf16.msra.mxu0 %v4973_v18  ;;  %v5001_v27 = vpack.c.bf16 %v929_v26, %v928_v25  ;;  %v838_v29 = vld [vmem:[%s6628_s8 + $0x28] sm:$0xff]  ;;  %v930_v31 = vld [vmem:[%s6633_s5 + $0x20] sm:$0xff]  ;;  %v839_v34 = vld [vmem:[%s6628_s8 + $0x30] sm:$0xff]  ;;  %s8719_s23 = sld [smem:[#allocation137_spill]]  ;;  %s8721_s3 = sld [smem:[#allocation18_spill]] }
  0xda   : > { %4998 = vmatprep.subr.bf16.mxu1 %v4997_v21  ;;  %4978 = vmatprep.subr.bf16.mxu0 %v4977_v24  ;;  %v4981_v30 = vpack.c.bf16 %v838_v29, %v837_v28  ;;  %v931_v32 = vld [vmem:[%s6633_s5 + $0x28] sm:$0xff]  ;;  %v840_v35 = vld [vmem:[%s6628_s8 + $0x38] sm:$0xff]  ;;  %v932_v36 = vld [vmem:[%s6633_s5 + $0x30] sm:$0xff]  ;;  %v6113_v28 = vmov 26   ;;  %v6114_v29 = vmov 1   ;;  %s8723_s2 = sld [smem:[#allocation24_spill]] }
  0xdb   : > { %5000 = vmatpush3.bf16.msra.mxu1 %v4997_v21  ;;  %v5005_v33 = vpack.c.bf16 %v931_v32, %v930_v31  ;;  %v4985_v37 = vpack.c.bf16 %v840_v35, %v839_v34  ;;  %v933_v38 = vld [vmem:[%s6633_s5 + $0x38] sm:$0xff]  ;;  %v841_v39 = vld [vmem:[%s6628_s8 + $0x40] sm:$0xff]  ;;  %v842_v40 = vld [vmem:[%s6628_s8 + $0x48] sm:$0xff]  ;;  %v6116_v31 = vmov 2   ;;  %v6117_v32 = vmov 29   ;;  %s8724_s29 = sld [smem:[#allocation142_spill]] }
  0xdc   : > { %794 = vadd.xlane.f32.xlu0 %v793_v5  ;;  %5002 = vmatprep.subr.bf16.mxu1 %v5001_v27  ;;  %v5009_v41 = vpack.c.bf16 %v933_v38, %v932_v36  ;;  %v4989_v42 = vpack.c.bf16 %v842_v40, %v841_v39  ;;  %v934_v43 = vld [vmem:[%s6633_s5 + $0x40] sm:$0xff]  ;;  %v935_v44 = vld [vmem:[%s6633_s5 + $0x48] sm:$0xff]  ;;  %v843_v46 = vld [vmem:[%s6628_s8 + $0x50] sm:$0xff]  ;;  %v6119_v34 = vmov 9   ;;  %v6120_v35 = vmov 25   ;;  %s4286_s26 = scalar_lea.sflag [#allocation4], %s6583_s16 }
  0xdd   : > { %4980 = vmatpush3.bf16.msra.mxu0 %v4977_v24  ;;  %v5013_v45 = vpack.c.bf16 %v935_v44, %v934_v43  ;;  %v844_v47 = vld [vmem:[%s6628_s8 + $0x58] sm:$0xff]  ;;  %v936_v49 = vld [vmem:[%s6633_s5 + $0x50] sm:$0xff]  ;;  %v1045_v52 = vld [vmem:[%s6638_s6] sm:$0xff]  ;;  %v6121_v38 = vmov 32   ;;  %v6122_v39 = vmov 4   ;;  %v6124_v43 = vmov 5  }
  0xde   : > { %4982 = vmatprep.subr.bf16.mxu0 %v4981_v30  ;;  %v4993_v48 = vpack.c.bf16 %v844_v47, %v843_v46  ;;  %v937_v50 = vld [vmem:[%s6633_s5 + $0x58] sm:$0xff]  ;;  %v1046_v53 = vld [vmem:[%s6638_s6 + $0x8] sm:$0xff]  ;;  %v4571_v0 = vld [vmem:[%s8444_s9] ss:$0 sm:$0xff]  ;;  %v6125_v44 = vmov 35   ;;  %v6127_v46 = vmov 14  }
  0xdf   : > { %5004 = vmatpush3.bf16.msra.mxu1 %v5001_v27  ;;  %v5017_v51 = vpack.c.bf16 %v937_v50, %v936_v49  ;;  %v5021_v54 = vpack.c.bf16 %v1046_v53, %v1045_v52  ;;  %v1052_v16 = vld [vmem:[%s6638_s6 + $0x38] sm:$0xff]  ;;  %v1053_v18 = vld [vmem:[%s6638_s6 + $0x40] sm:$0xff]  ;;  %v1054_v19 = vld [vmem:[%s6638_s6 + $0x48] sm:$0xff]  ;;  %v6128_v47 = vmov 28   ;;  %v6130_v49 = vmov 7   ;;  %s6208_s5 = smov 80  }
  0xe0   : > { %5006 = vmatprep.subr.bf16.mxu1 %v5005_v33  ;;  %v5037_v20 = vpack.c.bf16 %v1054_v19, %v1053_v18  ;;  %v1055_v21 = vld [vmem:[%s6638_s6 + $0x50] sm:$0xff]  ;;  %v1056_v22 = vld [vmem:[%s6638_s6 + $0x58] sm:$0xff]  ;;  %v6131_v50 = vmov 15   ;;  %v6133_v52 = vmov 16   ;;  %v6134_v53 = vmov 30   ;;  %s8717_s8 = sld [smem:[#allocation136_spill]] }
  0xe1   : > { %4984 = vmatpush3.bf16.msra.mxu0 %v4981_v30  ;;  %v5041_v23 = vpack.c.bf16 %v1056_v22, %v1055_v21  ;;  %v6115_v30 = vmov 6   ;;  %v8322_v18 = vmov 79   ;;  %v6162_v19 = vmov 23   ;;  %s4617_s7 = sshll.u32 %s8721_s3, 8  ;;  %s8725_s11 = smov %s8724_s29 }
  0xe2   : > { %4986 = vmatprep.subr.bf16.mxu0 %v4985_v37  ;;  %v6163_v21 = vmov 45   ;;  %p8726_p0 = scmp.ne.s32.totalorder %s8723_s2, 0 }
  0xe3   : > { %5008 = vmatpush3.bf16.msra.mxu1 %v5005_v33  ;;  %v6118_v33 = vmov 3  }
  0xe4   : > { %5010 = vmatprep.subr.bf16.mxu1 %v5009_v41 }
  0xe5   : > { %4988 = vmatpush3.bf16.msra.mxu0 %v4985_v37 }
  0xe6   : > { %4990 = vmatprep.subr.bf16.mxu0 %v4989_v42 }
  0xe7   : > { %5012 = vmatpush3.bf16.msra.mxu1 %v5009_v41 }
  0xe8   : > { %5014 = vmatprep.subr.bf16.mxu1 %v5013_v45 }
  0xe9   : > { %4992 = vmatpush3.bf16.msra.mxu0 %v4989_v42  ;;  %v6123_v42 = vmov 12  }
  0xea   : > { %4994 = vmatprep.subr.bf16.mxu0 %v4993_v48 }
  0xeb   : > { %5016 = vmatpush3.bf16.msra.mxu1 %v5013_v45  ;;  %v6126_v45 = vmov 27  }
  0xec   : > { %5018 = vmatprep.subr.bf16.mxu1 %v5017_v51 }
  0xed   : > { %4996 = vmatpush3.bf16.msra.mxu0 %v4993_v48  ;;  %v6129_v48 = vmov 36  }
  0xee   : > { %5022 = vmatprep.subr.bf16.mxu0 %v5021_v54 }
  0xef   : > { %5020 = vmatpush3.bf16.msra.mxu1 %v5017_v51  ;;  %v6132_v51 = vmov 8  }
 0x165   : > { %v792_v6 = vpop.xlane.xlu0 %791 }
 0x166   : > { %v797_v7 = vmul.f32 0.010416667, %v792_v6 }
 0x168   : > { %v6679_v8 = vsub.f32 %v785_v2, %v797_v7  ;;  %v4572_v2 = vld [vmem:[%s8445_s18] ss:$0 sm:$0xff]  ;;  %v1047_v7 = vld [vmem:[%s6638_s6 + $0x10] sm:$0xff]  ;;  %s6211_s18 = smov [#allocation10]  }
 0x169   : > { %v795_v9 = vpop.xlane.xlu0 %794 }
 0x16a   : > { %v798_v10 = vmul.f32 0.010416667, %v795_v9  ;;  %v801_v11 = vmul.f32 %v6679_v8, %v6679_v8  ;;  %v1048_v9 = vld [vmem:[%s6638_s6 + $0x18] sm:$0xff] }
 0x16c   : > { %v6683_v12 = vsub.f32 %v786_v3, %v798_v10  ;;  %v803_v13 = vsel %vm789_vm1, %v801_v11, 0.0 }
 0x16d   : > { %804 = vadd.xlane.f32.xlu1 %v803_v13  ;;  %v1049_v13 = vld [vmem:[%s6638_s6 + $0x20] sm:$0xff] }
 0x16e   : > { %v802_v14 = vmul.f32 %v6683_v12, %v6683_v12 }
 0x170   : > { %v806_v15 = vsel %vm789_vm1, %v802_v14, 0.0  ;;  %v1050_v14 = vld [vmem:[%s6638_s6 + $0x28] sm:$0xff] }
 0x171   : > { %807 = vadd.xlane.f32.xlu1 %v806_v15  ;;  %v1051_v15 = vld [vmem:[%s6638_s6 + $0x30] sm:$0xff]  ;;  %s8718_s6 = scalar_lea.vmem %s8717_s8, %s6613_s24 }
 0x172   : > { %v5033_v17 = vpack.c.bf16 %v1052_v16, %v1051_v15  ;;  %v6158_v15 = vmov 43   ;;  %v8323_v16 = vmov 58  }
 0x1fa   : > { %v805_v57 = vpop.xlane.xlu1 %804 }
 0x1fb   : > { %v809_v58 = vmul.f32 0.010416667, %v805_v57  ;;  %v6136_v57 = vmov 31  }
 0x1fd   : > { %v811_v59 = vadd.f32 1e-05, %v809_v58  ;;  %v6137_v58 = vmov 17  }
 0x1fe   : > { %v808_v60 = vpop.xlane.xlu1 %807 }
 0x1ff   : > { %5619 = vrsqrt.f32 %v811_v59  ;;  %v810_v61 = vmul.f32 0.010416667, %v808_v60  ;;  %v6138_v59 = vmov 10   ;;  %v6139_v60 = vmov 39  }
 0x201   : > { %v812_v62 = vadd.f32 1e-05, %v810_v61  ;;  %v6140_v61 = vmov 11  }
 0x203   : > { %5621 = vrsqrt.f32 %v812_v62  ;;  %v6141_v62 = vmov 18  }
 0x209   : > { %v5620_v63 = vpop.eup %5619 }
 0x20a   : > { %v815_v1 = vmul.f32 %v5620_v63, %v6679_v8  ;;  %v5025_v8 = vpack.c.bf16 %v1048_v9, %v1047_v7  ;;  %v6142_v63 = vmov 33   ;;  %v6150_v7 = vmov 40  }
 0x20b   : > { %v8329_v9 = vmov 52  }
 0x20c   : > { %v823_v3 = vmul.f32 %v4571_v0, %v815_v1  ;;  %v6144_v1 = vmov 34  }
 0x20d   : > { %v5622_v4 = vpop.eup %5621 }
 0x20e   : > { %v816_v5 = vmul.f32 %v5622_v4, %v6683_v12  ;;  %v831_v6 = vadd.f32 %v4572_v2, %v823_v3  ;;  %v5029_v12 = vpack.c.bf16 %v1050_v14, %v1049_v13  ;;  %v6146_v3 = vmov 13  }
 0x20f   : > { %v6147_v4 = vmov 44   ;;  %v8325_v13 = vmov 55   ;;  %v6156_v14 = vmov 42  }
 0x210   : > { %v824_v10 = vmul.f32 %v4571_v0, %v816_v5  ;;  %4790 = vmatprep.mubr.msk.f32.mxu0 %vm789_vm1, %v831_v6  ;;  %4817 = vmatprep.mubr.msk.f32.mxu1 %vm789_vm1, %v831_v6  ;;  %v6143_v0 = vmov 41   ;;  %v6148_v5 = vmov 37  }
 0x212   : > { %v832_v11 = vadd.f32 %v4572_v2, %v824_v10  ;;  %v6145_v2 = vmov 21   ;;  %v6152_v10 = vmov 19  }
 0x214   : > { %4791 = vmatmul.mubr.msk.f32.vlgmr.msra.gmra.mrb[0].mxu0 %vm789_vm1, %v832_v11  ;;  %4818 = vmatmul.mubr.msk.f32.vlgmr.msra.gmra.mrb[0].mxu1 %vm789_vm1, %v832_v11 }
 0x215   : > { %5024 = vmatpush3.bf16.msra.mxu0 %v5021_v54  ;;  %4844 = vmatprep.mubr.msk.f32.mxu0 %vm789_vm1, %v831_v6  ;;  %v6135_v54 = vmov 38   ;;  %v6149_v6 = vmov 46  }
 0x216   : > { %5026 = vmatprep.subr.bf16.mxu0 %v5025_v8 }
 0x219   : > { %5028 = vmatpush3.bf16.msra.mxu0 %v5025_v8  ;;  %v6154_v8 = vmov 20  }
 0x21a   : > { %5030 = vmatprep.subr.bf16.mxu0 %v5029_v12 }
 0x21d   : > { %5032 = vmatpush3.bf16.msra.mxu0 %v5029_v12  ;;  %v8324_v12 = vmov 76  }
 0x21e   : > { %5034 = vmatprep.subr.bf16.mxu0 %v5033_v17 }
 0x221   : > { %5036 = vmatpush3.bf16.msra.mxu0 %v5033_v17  ;;  %v6160_v17 = vmov 22  }
 0x222   : > { %5038 = vmatprep.subr.bf16.mxu0 %v5037_v20 }
 0x225   : > { %5040 = vmatpush3.bf16.msra.mxu0 %v5037_v20 }
 0x226   : > { %5042 = vmatprep.subr.bf16.mxu0 %v5041_v23 }
 0x229   : > { %5044 = vmatpush3.bf16.msra.mxu0 %v5041_v23  ;;  %v6164_v23 = vmov 47  }
 0x22c   : > { %4845 = vmatmul.mubr.msk.f32.vlgmr.msra.gmra.mrb[2].mxu0 %vm789_vm1, %v832_v11  ;;  %v8326_v11 = vmov 73  }
 0x2e7   : > { %v6739_v24 = vpop.f32.mrb[0].mxu0  ;;  %v6741_v25 = vpop.f32.mrb[0].mxu1 }
 0x2e8   : > { %8446 = vst [vmem:[#allocation28_spill] sm:$0xff] %v6739_v24  ;;  %v6743_v26 = vpop.f32.mrb[1].mxu1  ;;  %1729 = vperm.xlu0 %5424, %v6739_v24   ;;  %1151 = vperm.xlu1 %5420, %v6739_v24   ;;  %v6747_v27 = vpop.f32.mrb[1].mxu0 }
 0x2e9   : > { %8447 = vst [vmem:[#allocation29_spill] sm:$0xff] %v6747_v27 }
 0x2ec   : > { %5427 = vset.pattern.permute.xlu0 %v6113_v28  ;;  %5421 = vset.pattern.permute.xlu1 %v6114_v29 }
 0x2ed   : > { %1769 = vperm.xlu0 %5427, %v6739_v24   ;;  %1171 = vperm.xlu1 %5421, %v6739_v24  }
 0x2f1   : > { %5430 = vset.pattern.permute.xlu0 %v6115_v30  ;;  %5422 = vset.pattern.permute.xlu1 %v6116_v31 }
 0x2f2   : > { %1271 = vperm.xlu0 %5430, %v6739_v24   ;;  %1191 = vperm.xlu1 %5422, %v6739_v24  }
 0x2f6   : > { %5433 = vset.pattern.permute.xlu0 %v6117_v32  ;;  %5423 = vset.pattern.permute.xlu1 %v6118_v33 }
 0x2f7   : > { %1829 = vperm.xlu0 %5433, %v6739_v24   ;;  %1211 = vperm.xlu1 %5423, %v6739_v24  }
 0x2fb   : > { %5436 = vset.pattern.permute.xlu0 %v6119_v34  ;;  %5425 = vset.pattern.permute.xlu1 %v6120_v35 }
 0x2fc   : > { %1331 = vperm.xlu0 %5436, %v6739_v24   ;;  %1749 = vperm.xlu1 %5425, %v6739_v24  }
 0x2ff   : > { %v4846_v36 = vpop.f32.mrb[2].mxu0 }
 0x300   : > { %v1123_v37 = vpop.f32.mrb[3].mxu0  ;;  %5439 = vset.pattern.permute.xlu0 %v6121_v38  ;;  %5426 = vset.pattern.permute.xlu1 %v6122_v39 }
 0x301   : > { %v6767_v40 = vpack.i.bf16 %v4846_v36, %v1123_v37  ;;  %1889 = vperm.xlu0 %5439, %v6739_v24   ;;  %1231 = vperm.xlu1 %5426, %v6739_v24   ;;  %v5045_v41 = vpack.c.bf16 %v4846_v36, %v1123_v37 }
 0x303   : > { %8448 = vst [vmem:[#allocation30_spill] sm:$0xff] %v6767_v40  ;;  %5046 = vmatprep.subr.bf16.mxu1 %v5045_v41 }
 0x304   : > { %5048 = vmatpush3.bf16.msra.mxu1 %v5045_v41 }
 0x305   : > { %5442 = vset.pattern.permute.xlu0 %v6123_v42  ;;  %5428 = vset.pattern.permute.xlu1 %v6124_v43 }
 0x306   : > { %1391 = vperm.xlu0 %5442, %v6739_v24   ;;  %1251 = vperm.xlu1 %5428, %v6739_v24  }
 0x30a   : > { %5445 = vset.pattern.permute.xlu0 %v6125_v44  ;;  %5429 = vset.pattern.permute.xlu1 %v6126_v45 }
 0x30b   : > { %1949 = vperm.xlu0 %5445, %v6739_v24   ;;  %1789 = vperm.xlu1 %5429, %v6739_v24  }
 0x30f   : > { %5446 = vset.pattern.permute.xlu0 %v6127_v46  ;;  %5431 = vset.pattern.permute.xlu1 %v6128_v47 }
 0x310   : > { %1431 = vperm.xlu0 %5446, %v6739_v24   ;;  %1809 = vperm.xlu1 %5431, %v6739_v24  }
 0x314   : > { %5447 = vset.pattern.permute.xlu0 %v6129_v48  ;;  %5432 = vset.pattern.permute.xlu1 %v6130_v49 }
 0x315   : > { %1969 = vperm.xlu0 %5447, %v6739_v24   ;;  %1291 = vperm.xlu1 %5432, %v6739_v24  }
 0x319   : > { %5448 = vset.pattern.permute.xlu0 %v6131_v50  ;;  %5434 = vset.pattern.permute.xlu1 %v6132_v51 }
 0x31a   : > { %1451 = vperm.xlu0 %5448, %v6739_v24   ;;  %1311 = vperm.xlu1 %5434, %v6739_v24  }
 0x31e   : > { %5450 = vset.pattern.permute.xlu0 %v6133_v52  ;;  %5435 = vset.pattern.permute.xlu1 %v6134_v53 }
 0x31f   : > { %1471 = vperm.xlu0 %5450, %v6739_v24   ;;  %1849 = vperm.xlu1 %5435, %v6739_v24  }
 0x323   : > { %5451 = vset.pattern.permute.xlu0 %v6135_v54  ;;  %5437 = vset.pattern.permute.xlu1 %v6136_v57 }
 0x324   : > { %2009 = vperm.xlu0 %5451, %v6739_v24   ;;  %1869 = vperm.xlu1 %5437, %v6739_v24  }
 0x328   : > { %5452 = vset.pattern.permute.xlu0 %v6137_v58  ;;  %5438 = vset.pattern.permute.xlu1 %v6138_v59 }
 0x329   : > { %1491 = vperm.xlu0 %5452, %v6739_v24   ;;  %1351 = vperm.xlu1 %5438, %v6739_v24  }
 0x32d   : > { %5453 = vset.pattern.permute.xlu0 %v6139_v60  ;;  %5440 = vset.pattern.permute.xlu1 %v6140_v61 }
 0x32e   : > { %2029 = vperm.xlu0 %5453, %v6739_v24   ;;  %1371 = vperm.xlu1 %5440, %v6739_v24  }
 0x332   : > { %5454 = vset.pattern.permute.xlu0 %v6141_v62  ;;  %5441 = vset.pattern.permute.xlu1 %v6142_v63 }
 0x333   : > { %1511 = vperm.xlu0 %5454, %v6739_v24   ;;  %1909 = vperm.xlu1 %5441, %v6739_v24  }
 0x337   : > { %5457 = vset.pattern.permute.xlu0 %v6143_v0  ;;  %5443 = vset.pattern.permute.xlu1 %v6144_v1 }
 0x338   : > { %2069 = vperm.xlu0 %5457, %v6739_v24   ;;  %1929 = vperm.xlu1 %5443, %v6739_v24  }
 0x33c   : > { %5460 = vset.pattern.permute.xlu0 %v6145_v2  ;;  %5444 = vset.pattern.permute.xlu1 %v6146_v3 }
 0x33d   : > { %1571 = vperm.xlu0 %5460, %v6739_v24   ;;  %1411 = vperm.xlu1 %5444, %v6739_v24  }
 0x341   : > { %5463 = vset.pattern.permute.xlu0 %v6147_v4  ;;  %5449 = vset.pattern.permute.xlu1 %v6148_v5 }
 0x342   : > { %2129 = vperm.xlu0 %5463, %v6739_v24   ;;  %1989 = vperm.xlu1 %5449, %v6739_v24  }
 0x346   : > { %5466 = vset.pattern.permute.xlu0 %v6149_v6  ;;  %5455 = vset.pattern.permute.xlu1 %v6150_v7 }
 0x347   : > { %2169 = vperm.xlu0 %5466, %v6739_v24   ;;  %2049 = vperm.xlu1 %5455, %v6739_v24  }
 0x34b   : > { %5472 = vset.pattern.permute.xlu0 %v8329_v9  ;;  %5456 = vset.pattern.permute.xlu1 %v6152_v10 }
 0x34c   : > { %2557 = vperm.xlu0 %5472, %v6739_v24   ;;  %1531 = vperm.xlu1 %5456, %v6739_v24  }
 0x350   : > { %5475 = vset.pattern.permute.xlu0 %v8326_v11  ;;  %5458 = vset.pattern.permute.xlu1 %v6154_v8 }
 0x351   : > { %3163 = vperm.xlu0 %5475, %v6739_v24   ;;  %1551 = vperm.xlu1 %5458, %v6739_v24  }
 0x355   : > { %5478 = vset.pattern.permute.xlu0 %v8325_v13  ;;  %5459 = vset.pattern.permute.xlu1 %v6156_v14 }
 0x356   : > { %2617 = vperm.xlu0 %5478, %v6739_v24   ;;  %2089 = vperm.xlu1 %5459, %v6739_v24  }
 0x35a   : > { %5481 = vset.pattern.permute.xlu0 %v8324_v12  ;;  %5461 = vset.pattern.permute.xlu1 %v6158_v15 }
 0x35b   : > { %3223 = vperm.xlu0 %5481, %v6739_v24   ;;  %2109 = vperm.xlu1 %5461, %v6739_v24  }
 0x35f   : > { %5484 = vset.pattern.permute.xlu0 %v8323_v16  ;;  %5462 = vset.pattern.permute.xlu1 %v6160_v17 }
 0x360   : > { %2677 = vperm.xlu0 %5484, %v6739_v24   ;;  %1591 = vperm.xlu1 %5462, %v6739_v24  }
 0x364   : > { %5487 = vset.pattern.permute.xlu0 %v8322_v18  ;;  %5464 = vset.pattern.permute.xlu1 %v6162_v19 }
 0x365   : > { %3283 = vperm.xlu0 %5487, %v6739_v24   ;;  %1611 = vperm.xlu1 %5464, %v6739_v24  }
 0x367   : > { %v6851_v20 = vpop.permute.xlu1 %1151 }
 0x369   : > { %5490 = vset.pattern.permute.xlu0 %v6112_v56  ;;  %5465 = vset.pattern.permute.xlu1 %v6163_v21  ;;  %v6165_v56 = vmov 48  }
 0x36a   : > { %1146 = vperm.xlu0 %5490, %v6747_v27   ;;  %2149 = vperm.xlu1 %5465, %v6739_v24  }
 0x36c   : > { %v6857_v22 = vpop.permute.xlu1 %1171 }
 0x36e   : > { %5496 = vset.pattern.permute.xlu0 %v6122_v39  ;;  %5467 = vset.pattern.permute.xlu1 %v6164_v23  ;;  %v8335_v39 = vmov 49  }
 0x36f   : > { %1227 = vperm.xlu0 %5496, %v6747_v27   ;;  %2189 = vperm.xlu1 %5467, %v6739_v24  }
 0x371   : > { %v6863_v36 = vpop.permute.xlu1 %1191 }
 0x373   : > { %5499 = vset.pattern.permute.xlu0 %v6126_v45  ;;  %5468 = vset.pattern.permute.xlu1 %v6165_v56  ;;  %v8333_v45 = vmov 50  }
 0x374   : > { %1785 = vperm.xlu0 %5499, %v6747_v27   ;;  %2477 = vperm.xlu1 %5468, %v6739_v24  }
 0x376   : > { %v6869_v37 = vpop.permute.xlu1 %1211 }
 0x378   : > { %5502 = vset.pattern.permute.xlu0 %v6130_v49  ;;  %5469 = vset.pattern.permute.xlu1 %v8335_v39  ;;  %v8331_v49 = vmov 51  }
 0x379   : > { %1287 = vperm.xlu0 %5502, %v6747_v27   ;;  %2497 = vperm.xlu1 %5469, %v6739_v24  }
 0x37b   : > { %v6875_v41 = vpop.permute.xlu1 %1749 }
 0x37c   : > { %8449 = vst [vmem:[#allocation31_spill] sm:$0xff] %v6875_v41 }
 0x37d   : > { %5505 = vset.pattern.permute.xlu0 %v6134_v53  ;;  %5470 = vset.pattern.permute.xlu1 %v8333_v45  ;;  %v8327_v53 = vmov 53  }
 0x37e   : > { %1845 = vperm.xlu0 %5505, %v6747_v27   ;;  %2517 = vperm.xlu1 %5470, %v6739_v24  }
 0x380   : > { %v6881_v18 = vpop.permute.xlu1 %1231 }
 0x382   : > { %5508 = vset.pattern.permute.xlu0 %v6138_v59  ;;  %5471 = vset.pattern.permute.xlu1 %v8331_v49  ;;  %v6170_v59 = vmov 72  }
 0x383   : > { %1347 = vperm.xlu0 %5508, %v6747_v27   ;;  %2537 = vperm.xlu1 %5471, %v6739_v24  }
 0x385   : > { %v6887_v16 = vpop.permute.xlu1 %1251 }
 0x387   : > { %5511 = vset.pattern.permute.xlu0 %v6142_v63  ;;  %5473 = vset.pattern.permute.xlu1 %v8327_v53  ;;  %v8328_v63 = vmov 54  }
 0x388   : > { %1905 = vperm.xlu0 %5511, %v6747_v27   ;;  %2577 = vperm.xlu1 %5473, %v6739_v24  }
 0x38a   : > { %v6893_v12 = vpop.permute.xlu1 %1789 }
 0x38b   : > { %8450 = vst [vmem:[#allocation32_spill] sm:$0xff] %v6893_v12 }
 0x38c   : > { %5514 = vset.pattern.permute.xlu0 %v6146_v3  ;;  %5474 = vset.pattern.permute.xlu1 %v6170_v59  ;;  %v6172_v3 = vmov 74  }
 0x38d   : > { %1407 = vperm.xlu0 %5514, %v6747_v27   ;;  %3143 = vperm.xlu1 %5474, %v6739_v24  }
 0x38f   : > { %v6899_v13 = vpop.permute.xlu1 %1809 }
 0x390   : > { %8451 = vst [vmem:[#allocation33_spill] sm:$0xff] %v6899_v13 }
 0x391   : > { %5516 = vset.pattern.permute.xlu0 %v6127_v46  ;;  %5476 = vset.pattern.permute.xlu1 %v8328_v63  ;;  %v8330_v46 = vmov 75  }
 0x392   : > { %1427 = vperm.xlu0 %5516, %v6747_v27   ;;  %2597 = vperm.xlu1 %5476, %v6739_v24  }
 0x394   : > { %v6905_v11 = vpop.permute.xlu1 %1291 }
 0x396   : > { %5517 = vset.pattern.permute.xlu0 %v6129_v48  ;;  %5477 = vset.pattern.permute.xlu1 %v6172_v3  ;;  %v6174_v48 = vmov 56  }
 0x397   : > { %1965 = vperm.xlu0 %5517, %v6747_v27   ;;  %3183 = vperm.xlu1 %5477, %v6739_v24  }
 0x399   : > { %v6911_v53 = vpop.permute.xlu1 %1311 }
 0x39b   : > { %5518 = vset.pattern.permute.xlu0 %v6131_v50  ;;  %5479 = vset.pattern.permute.xlu1 %v8330_v46  ;;  %v8332_v50 = vmov 57  }
 0x39c   : > { %1447 = vperm.xlu0 %5518, %v6747_v27   ;;  %3203 = vperm.xlu1 %5479, %v6739_v24  }
 0x39e   : > { %v6917_v63 = vpop.permute.xlu1 %1849 }
 0x39f   : > { %8452 = vst [vmem:[#allocation34_spill] sm:$0xff] %v6917_v63 }
 0x3a0   : > { %5519 = vset.pattern.permute.xlu0 %v6148_v5  ;;  %5480 = vset.pattern.permute.xlu1 %v6174_v48  ;;  %v6176_v5 = vmov 77  }
 0x3a1   : > { %1985 = vperm.xlu0 %5519, %v6747_v27   ;;  %2637 = vperm.xlu1 %5480, %v6739_v24  }
 0x3a3   : > { %v6923_v9 = vpop.permute.xlu1 %1869 }
 0x3a4   : > { %8453 = vst [vmem:[#allocation35_spill] sm:$0xff] %v6923_v9 }
 0x3a5   : > { %5520 = vset.pattern.permute.xlu0 %v6133_v52  ;;  %5482 = vset.pattern.permute.xlu1 %v8332_v50  ;;  %v8334_v52 = vmov 78  }
 0x3a6   : > { %1467 = vperm.xlu0 %5520, %v6747_v27   ;;  %2657 = vperm.xlu1 %5482, %v6739_v24  }
 0x3a8   : > { %v6929_v46 = vpop.permute.xlu1 %1351 }
 0x3aa   : > { %5521 = vset.pattern.permute.xlu0 %v6135_v54  ;;  %5483 = vset.pattern.permute.xlu1 %v6176_v5  ;;  %v6178_v54 = vmov 59  }
 0x3ab   : > { %2005 = vperm.xlu0 %5521, %v6747_v27   ;;  %3243 = vperm.xlu1 %5483, %v6739_v24  }
 0x3ad   : > { %v6935_v49 = vpop.permute.xlu1 %1371 }
 0x3af   : > { %5522 = vset.pattern.permute.xlu0 %v6137_v58  ;;  %5485 = vset.pattern.permute.xlu1 %v8334_v52  ;;  %v8339_v58 = vmov 60  }
 0x3b0   : > { %1487 = vperm.xlu0 %5522, %v6747_v27   ;;  %3263 = vperm.xlu1 %5485, %v6739_v24  }
 0x3b2   : > { %v6941_v50 = vpop.permute.xlu1 %1909 }
 0x3b3   : > { %8454 = vst [vmem:[#allocation36_spill] sm:$0xff] %v6941_v50 }
 0x3b4   : > { %5523 = vset.pattern.permute.xlu0 %v6139_v60  ;;  %5486 = vset.pattern.permute.xlu1 %v6178_v54  ;;  %v6180_v60 = vmov 80  }
 0x3b5   : > { %2025 = vperm.xlu0 %5523, %v6747_v27   ;;  %2697 = vperm.xlu1 %5486, %v6739_v24  }
 0x3b7   : > { %v6947_v45 = vpop.permute.xlu1 %1929 }
 0x3b8   : > { %8455 = vst [vmem:[#allocation37_spill] sm:$0xff] %v6947_v45 }
 0x3b9   : > { %5524 = vset.pattern.permute.xlu0 %v6141_v62  ;;  %5488 = vset.pattern.permute.xlu1 %v8339_v58  ;;  %v8488_v58 = vmov 50  }
 0x3ba   : > { %1507 = vperm.xlu0 %5524, %v6747_v27   ;;  %2717 = vperm.xlu1 %5488, %v6739_v24  }
 0x3bc   : > { %v6953_v52 = vpop.permute.xlu1 %1411 }
 0x3be   : > { %5525 = vset.pattern.permute.xlu0 %v6150_v7  ;;  %5489 = vset.pattern.permute.xlu1 %v6180_v60 }
 0x3bf   : > { %2045 = vperm.xlu0 %5525, %v6747_v27   ;;  %3303 = vperm.xlu1 %5489, %v6739_v24  }
 0x3c1   : > { %v6958_v39 = vpop.permute.xlu1 %1989 }
 0x3c2   : > { %8456 = vst [vmem:[#allocation38_spill] sm:$0xff] %v6958_v39 }
 0x3c3   : > { %5526 = vset.pattern.permute.xlu0 %v6152_v10  ;;  %5491 = vset.pattern.permute.xlu1 %v6114_v29 }
 0x3c4   : > { %1527 = vperm.xlu0 %5526, %v6747_v27   ;;  %1167 = vperm.xlu1 %5491, %v6747_v27  }
 0x3c6   : > { %v6964_v62 = vpop.permute.xlu1 %2049 }
 0x3c7   : > { %8457 = vst [vmem:[#allocation39_spill] sm:$0xff] %v6964_v62 }
 0x3c8   : > { %5529 = vset.pattern.permute.xlu0 %v6156_v14  ;;  %5492 = vset.pattern.permute.xlu1 %v6116_v31  ;;  %v6982_v31 = vpop.permute.xlu0 %1729 }
 0x3c9   : > { %2085 = vperm.xlu0 %5529, %v6747_v27   ;;  %1187 = vperm.xlu1 %5492, %v6747_v27   ;;  %8460 = vst [vmem:[#allocation42_spill] sm:$0xff] %v6982_v31 }
 0x3cb   : > { %v6970_v7 = vpop.permute.xlu1 %1531 }
 0x3cc   : > { %8458 = vst [vmem:[#allocation40_spill] sm:$0xff] %v6970_v7 }
 0x3cd   : > { %5532 = vset.pattern.permute.xlu0 %v6160_v17  ;;  %5493 = vset.pattern.permute.xlu1 %v6118_v33  ;;  %v6990_v33 = vpop.permute.xlu0 %1769 }
 0x3ce   : > { %1587 = vperm.xlu0 %5532, %v6747_v27   ;;  %1207 = vperm.xlu1 %5493, %v6747_v27   ;;  %8462 = vst [vmem:[#allocation44_spill] sm:$0xff] %v6990_v33 }
 0x3d0   : > { %v6976_v29 = vpop.permute.xlu1 %1551 }
 0x3d1   : > { %8459 = vst [vmem:[#allocation41_spill] sm:$0xff] %v6976_v29  ;;  %v7000_v17 = vpop.permute.xlu0 %1271 }
 0x3d2   : > { %5535 = vset.pattern.permute.xlu0 %v6163_v21  ;;  %5494 = vset.pattern.permute.xlu1 %v6111_v55 }
 0x3d3   : > { %2145 = vperm.xlu0 %5535, %v6747_v27   ;;  %1725 = vperm.xlu1 %5494, %v6747_v27  }
 0x3d5   : > { %v6984_v10 = vpop.permute.xlu1 %2089 }
 0x3d6   : > { %8461 = vst [vmem:[#allocation43_spill] sm:$0xff] %v6984_v10 }
 0x3d7   : > { %5538 = vset.pattern.permute.xlu0 %v6165_v56  ;;  %5495 = vset.pattern.permute.xlu1 %v6120_v35 }
 0x3d8   : > { %2473 = vperm.xlu0 %5538, %v6747_v27   ;;  %1745 = vperm.xlu1 %5495, %v6747_v27  }
 0x3da   : > { %v6992_v14 = vpop.permute.xlu1 %2109 }
 0x3db   : > { %8463 = vst [vmem:[#allocation45_spill] sm:$0xff] %v6992_v14 }
 0x3dc   : > { %5544 = vset.pattern.permute.xlu0 %v6170_v59  ;;  %5497 = vset.pattern.permute.xlu1 %v6113_v28  ;;  %v7009_v28 = vpop.permute.xlu0 %1829 }
 0x3dd   : > { %3139 = vperm.xlu0 %5544, %v6747_v27   ;;  %1765 = vperm.xlu1 %5497, %v6747_v27   ;;  %8466 = vst [vmem:[#allocation48_spill] sm:$0xff] %v7009_v28 }
 0x3df   : > { %v6998_v55 = vpop.permute.xlu1 %1591 }
 0x3e0   : > { %8464 = vst [vmem:[#allocation46_spill] sm:$0xff] %v6998_v55 }
 0x3e1   : > { %5547 = vset.pattern.permute.xlu0 %v6172_v3  ;;  %5498 = vset.pattern.permute.xlu1 %v6124_v43  ;;  %v7019_v43 = vpop.permute.xlu0 %1331 }
 0x3e2   : > { %3179 = vperm.xlu0 %5547, %v6747_v27   ;;  %1247 = vperm.xlu1 %5498, %v6747_v27  }
 0x3e4   : > { %v7006_v35 = vpop.permute.xlu1 %1611 }
 0x3e5   : > { %8465 = vst [vmem:[#allocation47_spill] sm:$0xff] %v7006_v35 }
 0x3e6   : > { %5550 = vset.pattern.permute.xlu0 %v6174_v48  ;;  %5500 = vset.pattern.permute.xlu1 %v6115_v30  ;;  %v7028_v30 = vpop.permute.xlu0 %1889 }
 0x3e7   : > { %2633 = vperm.xlu0 %5550, %v6747_v27   ;;  %1267 = vperm.xlu1 %5500, %v6747_v27   ;;  %8469 = vst [vmem:[#allocation51_spill] sm:$0xff] %v7028_v30 }
 0x3e9   : > { %v7014_v21 = vpop.permute.xlu1 %2149 }
 0x3ea   : > { %8467 = vst [vmem:[#allocation49_spill] sm:$0xff] %v7014_v21 }
 0x3eb   : > { %5553 = vset.pattern.permute.xlu0 %v6176_v5  ;;  %5501 = vset.pattern.permute.xlu1 %v6128_v47  ;;  %v7035_v47 = vpop.permute.xlu0 %1391  ;;  %v8336_v5 = vmov 62  }
 0x3ec   : > { %3239 = vperm.xlu0 %5553, %v6747_v27   ;;  %1805 = vperm.xlu1 %5501, %v6747_v27  }
 0x3ee   : > { %v7022_v56 = vpop.permute.xlu1 %2189 }
 0x3ef   : > { %8468 = vst [vmem:[#allocation50_spill] sm:$0xff] %v7022_v56  ;;  %v8502_v56 = vmov 57  }
 0x3f0   : > { %5556 = vset.pattern.permute.xlu0 %v6178_v54  ;;  %5503 = vset.pattern.permute.xlu1 %v6117_v32  ;;  %v8338_v32 = vmov 61  }
 0x3f1   : > { %2693 = vperm.xlu0 %5556, %v6747_v27   ;;  %1825 = vperm.xlu1 %5503, %v6747_v27  }
 0x3f3   : > { %v7030_v59 = vpop.permute.xlu1 %2477 }
 0x3f4   : > { %8470 = vst [vmem:[#allocation52_spill] sm:$0xff] %v7030_v59 }
 0x3f5   : > { %5559 = vset.pattern.permute.xlu0 %v6180_v60  ;;  %5504 = vset.pattern.permute.xlu1 %v6132_v51  ;;  %v7045_v51 = vpop.permute.xlu0 %1949 }
 0x3f6   : > { %3299 = vperm.xlu0 %5559, %v6747_v27   ;;  %1307 = vperm.xlu1 %5504, %v6747_v27   ;;  %8473 = vst [vmem:[#allocation55_spill] sm:$0xff] %v7045_v51 }
 0x3f8   : > { %v7037_v3 = vpop.permute.xlu1 %2497 }
 0x3f9   : > { %8471 = vst [vmem:[#allocation53_spill] sm:$0xff] %v7037_v3  ;;  %v7054_v60 = vpop.permute.xlu0 %1431 }
 0x3fa   : > { %5561 = vset.pattern.permute.xlu0 %v8338_v32  ;;  %5506 = vset.pattern.permute.xlu1 %v6119_v34  ;;  %v8337_v34 = vmov 82   ;;  %v8487_v32 = vmov 49  }
 0x3fb   : > { %2737 = vperm.xlu0 %5561, %v6739_v24   ;;  %1327 = vperm.xlu1 %5506, %v6747_v27  }
 0x3fd   : > { %v7043_v48 = vpop.permute.xlu1 %2517 }
 0x3fe   : > { %8472 = vst [vmem:[#allocation54_spill] sm:$0xff] %v7043_v48 }
 0x3ff   : > { %5563 = vset.pattern.permute.xlu0 %v8336_v5  ;;  %5507 = vset.pattern.permute.xlu1 %v6136_v57 }
 0x400   : > { %2753 = vperm.xlu0 %5563, %v6747_v27   ;;  %1865 = vperm.xlu1 %5507, %v6747_v27  }
 0x402   : > { %v7051_v54 = vpop.permute.xlu1 %2537 }
 0x403   : > { %8474 = vst [vmem:[#allocation56_spill] sm:$0xff] %v7051_v54 }
 0x404   : > { %5566 = vset.pattern.permute.xlu0 %v8337_v34  ;;  %5509 = vset.pattern.permute.xlu1 %v6121_v38 }
 0x405   : > { %3343 = vperm.xlu0 %5566, %v6739_v24   ;;  %1885 = vperm.xlu1 %5509, %v6747_v27  }
 0x407   : > { %v7059_v5 = vpop.permute.xlu1 %2577 }
 0x408   : > { %8475 = vst [vmem:[#allocation57_spill] sm:$0xff] %v7059_v5 }
 0x409   : > { %5510 = vset.pattern.permute.xlu1 %v6140_v61 }
 0x40a   : > { %1367 = vperm.xlu1 %5510, %v6747_v27  }
 0x40c   : > { %v7063_v57 = vpop.permute.xlu1 %3143 }
 0x40d   : > { %8476 = vst [vmem:[#allocation58_spill] sm:$0xff] %v7063_v57 }
 0x40e   : > { %5512 = vset.pattern.permute.xlu1 %v6123_v42 }
 0x40f   : > { %1387 = vperm.xlu1 %5512, %v6747_v27  }
 0x411   : > { %v7067_v34 = vpop.permute.xlu1 %2597 }
 0x412   : > { %8477 = vst [vmem:[#allocation59_spill] sm:$0xff] %v7067_v34 }
 0x413   : > { %5513 = vset.pattern.permute.xlu1 %v6144_v1 }
 0x414   : > { %1925 = vperm.xlu1 %5513, %v6747_v27  }
 0x416   : > { %v7071_v38 = vpop.permute.xlu1 %3183 }
 0x417   : > { %8478 = vst [vmem:[#allocation60_spill] sm:$0xff] %v7071_v38 }
 0x418   : > { %5515 = vset.pattern.permute.xlu1 %v6125_v44 }
 0x419   : > { %1945 = vperm.xlu1 %5515, %v6747_v27  }
 0x41b   : > { %v7075_v61 = vpop.permute.xlu1 %3203 }
 0x41c   : > { %8479 = vst [vmem:[#allocation61_spill] sm:$0xff] %v7075_v61 }
 0x41d   : > { %5527 = vset.pattern.permute.xlu1 %v6143_v0 }
 0x41e   : > { %2065 = vperm.xlu1 %5527, %v6747_v27  }
 0x420   : > { %v7079_v42 = vpop.permute.xlu1 %2637 }
 0x421   : > { %8480 = vst [vmem:[#allocation62_spill] sm:$0xff] %v7079_v42  ;;  %v8506_v42 = vmov 79  }
 0x422   : > { %5528 = vset.pattern.permute.xlu1 %v6154_v8 }
 0x423   : > { %1547 = vperm.xlu1 %5528, %v6747_v27  }
 0x425   : > { %v7083_v1 = vpop.permute.xlu1 %2657 }
 0x426   : > { %8481 = vst [vmem:[#allocation63_spill] sm:$0xff] %v7083_v1 }
 0x427   : > { %5530 = vset.pattern.permute.xlu1 %v6145_v2 }
 0x428   : > { %1567 = vperm.xlu1 %5530, %v6747_v27  }
 0x42a   : > { %v7087_v44 = vpop.permute.xlu1 %3243 }
 0x42b   : > { %8482 = vst [vmem:[#allocation64_spill] sm:$0xff] %v7087_v44  ;;  %v8493_v44 = vmov 53  }
 0x42c   : > { %5531 = vset.pattern.permute.xlu1 %v6158_v15 }
 0x42d   : > { %2105 = vperm.xlu1 %5531, %v6747_v27  }
 0x42f   : > { %v7091_v0 = vpop.permute.xlu1 %3263 }
 0x430   : > { %8483 = vst [vmem:[#allocation65_spill] sm:$0xff] %v7091_v0  ;;  %v8489_v0 = vmov 51  }
 0x431   : > { %5533 = vset.pattern.permute.xlu1 %v6147_v4 }
 0x432   : > { %2125 = vperm.xlu1 %5533, %v6747_v27  }
 0x434   : > { %v7095_v8 = vpop.permute.xlu1 %2697 }
 0x435   : > { %8484 = vst [vmem:[#allocation66_spill] sm:$0xff] %v7095_v8 }
 0x436   : > { %5534 = vset.pattern.permute.xlu1 %v6162_v19 }
 0x437   : > { %1607 = vperm.xlu1 %5534, %v6747_v27  }
 0x439   : > { %v7099_v2 = vpop.permute.xlu1 %2717 }
 0x43a   : > { %8485 = vst [vmem:[#allocation67_spill] sm:$0xff] %v7099_v2  ;;  %v8500_v2 = vmov 76  }
 0x43b   : > { %5536 = vset.pattern.permute.xlu1 %v6149_v6 }
 0x43c   : > { %2165 = vperm.xlu1 %5536, %v6747_v27  }
 0x43e   : > { %v7103_v15 = vpop.permute.xlu1 %3303 }
 0x43f   : > { %8486 = vst [vmem:[#allocation68_spill] sm:$0xff] %v7103_v15  ;;  %v8491_v15 = vmov 52  }
 0x440   : > { %5537 = vset.pattern.permute.xlu1 %v6164_v23 }
 0x441   : > { %2185 = vperm.xlu1 %5537, %v6747_v27  }
 0x443   : > { %v7107_v4 = vpop.permute.xlu1 %1167 }
 0x445   : > { %5539 = vset.pattern.permute.xlu1 %v8487_v32 }
 0x446   : > { %2493 = vperm.xlu1 %5539, %v6747_v27  }
 0x448   : > { %v7111_v19 = vpop.permute.xlu1 %1187 }
 0x44a   : > { %5540 = vset.pattern.permute.xlu1 %v8488_v58  ;;  %v8494_v58 = vmov 73  }
 0x44b   : > { %2513 = vperm.xlu1 %5540, %v6747_v27  }
 0x44d   : > { %v7115_v6 = vpop.permute.xlu1 %1207 }
 0x44f   : > { %5541 = vset.pattern.permute.xlu1 %v8489_v0  ;;  %v8496_v0 = vmov 54  }
 0x450   : > { %2533 = vperm.xlu1 %5541, %v6747_v27  }
 0x452   : > { %v7119_v23 = vpop.permute.xlu1 %1725 }
 0x453   : > { %8490 = vst [vmem:[#allocation69_spill] sm:$0xff] %v7119_v23 }
 0x454   : > { %5542 = vset.pattern.permute.xlu1 %v8491_v15  ;;  %v8497_v15 = vmov 55  }
 0x455   : > { %2553 = vperm.xlu1 %5542, %v6747_v27  }
 0x457   : > { %v7123_v32 = vpop.permute.xlu1 %1745 }
 0x458   : > { %8492 = vst [vmem:[#allocation70_spill] sm:$0xff] %v7123_v32 }
 0x459   : > { %5543 = vset.pattern.permute.xlu1 %v8493_v44  ;;  %v8498_v44 = vmov 75  }
 0x45a   : > { %2573 = vperm.xlu1 %5543, %v6747_v27  }
 0x45c   : > { %v7128_v61 = vpop.permute.xlu1 %1765 }
 0x45d   : > { %8495 = vst [vmem:[#allocation71_spill] sm:$0xff] %v7128_v61 }
 0x45e   : > { %5545 = vset.pattern.permute.xlu1 %v8494_v58 }
 0x45f   : > { %3159 = vperm.xlu1 %5545, %v6747_v27  }
 0x461   : > { %v7133_v38 = vpop.permute.xlu1 %1247 }
 0x463   : > { %5546 = vset.pattern.permute.xlu1 %v8496_v0 }
 0x464   : > { %2593 = vperm.xlu1 %5546, %v6747_v27  }
 0x466   : > { %v7137_v57 = vpop.permute.xlu1 %1267 }
 0x468   : > { %5548 = vset.pattern.permute.xlu1 %v8497_v15  ;;  %v8503_v15 = vmov 58  }
 0x469   : > { %2613 = vperm.xlu1 %5548, %v6747_v27  }
 0x46b   : > { %v7141_v58 = vpop.permute.xlu1 %1805 }
 0x46c   : > { %8499 = vst [vmem:[#allocation72_spill] sm:$0xff] %v7141_v58 }
 0x46d   : > { %5549 = vset.pattern.permute.xlu1 %v8498_v44  ;;  %v8504_v44 = vmov 78  }
 0x46e   : > { %3199 = vperm.xlu1 %5549, %v6747_v27  }
 0x470   : > { %v7145_v0 = vpop.permute.xlu1 %1825 }
 0x471   : > { %8501 = vst [vmem:[#allocation73_spill] sm:$0xff] %v7145_v0 }
 0x472   : > { %5551 = vset.pattern.permute.xlu1 %v8500_v2  ;;  %v7157_v2 = vpop.permute.xlu0 %1969 }
 0x473   : > { %3219 = vperm.xlu1 %5551, %v6747_v27   ;;  %8505 = vst [vmem:[#allocation74_spill] sm:$0xff] %v7157_v2 }
 0x475   : > { %v7150_v8 = vpop.permute.xlu1 %1307 }
 0x476   : > { %v7163_v34 = vpop.permute.xlu0 %1451 }
 0x477   : > { %5552 = vset.pattern.permute.xlu1 %v8502_v56 }
 0x478   : > { %2653 = vperm.xlu1 %5552, %v6747_v27  }
 0x47a   : > { %v7155_v1 = vpop.permute.xlu1 %1327 }
 0x47c   : > { %5554 = vset.pattern.permute.xlu1 %v8503_v15  ;;  %v8508_v15 = vmov 60  }
 0x47d   : > { %2673 = vperm.xlu1 %5554, %v6747_v27  }
 0x47f   : > { %v7161_v56 = vpop.permute.xlu1 %1865 }
 0x480   : > { %8507 = vst [vmem:[#allocation75_spill] sm:$0xff] %v7161_v56 }
 0x481   : > { %5555 = vset.pattern.permute.xlu1 %v8504_v44  ;;  %v7169_v44 = vpop.permute.xlu0 %1471 }
 0x482   : > { %3259 = vperm.xlu1 %5555, %v6747_v27  }
 0x484   : > { %v7167_v5 = vpop.permute.xlu1 %1885 }
 0x485   : > { %8509 = vst [vmem:[#allocation76_spill] sm:$0xff] %v7167_v5  ;;  %v7173_v48 = vpop.permute.xlu0 %2009 }
 0x486   : > { %5557 = vset.pattern.permute.xlu1 %v8506_v42  ;;  %8510 = vst [vmem:[#allocation77_spill] sm:$0xff] %v7173_v48 }
 0x487   : > { %3279 = vperm.xlu1 %5557, %v6747_v27  }
 0x489   : > { %v7171_v54 = vpop.permute.xlu1 %1367  ;;  %v7177_v42 = vpop.permute.xlu0 %1491 }
 0x48b   : > { %5558 = vset.pattern.permute.xlu1 %v8508_v15 }
 0x48c   : > { %2713 = vperm.xlu1 %5558, %v6747_v27  }
 0x48d   : > { %v7181_v21 = vpop.permute.xlu0 %2029 }
 0x48e   : > { %v7175_v3 = vpop.permute.xlu1 %1387  ;;  %8512 = vst [vmem:[#allocation79_spill] sm:$0xff] %v7181_v21 }
 0x491   : > { %v7185_v15 = vpop.permute.xlu0 %1511 }
 0x493   : > { %v7179_v59 = vpop.permute.xlu1 %1925 }
 0x494   : > { %8511 = vst [vmem:[#allocation78_spill] sm:$0xff] %v7179_v59 }
 0x495   : > { %v7189_v62 = vpop.permute.xlu0 %2069 }
 0x496   : > { %8515 = vst [vmem:[#allocation82_spill] sm:$0xff] %v7189_v62 }
 0x498   : > { %v7183_v14 = vpop.permute.xlu1 %1945 }
 0x499   : > { %8513 = vst [vmem:[#allocation80_spill] sm:$0xff] %v7183_v14  ;;  %v7193_v35 = vpop.permute.xlu0 %1571 }
 0x49a   : > { %8517 = vst [vmem:[#allocation84_spill] sm:$0xff] %v7193_v35 }
 0x49d   : > { %v7187_v10 = vpop.permute.xlu1 %2065  ;;  %v7199_v2 = vpop.permute.xlu0 %2129 }
 0x49e   : > { %8514 = vst [vmem:[#allocation81_spill] sm:$0xff] %v7187_v10  ;;  %8519 = vst [vmem:[#allocation86_spill] sm:$0xff] %v7199_v2 }
 0x4a1   : > { %v7203_v51 = vpop.permute.xlu0 %2169 }
 0x4a2   : > { %v7191_v39 = vpop.permute.xlu1 %1547  ;;  %8521 = vst [vmem:[#allocation88_spill] sm:$0xff] %v7203_v51 }
 0x4a3   : > { %8516 = vst [vmem:[#allocation83_spill] sm:$0xff] %v7191_v39 }
 0x4a5   : > { %v7207_v10 = vpop.permute.xlu0 %2557 }
 0x4a6   : > { %8523 = vst [vmem:[#allocation90_spill] sm:$0xff] %v7207_v10 }
 0x4a7   : > { %v7196_v48 = vpop.permute.xlu1 %1567 }
 0x4a8   : > { %8518 = vst [vmem:[#allocation85_spill] sm:$0xff] %v7196_v48 }
 0x4a9   : > { %v7211_v45 = vpop.permute.xlu0 %3163 }
 0x4aa   : > { %8525 = vst [vmem:[#allocation92_spill] sm:$0xff] %v7211_v45 }
 0x4ac   : > { %v7201_v21 = vpop.permute.xlu1 %2105 }
 0x4ad   : > { %8520 = vst [vmem:[#allocation87_spill] sm:$0xff] %v7201_v21 }
 0x4b1   : > { %v7205_v14 = vpop.permute.xlu1 %2125 }
 0x4b2   : > { %8522 = vst [vmem:[#allocation89_spill] sm:$0xff] %v7205_v14 }
 0x4b5   : > { %1013 = vxpose.xlu1.b32.start [1/2] (short) (narrow) %v6743_v26, 96  ;;  %v7215_v26 = vpop.permute.xlu0 %2617 }
 0x4b6   : > { %v7209_v62 = vpop.permute.xlu1 %1607  ;;  %8527 = vst [vmem:[#allocation94_spill] sm:$0xff] %v7215_v26 }
 0x4b7   : > { %8524 = vst [vmem:[#allocation91_spill] sm:$0xff] %v7209_v62 }
 0x4b9   : > { %1014 = vxpose.xlu1.b32.end [2/2] (short) (narrow) %v6741_v25, 96  ;;  %v8529_v25 = vmov 61   ;;  %v7220_v2 = vpop.permute.xlu0 %3223 }
 0x4ba   : > { %8530 = vst [vmem:[#allocation96_spill] sm:$0xff] %v7220_v2 }
 0x4bb   : > { %v7213_v59 = vpop.permute.xlu1 %2165 }
 0x4bc   : > { %8526 = vst [vmem:[#allocation93_spill] sm:$0xff] %v7213_v59 }
 0x4bd   : > { %v7224_v51 = vpop.permute.xlu0 %2677 }
 0x4be   : > { %8532 = vst [vmem:[#allocation98_spill] sm:$0xff] %v7224_v51 }
 0x4c0   : > { %v7217_v55 = vpop.permute.xlu1 %2185 }
 0x4c1   : > { %8528 = vst [vmem:[#allocation95_spill] sm:$0xff] %v7217_v55  ;;  %v7228_v10 = vpop.permute.xlu0 %3283 }
 0x4c2   : > { %8534 = vst [vmem:[#allocation100_spill] sm:$0xff] %v7228_v10 }
 0x4c5   : > { %v7222_v21 = vpop.permute.xlu1 %2493  ;;  %v1147_v45 = vpop.permute.xlu0 %1146 }
 0x4c6   : > { %8531 = vst [vmem:[#allocation97_spill] sm:$0xff] %v7222_v21 }
 0x4c9   : > { %v7234_v26 = vpop.permute.xlu0 %1227 }
 0x4ca   : > { %v7226_v14 = vpop.permute.xlu1 %2513 }
 0x4cb   : > { %8533 = vst [vmem:[#allocation99_spill] sm:$0xff] %v7226_v14 }
 0x4cf   : > { %v7230_v62 = vpop.permute.xlu1 %2533 }
 0x4d0   : > { %8535 = vst [vmem:[#allocation101_spill] sm:$0xff] %v7230_v62  ;;  %v6184_v62 = vmov 81  }
 0x4d4   : > { %v7232_v59 = vpop.permute.xlu1 %2553 }
 0x4d5   : > { %8536 = vst [vmem:[#allocation102_spill] sm:$0xff] %v7232_v59 }
 0x4d7   : > { %5560 = vset.pattern.permute.xlu1 %v8529_v25  ;;  %v7238_v25 = vpop.permute.xlu0 %1785 }
 0x4d8   : > { %8538 = vst [vmem:[#allocation104_spill] sm:$0xff] %v7238_v25 }
 0x4d9   : > { %v7236_v55 = vpop.permute.xlu1 %2573 }
 0x4da   : > { %8537 = vst [vmem:[#allocation103_spill] sm:$0xff] %v7236_v55  ;;  %v8543_v55 = vmov 62  }
 0x4db   : > { %v7242_v21 = vpop.permute.xlu0 %1287 }
 0x4de   : > { %v7240_v2 = vpop.permute.xlu1 %3159 }
 0x4df   : > { %8539 = vst [vmem:[#allocation105_spill] sm:$0xff] %v7240_v2  ;;  %v7247_v10 = vpop.permute.xlu0 %1845 }
 0x4e0   : > { %8541 = vst [vmem:[#allocation107_spill] sm:$0xff] %v7247_v10 }
 0x4e3   : > { %v7245_v51 = vpop.permute.xlu1 %2593  ;;  %v7252_v14 = vpop.permute.xlu0 %1347 }
 0x4e4   : > { %8540 = vst [vmem:[#allocation106_spill] sm:$0xff] %v7245_v51  ;;  %v8546_v51 = vmov 82  }
 0x4e7   : > { %v7259_v50 = vpop.permute.xlu0 %1905 }
 0x4e8   : > { %v7250_v59 = vpop.permute.xlu1 %2613  ;;  %8545 = vst [vmem:[#allocation110_spill] sm:$0xff] %v7259_v50 }
 0x4e9   : > { %8542 = vst [vmem:[#allocation108_spill] sm:$0xff] %v7250_v59  ;;  %v6185_v59 = vmov 63  }
 0x4eb   : > { %v7265_v30 = vpop.permute.xlu0 %1407 }
 0x4ed   : > { %v7256_v2 = vpop.permute.xlu1 %3199 }
 0x4ee   : > { %8544 = vst [vmem:[#allocation109_spill] sm:$0xff] %v7256_v2 }
 0x4ff   : > { %2733 = vperm.xlu1 %5560, %v6747_v27  }
 0x503   : > { %5562 = vset.pattern.permute.xlu1 %v6184_v62  ;;  %v7263_v62 = vpop.permute.xlu1 %3219 }
 0x504   : > { %3319 = vperm.xlu1 %5562, %v6747_v27   ;;  %8547 = vst [vmem:[#allocation111_spill] sm:$0xff] %v7263_v62 }
 0x507   : > { %v7268_v5 = vpop.permute.xlu1 %2653 }
 0x508   : > { %3323 = vperm.xlu1 %5562, %v6739_v24   ;;  %8548 = vst [vmem:[#allocation112_spill] sm:$0xff] %v7268_v5 }
 0x50b   : > { %v7273_v2 = vpop.permute.xlu1 %2673 }
 0x50c   : > { %5564 = vset.pattern.permute.xlu1 %v8543_v55  ;;  %v7270_v55 = vpop.permute.xlu0 %1427  ;;  %8549 = vst [vmem:[#allocation113_spill] sm:$0xff] %v7273_v2 }
 0x50d   : > { %2757 = vperm.xlu1 %5564, %v6739_v24  }
 0x50f   : > { %v7278_v62 = vpop.permute.xlu1 %3259 }
 0x510   : > { %8551 = vst [vmem:[#allocation115_spill] sm:$0xff] %v7278_v62 }
 0x511   : > { %5565 = vset.pattern.permute.xlu1 %v8546_v51  ;;  %v7276_v51 = vpop.permute.xlu0 %1965 }
 0x512   : > { %3339 = vperm.xlu1 %5565, %v6747_v27   ;;  %8550 = vst [vmem:[#allocation114_spill] sm:$0xff] %v7276_v51 }
 0x513   : > { %v7282_v9 = vpop.permute.xlu1 %3279 }
 0x514   : > { %8552 = vst [vmem:[#allocation116_spill] sm:$0xff] %v7282_v9 }
 0x515   : > { %v7280_v50 = vpop.permute.xlu0 %1447 }
 0x516   : > { %5567 = vset.pattern.permute.xlu1 %v6185_v59  ;;  %v1154_v59 = vlaneseq }
 0x517   : > { %2773 = vperm.xlu1 %5567, %v6747_v27   ;;  %v7286_v56 = vpop.permute.xlu1 %2713 }
 0x518   : > { %v1155_v5 = vshrl.u32 %v1154_v59, 7  ;;  %8554 = vst [vmem:[#allocation118_spill] sm:$0xff] %v7286_v56 }
 0x519   : > { %v7284_v27 = vpop.permute.xlu0 %1985 }
 0x51a   : > { %8553 = vst [vmem:[#allocation117_spill] sm:$0xff] %v7284_v27  ;;  %v7290_v2 = vsub.s32 0, %v1155_v5  ;;  %v7292_v63 = vsub.s32 1, %v1155_v5  ;;  %v7296_v51 = vsub.s32 3, %v1155_v5  ;;  %v7298_v62 = vsub.s32 4, %v1155_v5 }
 0x51b   : > { %2777 = vperm.xlu1 %5567, %v6739_v24   ;;  %v7300_v10 = vsub.s32 5, %v1155_v5  ;;  %v7302_v9 = vsub.s32 6, %v1155_v5  ;;  %v7304_v27 = vsub.s32 7, %v1155_v5 }
 0x51c   : > { %8555 = vst [vmem:[#allocation119_spill] sm:$0xff] %v7290_v2  ;;  %8556 = vst [vmem:[#allocation120_spill] sm:$0xff] %v7292_v63 }
 0x51d   : > { %v7288_v24 = vpop.permute.xlu0 %1467  ;;  %8558 = vst [vmem:[#allocation122_spill] sm:$0xff] %v7296_v51  ;;  %8559 = vst [vmem:[#allocation123_spill] sm:$0xff] %v7298_v62 }
 0x51e   : > { %8560 = vst [vmem:[#allocation124_spill] sm:$0xff] %v7300_v10  ;;  %8561 = vst [vmem:[#allocation125_spill] sm:$0xff] %v7302_v9 }
 0x51f   : > { %5569 = vrot.lane.b32.xlu1 %v6767_v40, %s6186_s19  ;;  %v7294_v40 = vsub.s32 2, %v1155_v5  ;;  %8562 = vst [vmem:[#allocation126_spill] sm:$0xff] %v7304_v27  ;;  %s5977_s19 = sshll.u32 %s6211_s18, 4  ;;  %s5978_s19 = int_to_ptr.vmem [resolvable:$false] %s5977_s19 }
 0x521   : > { %8557 = vst [vmem:[#allocation121_spill] sm:$0xff] %v7294_v40  ;;  %v7314_v61 = vpop.permute.xlu0 %2005 }
 0x522   : > { %8563 = vst [vmem:[#allocation127_spill] sm:$0xff] %v7314_v61 }
 0x535   : > { %v1029_v59 = vpop.trf.xlu1 }
 0x536   : > { %v1157_v56 = vrot.slane %v1029_v59, %v7290_v2  ;;  %v1177_v28 = vrot.slane %v1029_v59, %v7292_v63  ;;  %v1197_v0 = vrot.slane %v1029_v59, %v7294_v40  ;;  %v1217_v13 = vrot.slane %v1029_v59, %v7296_v51 }
 0x537   : > { %v1237_v58 = vrot.slane %v1029_v59, %v7298_v62  ;;  %v1257_v12 = vrot.slane %v1029_v59, %v7300_v10  ;;  %v1277_v25 = vrot.slane %v1029_v59, %v7302_v9  ;;  %v1297_v33 = vrot.slane %v1029_v59, %v7304_v27 }
 0x538   : > { %v1158_v5 = vadd.f32 %v1157_v56, %v1147_v45  ;;  %v1159_v41 = vadd.f32 %v1157_v56, %v6851_v20  ;;  %v1178_v32 = vadd.f32 %v1177_v28, %v7107_v4  ;;  %v1179_v31 = vadd.f32 %v1177_v28, %v6857_v22 }
 0x539   : > { %v1198_v23 = vadd.f32 %v1197_v0, %v7111_v19  ;;  %v1199_v35 = vadd.f32 %v1197_v0, %v6863_v36  ;;  %v1218_v48 = vadd.f32 %v1217_v13, %v7115_v6  ;;  %v1219_v29 = vadd.f32 %v1217_v13, %v6869_v37  ;;  %v1030_v28 = vpop.trf.xlu1 }
 0x53a   : > { %v1160_v39 = vpack.c.bf16 %v1159_v41, %v1158_v5  ;;  %v1180_v7 = vpack.c.bf16 %v1179_v31, %v1178_v32  ;;  %v1238_v59 = vadd.f32 %v1237_v58, %v7234_v26  ;;  %v1239_v45 = vadd.f32 %v1237_v58, %v6881_v18  ;;  %v7331_v31 = vpop.permute.xlu0 %1487 }
 0x53b   : > { %v1200_v61 = vpack.c.bf16 %v1199_v35, %v1198_v23  ;;  %v1220_v20 = vpack.c.bf16 %v1219_v29, %v1218_v48  ;;  %v1258_v4 = vadd.f32 %v1257_v12, %v7133_v38  ;;  %v1259_v22 = vadd.f32 %v1257_v12, %v6887_v16 }
 0x53c   : > { %5623 = vtanh.bf16 %v1160_v39  ;;  %v1278_v36 = vadd.f32 %v1277_v25, %v7137_v57  ;;  %v1279_v19 = vadd.f32 %v1277_v25, %v7000_v17  ;;  %v1240_v13 = vpack.c.bf16 %v1239_v45, %v1238_v59 }
 0x53d   : > { %5625 = vtanh.bf16 %v1180_v7  ;;  %v1298_v37 = vadd.f32 %v1297_v33, %v7242_v21  ;;  %v1299_v41 = vadd.f32 %v1297_v33, %v6905_v11  ;;  %v1260_v18 = vpack.c.bf16 %v1259_v22, %v1258_v4 }
 0x53e   : > { %5627 = vtanh.bf16 %v1200_v61  ;;  %v1317_v29 = vrot.slane %v1030_v28, %v7290_v2  ;;  %v1337_v12 = vrot.slane %v1030_v28, %v7292_v63  ;;  %v1280_v16 = vpack.c.bf16 %v1279_v19, %v1278_v36 }
 0x53f   : > { %5629 = vtanh.bf16 %v1220_v20  ;;  %v1357_v39 = vrot.slane %v1030_v28, %v7294_v40  ;;  %v1377_v17 = vrot.slane %v1030_v28, %v7296_v51  ;;  %v1300_v7 = vpack.c.bf16 %v1299_v41, %v1298_v37  ;;  %v7359_v41 = vpop.trf.xlu1 }
 0x540   : > { %v1318_v35 = vadd.f32 %v1317_v29, %v7150_v8  ;;  %v1319_v21 = vadd.f32 %v1317_v29, %v6911_v53  ;;  %v1338_v11 = vadd.f32 %v1337_v12, %v7155_v1  ;;  %5631 = vtanh.bf16 %v1240_v13  ;;  %v7346_v53 = vpop.permute.xlu0 %2025 }
 0x541   : > { %v1339_v33 = vadd.f32 %v1337_v12, %v7019_v43  ;;  %v1358_v48 = vadd.f32 %v1357_v39, %v7252_v14  ;;  %v1359_v57 = vadd.f32 %v1357_v39, %v6929_v46  ;;  %5633 = vtanh.bf16 %v1260_v18 }
 0x542   : > { %v1320_v38 = vpack.c.bf16 %v1319_v21, %v1318_v35  ;;  %v1378_v61 = vadd.f32 %v1377_v17, %v7171_v54  ;;  %v1379_v6 = vadd.f32 %v1377_v17, %v6935_v49  ;;  %5635 = vtanh.bf16 %v1280_v16 }
 0x543   : > { %v1340_v23 = vpack.c.bf16 %v1339_v33, %v1338_v11  ;;  %v1397_v8 = vrot.slane %v1030_v28, %v7298_v62  ;;  %5637 = vtanh.bf16 %v1300_v7  ;;  %v1417_v1 = vrot.slane %v1030_v28, %v7300_v10 }
 0x544   : > { %v1437_v43 = vrot.slane %v1030_v28, %v7302_v9  ;;  %5639 = vtanh.bf16 %v1320_v38  ;;  %v1360_v14 = vpack.c.bf16 %v1359_v57, %v1358_v48  ;;  %v1380_v54 = vpack.c.bf16 %v1379_v6, %v1378_v61 }
 0x545   : > { %v1398_v46 = vadd.f32 %v1397_v8, %v7175_v3  ;;  %v1399_v32 = vadd.f32 %v1397_v8, %v7035_v47  ;;  %v1418_v49 = vadd.f32 %v1417_v1, %v7265_v30  ;;  %v1419_v58 = vadd.f32 %v1417_v1, %v6953_v52  ;;  %v1508_v30 = vpop.permute.xlu0 %1507 }
 0x546   : > { %v1457_v0 = vrot.slane %v1030_v28, %v7304_v27  ;;  %5641 = vtanh.bf16 %v1340_v23  ;;  %v1438_v26 = vadd.f32 %v1437_v43, %v7270_v55  ;;  %v1439_v20 = vadd.f32 %v1437_v43, %v7054_v60 }
 0x547   : > { %v5624_v56 = vpop.eup %5623  ;;  %v1400_v45 = vpack.c.bf16 %v1399_v32, %v1398_v46  ;;  %5643 = vtanh.bf16 %v1360_v14  ;;  %v1420_v52 = vpack.c.bf16 %v1419_v58, %v1418_v49  ;;  %v1497_v23 = vrot.slane %v7359_v41, %v7292_v63 }
 0x548   : > { %v5626_v25 = vpop.eup %5625  ;;  %v1162_v5 = vunpack.c.l.bf16 %v5624_v56  ;;  %v1163_v59 = vunpack.c.h.bf16 %v5624_v56  ;;  %5645 = vtanh.bf16 %v1380_v54  ;;  %v1458_v28 = vadd.f32 %v1457_v0, %v7280_v50 }
 0x549   : > { %v5628_v3 = vpop.eup %5627  ;;  %v1182_v4 = vunpack.c.l.bf16 %v5626_v25  ;;  %v1183_v47 = vunpack.c.h.bf16 %v5626_v25  ;;  %v1459_v36 = vadd.f32 %v1457_v0, %v7163_v34  ;;  %5647 = vtanh.bf16 %v1400_v45  ;;  %v7363_v38 = vpop.permute.xlu0 %2045 }
 0x54a   : > { %v5630_v22 = vpop.eup %5629  ;;  %v1202_v13 = vunpack.c.l.bf16 %v5628_v3  ;;  %v1203_v37 = vunpack.c.h.bf16 %v5628_v3  ;;  %v1440_v60 = vpack.c.bf16 %v1439_v20, %v1438_v26  ;;  %5649 = vtanh.bf16 %v1420_v52 }
 0x54b   : > { %v1184_v19 = vadd.f32 %v1182_v4, %v1162_v5  ;;  %v1185_v55 = vadd.f32 %v1183_v47, %v1163_v59  ;;  %v5632_v18 = vpop.eup %5631  ;;  %v1222_v39 = vunpack.c.l.bf16 %v5630_v22  ;;  %v1223_v17 = vunpack.c.h.bf16 %v5630_v22 }
 0x54c   : > { %v5634_v29 = vpop.eup %5633  ;;  %v1460_v35 = vpack.c.bf16 %v1459_v36, %v1458_v28  ;;  %v1477_v50 = vrot.slane %v7359_v41, %v7290_v2  ;;  %v1242_v33 = vunpack.c.l.bf16 %v5632_v18  ;;  %v1243_v48 = vunpack.c.h.bf16 %v5632_v18 }
 0x54d   : > { %v1204_v12 = vadd.f32 %v1202_v13, %v1184_v19  ;;  %v1205_v16 = vadd.f32 %v1203_v37, %v1185_v55  ;;  %v5636_v7 = vpop.eup %5635  ;;  %v1262_v61 = vunpack.c.l.bf16 %v5634_v29  ;;  %v1263_v6 = vunpack.c.h.bf16 %v5634_v29  ;;  %v1528_v4 = vpop.permute.xlu0 %1527  ;;  %v8564_v37 = vld [vmem:[#allocation40_spill] sm:$0xff] }
 0x54e   : > { %v5638_v34 = vpop.eup %5637  ;;  %5651 = vtanh.bf16 %v1440_v60  ;;  %v1282_v43 = vunpack.c.l.bf16 %v5636_v7  ;;  %v1283_v14 = vunpack.c.h.bf16 %v5636_v7  ;;  %v1478_v32 = vadd.f32 %v1477_v50, %v7288_v24  ;;  %v1032_v60 = vpop.trf.xlu1 }
 0x54f   : > { %v1224_v21 = vadd.f32 %v1222_v39, %v1204_v12  ;;  %v1225_v11 = vadd.f32 %v1223_v17, %v1205_v16  ;;  %v5640_v57 = vpop.eup %5639  ;;  %5653 = vtanh.bf16 %v1460_v35  ;;  %v1479_v54 = vadd.f32 %v1477_v50, %v7169_v44  ;;  %v8565_v12 = vld [vmem:[#allocation83_spill] sm:$0xff]  ;;  %v8566_v39 = vld [vmem:[#allocation41_spill] sm:$0xff] }
 0x550   : > { %v1498_v49 = vadd.f32 %v1497_v23, %v7331_v31  ;;  %v1499_v56 = vadd.f32 %v1497_v23, %v7177_v42  ;;  %v1517_v26 = vrot.slane %v7359_v41, %v7294_v40  ;;  %v1302_v5 = vunpack.c.l.bf16 %v5638_v34  ;;  %v8567_v50 = vld [vmem:[#allocation85_spill] sm:$0xff] }
 0x551   : > { %v1244_v8 = vadd.f32 %v1242_v33, %v1224_v21  ;;  %v1245_v1 = vadd.f32 %v1243_v48, %v1225_v11  ;;  %v7367_v46 = vpop.eup %5641  ;;  %v1303_v59 = vunpack.c.h.bf16 %v5638_v34  ;;  %v1537_v45 = vrot.slane %v7359_v41, %v7296_v51  ;;  %v8568_v21 = vld [vmem:[#allocation84_spill] sm:$0xff] }
 0x552   : > { %v7375_v25 = vpop.eup %5643  ;;  %v1557_v24 = vrot.slane %v7359_v41, %v7298_v62  ;;  %v1518_v3 = vadd.f32 %v1517_v26, %v1508_v30  ;;  %v1577_v42 = vrot.slane %v7359_v41, %v7300_v10  ;;  %v1322_v47 = vunpack.c.l.bf16 %v5640_v57 }
 0x553   : > { %v1264_v58 = vadd.f32 %v1262_v61, %v1244_v8  ;;  %v1265_v0 = vadd.f32 %v1263_v6, %v1245_v1  ;;  %v7381_v44 = vpop.eup %5645  ;;  %v1323_v22 = vunpack.c.h.bf16 %v5640_v57  ;;  %v1480_v52 = vpack.c.bf16 %v1479_v54, %v1478_v32  ;;  %v8569_v32 = vld [vmem:[#allocation69_spill] sm:$0xff] }
 0x554   : > { %v1519_v28 = vadd.f32 %v1517_v26, %v7185_v15  ;;  %v7386_v36 = vpop.eup %5647  ;;  %v1500_v55 = vpack.c.bf16 %v1499_v56, %v1498_v49  ;;  %v1538_v13 = vadd.f32 %v1537_v45, %v1528_v4  ;;  %v1539_v18 = vadd.f32 %v1537_v45, %v8564_v37  ;;  %v8571_v26 = vld [vmem:[#allocation70_spill] sm:$0xff]  ;;  %v8572_v45 = vld [vmem:[#allocation31_spill] sm:$0xff]  ;;  %v8576_v37 = vld [vmem:[#allocation32_spill] sm:$0xff] }
 0x555   : > { %v1284_v31 = vadd.f32 %v1282_v43, %v1264_v58  ;;  %v1285_v20 = vadd.f32 %v1283_v14, %v1265_v0  ;;  %v7391_v16 = vadd.f32 %v1557_v24, %v8565_v12  ;;  %v7394_v17 = vadd.f32 %v1557_v24, %v8566_v39  ;;  %v7396_v7 = vpop.eup %5649  ;;  %v8570_v0 = vld [vmem:[#allocation42_spill] sm:$0xff]  ;;  %v8578_v39 = vld [vmem:[#allocation33_spill] sm:$0xff] }
 0x556   : > { %v1520_v35 = vpack.c.bf16 %v1519_v28, %v1518_v3  ;;  %v7400_v34 = vadd.f32 %v1577_v42, %v8567_v50  ;;  %v7403_v11 = vadd.f32 %v1577_v42, %v8568_v21  ;;  %5655 = vtanh.bf16 %v1480_v52  ;;  %v8574_v28 = vld [vmem:[#allocation44_spill] sm:$0xff]  ;;  %v7443_v50 = vpop.trf.xlu1 }
 0x557   : > { %v1304_v19 = vadd.f32 %v1302_v5, %v1284_v31  ;;  %v1305_v29 = vadd.f32 %v1303_v59, %v1285_v20  ;;  %v1735_v57 = vrot.slane %v1032_v60, %v7290_v2  ;;  %5657 = vtanh.bf16 %v1500_v55  ;;  %v8575_v55 = vld [vmem:[#allocation104_spill] sm:$0xff] }
 0x558   : > { %v1540_v23 = vpack.c.bf16 %v1539_v18, %v1538_v13  ;;  %v1755_v8 = vrot.slane %v1032_v60, %v7292_v63  ;;  %v1560_v43 = vpack.c.bf16 %v7394_v17, %v7391_v16  ;;  %v1597_v14 = vrot.slane %v7359_v41, %v7302_v9  ;;  %v7438_v13 = vpop.permute.xlu0 %2085 }
 0x559   : > { %v7408_v61 = vpop.eup %5651  ;;  %v7410_v6 = vadd.f32 %v1322_v47, %v1304_v19  ;;  %v7413_v1 = vadd.f32 %v1323_v22, %v1305_v29  ;;  %v1736_v54 = vadd.f32 %v1735_v57, %v8569_v32  ;;  %5659 = vtanh.bf16 %v1520_v35  ;;  %v8573_v22 = vld [vmem:[#allocation71_spill] sm:$0xff]  ;;  %v8577_v29 = vld [vmem:[#allocation72_spill] sm:$0xff] }
 0x55a   : > { %v7420_v49 = vpop.eup %5653  ;;  %v1580_v58 = vpack.c.bf16 %v7403_v11, %v7400_v34  ;;  %v1737_v56 = vadd.f32 %v1735_v57, %v8570_v0  ;;  %v1756_v5 = vadd.f32 %v1755_v8, %v8571_v26  ;;  %v7428_v59 = vrot.slane %v7359_v41, %v7304_v27  ;;  %v8579_v57 = vld [vmem:[#allocation73_spill] sm:$0xff] }
 0x55b   : > { %v1757_v24 = vadd.f32 %v1755_v8, %v8572_v45  ;;  %v1775_v31 = vrot.slane %v1032_v60, %v7294_v40  ;;  %v1795_v20 = vrot.slane %v1032_v60, %v7296_v51  ;;  %5661 = vtanh.bf16 %v1540_v23  ;;  %v8580_v8 = vld [vmem:[#allocation48_spill] sm:$0xff] }
 0x55c   : > { %v1738_v3 = vpack.c.bf16 %v1737_v56, %v1736_v54  ;;  %v1815_v42 = vrot.slane %v1032_v60, %v7298_v62  ;;  %v1835_v4 = vrot.slane %v1032_v60, %v7300_v10  ;;  %v1855_v56 = vrot.slane %v1032_v60, %v7302_v9 }
 0x55d   : > { %v1758_v47 = vpack.c.bf16 %v1757_v24, %v1756_v5  ;;  %v1776_v52 = vadd.f32 %v1775_v31, %v8573_v22  ;;  %v1777_v19 = vadd.f32 %v1775_v31, %v8574_v28  ;;  %v1796_v41 = vadd.f32 %v1795_v20, %v8575_v55 }
 0x55e   : > { %5663 = vtanh.bf16 %v1738_v3  ;;  %v1797_v18 = vadd.f32 %v1795_v20, %v8576_v37  ;;  %v1816_v12 = vadd.f32 %v1815_v42, %v8577_v29  ;;  %v1817_v35 = vadd.f32 %v1815_v42, %v8578_v39  ;;  %v8581_v20 = vld [vmem:[#allocation107_spill] sm:$0xff]  ;;  %v8582_v42 = vld [vmem:[#allocation34_spill] sm:$0xff] }
 0x55f   : > { %5665 = vtanh.bf16 %v1758_v47  ;;  %v1778_v21 = vpack.c.bf16 %v1777_v19, %v1776_v52  ;;  %v1836_v23 = vadd.f32 %v1835_v4, %v8579_v57  ;;  %v1837_v32 = vadd.f32 %v1835_v4, %v8580_v8  ;;  %v8583_v47 = vld [vmem:[#allocation75_spill] sm:$0xff]  ;;  %v8585_v19 = vld [vmem:[#allocation76_spill] sm:$0xff] }
 0x560   : > { %v1798_v54 = vpack.c.bf16 %v1797_v18, %v1796_v41  ;;  %v1818_v0 = vpack.c.bf16 %v1817_v35, %v1816_v12  ;;  %v1875_v26 = vrot.slane %v1032_v60, %v7304_v27  ;;  %v1895_v45 = vrot.slane %v7443_v50, %v7290_v2  ;;  %v8584_v60 = vld [vmem:[#allocation35_spill] sm:$0xff]  ;;  %v1588_v18 = vpop.permute.xlu0 %1587  ;;  %v8587_v12 = vld [vmem:[#allocation110_spill] sm:$0xff]  ;;  %v8588_v35 = vld [vmem:[#allocation36_spill] sm:$0xff] }
 0x561   : > { %5667 = vtanh.bf16 %v1778_v21  ;;  %v1838_v5 = vpack.c.bf16 %v1837_v32, %v1836_v23  ;;  %v1915_v24 = vrot.slane %v7443_v50, %v7292_v63  ;;  %v7453_v31 = vpop.eup %5655  ;;  %v1856_v3 = vadd.f32 %v1855_v56, %v8581_v20  ;;  %v8586_v41 = vld [vmem:[#allocation51_spill] sm:$0xff]  ;;  %v8590_v20 = vld [vmem:[#allocation78_spill] sm:$0xff] }
 0x562   : > { %5669 = vtanh.bf16 %v1798_v54  ;;  %v1857_v4 = vadd.f32 %v1855_v56, %v8582_v42  ;;  %v1876_v22 = vadd.f32 %v1875_v26, %v8583_v47  ;;  %v7458_v52 = vpop.eup %5657  ;;  %v1877_v28 = vadd.f32 %v1875_v26, %v8584_v60  ;;  %v8591_v42 = vld [vmem:[#allocation37_spill] sm:$0xff]  ;;  %v8592_v47 = vld [vmem:[#allocation80_spill] sm:$0xff]  ;;  %v8593_v60 = vld [vmem:[#allocation55_spill] sm:$0xff] }
 0x563   : > { %5671 = vtanh.bf16 %v1818_v0  ;;  %v1896_v55 = vadd.f32 %v1895_v45, %v8585_v19  ;;  %v1897_v37 = vadd.f32 %v1895_v45, %v8586_v41  ;;  %v1916_v39 = vadd.f32 %v1915_v24, %v8587_v12  ;;  %v8589_v0 = vld [vmem:[#allocation46_spill] sm:$0xff] }
 0x564   : > { %5673 = vtanh.bf16 %v1838_v5  ;;  %v1858_v29 = vpack.c.bf16 %v1857_v4, %v1856_v3  ;;  %v1917_v21 = vadd.f32 %v1915_v24, %v8588_v35  ;;  %v7465_v57 = vpop.eup %5659  ;;  %v7467_v23 = vadd.f32 %v1597_v14, %v1588_v18  ;;  %v8594_v19 = vld [vmem:[#allocation114_spill] sm:$0xff] }
 0x565   : > { %v1878_v8 = vpack.c.bf16 %v1877_v28, %v1876_v22  ;;  %v1935_v32 = vrot.slane %v7443_v50, %v7294_v40  ;;  %v1955_v54 = vrot.slane %v7443_v50, %v7296_v51  ;;  %v7474_v56 = vadd.f32 %v1597_v14, %v8589_v0  ;;  %v8595_v41 = vld [vmem:[#allocation74_spill] sm:$0xff]  ;;  %v8598_v0 = vld [vmem:[#allocation47_spill] sm:$0xff] }
 0x566   : > { %5675 = vtanh.bf16 %v1858_v29  ;;  %v1898_v26 = vpack.c.bf16 %v1897_v37, %v1896_v55  ;;  %v1975_v5 = vrot.slane %v7443_v50, %v7298_v62  ;;  %v7478_v45 = vpop.eup %5661  ;;  %v1918_v24 = vpack.c.bf16 %v1917_v21, %v1916_v39  ;;  %v8596_v37 = vld [vmem:[#allocation91_spill] sm:$0xff] }
 0x567   : > { %v1936_v3 = vadd.f32 %v1935_v32, %v8590_v20  ;;  %v1937_v4 = vadd.f32 %v1935_v32, %v8591_v42  ;;  %v1956_v22 = vadd.f32 %v1955_v54, %v8592_v47  ;;  %5677 = vtanh.bf16 %v1878_v8 }
 0x568   : > { %v1957_v28 = vadd.f32 %v1955_v54, %v8593_v60  ;;  %v1976_v14 = vadd.f32 %v1975_v5, %v8594_v19  ;;  %v1977_v18 = vadd.f32 %v1975_v5, %v8595_v41  ;;  %5679 = vtanh.bf16 %v1560_v43  ;;  %v7495_v54 = vpop.permute.xlu0 %2145  ;;  %v8599_v19 = vld [vmem:[#allocation117_spill] sm:$0xff]  ;;  %v8600_v41 = vld [vmem:[#allocation38_spill] sm:$0xff] }
 0x569   : > { %v5664_v55 = vpop.eup %5663  ;;  %v7491_v29 = vadd.f32 %v7428_v59, %v8596_v37  ;;  %v1938_v12 = vpack.c.bf16 %v1937_v4, %v1936_v3  ;;  %v1995_v39 = vrot.slane %v7443_v50, %v7300_v10  ;;  %5681 = vtanh.bf16 %v1898_v26 }
 0x56a   : > { %v5666_v35 = vpop.eup %5665  ;;  %v1740_v21 = vunpack.c.l.bf16 %v5664_v55  ;;  %v1741_v8 = vunpack.c.h.bf16 %v5664_v55  ;;  %v1958_v32 = vpack.c.bf16 %v1957_v28, %v1956_v22  ;;  %v7499_v5 = vadd.f32 %v7428_v59, %v8598_v0  ;;  %v7505_v28 = vpop.trf.xlu1 }
 0x56b   : > { %8597 = vst [vmem:[#allocation40_spill] sm:$0xff] %v7491_v29  ;;  %v1760_v16 = vunpack.c.l.bf16 %v5666_v35  ;;  %v1761_v17 = vunpack.c.h.bf16 %v5666_v35  ;;  %5683 = vtanh.bf16 %v1918_v24  ;;  %v1600_v20 = vpack.c.bf16 %v7474_v56, %v7467_v23 }
 0x56c   : > { %v5668_v43 = vpop.eup %5667  ;;  %5685 = vtanh.bf16 %v1938_v12  ;;  %v1978_v3 = vpack.c.bf16 %v1977_v18, %v1976_v14  ;;  %v2015_v42 = vrot.slane %v7443_v50, %v7302_v9  ;;  %v1996_v24 = vadd.f32 %v1995_v39, %v8599_v19  ;;  %v8602_v19 = vld [vmem:[#allocation77_spill] sm:$0xff] }
 0x56d   : > { %v5670_v26 = vpop.eup %5669  ;;  %v1762_v4 = vadd.f32 %v1760_v16, %v1740_v21  ;;  %v1763_v47 = vadd.f32 %v1761_v17, %v1741_v8  ;;  %v1780_v22 = vunpack.c.l.bf16 %v5668_v43  ;;  %v1781_v60 = vunpack.c.h.bf16 %v5668_v43  ;;  %v8601_v21 = vld [vmem:[#allocation127_spill] sm:$0xff]  ;;  %v7514_v16 = vpop.permute.xlu0 %2473 }
 0x56e   : > { %v5672_v59 = vpop.eup %5671  ;;  %5687 = vtanh.bf16 %v1958_v32  ;;  %v1997_v55 = vadd.f32 %v1995_v39, %v8600_v41  ;;  %v2035_v23 = vrot.slane %v7443_v50, %v7304_v27  ;;  %v1800_v37 = vunpack.c.l.bf16 %v5670_v26 }
 0x56f   : > { %v5674_v56 = vpop.eup %5673  ;;  %v1782_v14 = vadd.f32 %v1780_v22, %v1762_v4  ;;  %v1783_v18 = vadd.f32 %v1781_v60, %v1763_v47  ;;  %v1801_v12 = vunpack.c.h.bf16 %v5670_v26  ;;  %v1820_v35 = vunpack.c.l.bf16 %v5672_v59 }
 0x570   : > { %5689 = vtanh.bf16 %v1978_v3  ;;  %v2016_v8 = vadd.f32 %v2015_v42, %v8601_v21  ;;  %v2055_v0 = vrot.slane %v7505_v28, %v7290_v2  ;;  %v1821_v43 = vunpack.c.h.bf16 %v5672_v59  ;;  %v8603_v21 = vld [vmem:[#allocation79_spill] sm:$0xff] }
 0x571   : > { %v5676_v32 = vpop.eup %5675  ;;  %v1802_v17 = vadd.f32 %v1800_v37, %v1782_v14  ;;  %v1803_v39 = vadd.f32 %v1801_v12, %v1783_v18  ;;  %v2017_v50 = vadd.f32 %v2015_v42, %v8602_v19  ;;  %5691 = vtanh.bf16 %v1580_v58 }
 0x572   : > { %v1840_v26 = vunpack.c.l.bf16 %v5674_v56  ;;  %v1841_v4 = vunpack.c.h.bf16 %v5674_v56  ;;  %v5678_v47 = vpop.eup %5677  ;;  %v2036_v41 = vadd.f32 %v2035_v23, %v7346_v53  ;;  %v2037_v14 = vadd.f32 %v2035_v23, %v8603_v21 }
 0x573   : > { %v1822_v22 = vadd.f32 %v1820_v35, %v1802_v17  ;;  %v1823_v60 = vadd.f32 %v1821_v43, %v1803_v39  ;;  %v7524_v18 = vpop.eup %5679  ;;  %5693 = vtanh.bf16 %v1600_v20  ;;  %v1860_v42 = vunpack.c.l.bf16 %v5676_v32  ;;  %v7533_v20 = vpop.permute.xlu0 %3139  ;;  %v8605_v39 = vld [vmem:[#allocation39_spill] sm:$0xff] }
 0x574   : > { %8604 = vst [vmem:[#allocation83_spill] sm:$0xff] %v7524_v18  ;;  %v1861_v59 = vunpack.c.h.bf16 %v5676_v32  ;;  %v1998_v37 = vpack.c.bf16 %v1997_v55, %v1996_v24  ;;  %v5682_v34 = vpop.eup %5681  ;;  %v2018_v12 = vpack.c.bf16 %v2017_v50, %v2016_v8  ;;  %v2056_v19 = vadd.f32 %v2055_v0, %v7363_v38  ;;  %v8606_v50 = vld [vmem:[#allocation81_spill] sm:$0xff] }
 0x575   : > { %v1842_v11 = vadd.f32 %v1840_v26, %v1822_v22  ;;  %v1843_v58 = vadd.f32 %v1841_v4, %v1823_v60  ;;  %v1880_v48 = vunpack.c.l.bf16 %v5678_v47  ;;  %v1881_v35 = vunpack.c.h.bf16 %v5678_v47  ;;  %v8608_v60 = vld [vmem:[#allocation82_spill] sm:$0xff] }
 0x576   : > { %v5684_v56 = vpop.eup %5683  ;;  %v2075_v53 = vrot.slane %v7505_v28, %v7292_v63  ;;  %v2095_v23 = vrot.slane %v7505_v28, %v7294_v40  ;;  %v2038_v32 = vpack.c.bf16 %v2037_v14, %v2036_v41  ;;  %v2057_v8 = vadd.f32 %v2055_v0, %v8605_v39  ;;  %v8612_v39 = vld [vmem:[#allocation45_spill] sm:$0xff]  ;;  %v8624_v0 = vld [vmem:[#allocation99_spill] sm:$0xff] }
 0x577   : > { %v7531_v17 = vpop.eup %5685  ;;  %v1862_v24 = vadd.f32 %v1860_v42, %v1842_v11  ;;  %v1863_v55 = vadd.f32 %v1861_v59, %v1843_v58  ;;  %v1900_v43 = vunpack.c.l.bf16 %v5682_v34  ;;  %v1901_v38 = vunpack.c.h.bf16 %v5682_v34  ;;  %v8609_v59 = vld [vmem:[#allocation43_spill] sm:$0xff] }
 0x578   : > { %5695 = vtanh.bf16 %v1998_v37  ;;  %v2076_v26 = vadd.f32 %v2075_v53, %v8606_v50  ;;  %v2077_v21 = vadd.f32 %v2075_v53, %v8608_v60  ;;  %v1920_v3 = vunpack.c.l.bf16 %v5684_v56 }
 0x579   : > { %v7537_v4 = vpop.eup %5687  ;;  %v1882_v47 = vadd.f32 %v1880_v48, %v1862_v24  ;;  %v1883_v22 = vadd.f32 %v1881_v35, %v1863_v55  ;;  %5697 = vtanh.bf16 %v2018_v12  ;;  %v1921_v15 = vunpack.c.h.bf16 %v5684_v56  ;;  %v7553_v35 = vpop.permute.xlu0 %3179  ;;  %v8611_v24 = vld [vmem:[#allocation87_spill] sm:$0xff] }
 0x57a   : > { %8607 = vst [vmem:[#allocation41_spill] sm:$0xff] %v7537_v4  ;;  %v2096_v42 = vadd.f32 %v2095_v23, %v7438_v13  ;;  %v2097_v41 = vadd.f32 %v2095_v23, %v8609_v59  ;;  %5699 = vtanh.bf16 %v2038_v32  ;;  %v2058_v37 = vpack.c.bf16 %v2057_v8, %v2056_v19  ;;  %v1035_v13 = vpop.trf.xlu1  ;;  %v8623_v19 = vld [vmem:[#allocation53_spill] sm:$0xff] }
 0x57b   : > { %v7542_v14 = vpop.eup %5689  ;;  %v2115_v34 = vrot.slane %v7505_v28, %v7296_v51  ;;  %v1902_v48 = vadd.f32 %v1900_v43, %v1882_v47  ;;  %v2078_v11 = vpack.c.bf16 %v2077_v21, %v2076_v26  ;;  %v2135_v58 = vrot.slane %v7505_v28, %v7298_v62  ;;  %v8613_v43 = vld [vmem:[#allocation89_spill] sm:$0xff]  ;;  %v8614_v26 = vld [vmem:[#allocation86_spill] sm:$0xff] }
 0x57c   : > { %v2155_v12 = vrot.slane %v7505_v28, %v7300_v10  ;;  %v7551_v56 = vpop.eup %5691  ;;  %v1903_v53 = vadd.f32 %v1901_v38, %v1883_v22  ;;  %v2098_v32 = vpack.c.bf16 %v2097_v41, %v2096_v42  ;;  %5701 = vtanh.bf16 %v2058_v37 }
 0x57d   : > { %8610 = vst [vmem:[#allocation85_spill] sm:$0xff] %v7551_v56  ;;  %v2116_v55 = vadd.f32 %v2115_v34, %v8611_v24  ;;  %v2117_v8 = vadd.f32 %v2115_v34, %v8612_v39  ;;  %v2136_v50 = vadd.f32 %v2135_v58, %v8613_v43  ;;  %v2137_v47 = vadd.f32 %v2135_v58, %v8614_v26  ;;  %v8616_v24 = vld [vmem:[#allocation49_spill] sm:$0xff] }
 0x57e   : > { %v7561_v60 = vpop.eup %5693  ;;  %v2175_v38 = vrot.slane %v7505_v28, %v7302_v9  ;;  %v7567_v22 = vadd.f32 %v1920_v3, %v1902_v48  ;;  %5703 = vtanh.bf16 %v2078_v11  ;;  %v2156_v41 = vadd.f32 %v2155_v12, %v7495_v54  ;;  %v7577_v3 = vpop.trf.xlu1  ;;  %v8618_v54 = vld [vmem:[#allocation93_spill] sm:$0xff] }
 0x57f   : > { %8615 = vst [vmem:[#allocation84_spill] sm:$0xff] %v7561_v60  ;;  %v2118_v42 = vpack.c.bf16 %v2117_v8, %v2116_v55  ;;  %v2138_v34 = vpack.c.bf16 %v2137_v47, %v2136_v50  ;;  %v2157_v39 = vadd.f32 %v2155_v12, %v8616_v24  ;;  %v2483_v58 = vrot.slane %v1035_v13, %v7290_v2  ;;  %v2634_v11 = vpop.permute.xlu0 %2633  ;;  %v8619_v12 = vld [vmem:[#allocation88_spill] sm:$0xff]  ;;  %v8622_v24 = vld [vmem:[#allocation97_spill] sm:$0xff]  ;;  %v8629_v60 = vld [vmem:[#allocation95_spill] sm:$0xff] }
 0x580   : > { %v2503_v43 = vrot.slane %v1035_v13, %v7292_v63  ;;  %v7573_v26 = vadd.f32 %v1921_v15, %v1903_v53  ;;  %5705 = vtanh.bf16 %v2098_v32  ;;  %v2523_v37 = vrot.slane %v1035_v13, %v7294_v40  ;;  %v8621_v50 = vld [vmem:[#allocation52_spill] sm:$0xff] }
 0x581   : > { %v2543_v21 = vrot.slane %v1035_v13, %v7296_v51  ;;  %v7582_v55 = vadd.f32 %v2175_v38, %v8618_v54  ;;  %v7585_v8 = vadd.f32 %v2175_v38, %v8619_v12  ;;  %v7589_v15 = vrot.slane %v7505_v28, %v7304_v27  ;;  %v8625_v12 = vld [vmem:[#allocation54_spill] sm:$0xff] }
 0x582   : > { %v2484_v53 = vadd.f32 %v2483_v58, %v7514_v16  ;;  %5707 = vtanh.bf16 %v2118_v42  ;;  %v2485_v47 = vadd.f32 %v2483_v58, %v8621_v50  ;;  %v2504_v59 = vadd.f32 %v2503_v43, %v8622_v24  ;;  %v8627_v16 = vld [vmem:[#allocation101_spill] sm:$0xff]  ;;  %v8636_v24 = vld [vmem:[#allocation106_spill] sm:$0xff] }
 0x583   : > { %v7579_v48 = vpop.eup %5695  ;;  %v2505_v23 = vadd.f32 %v2503_v43, %v8623_v19  ;;  %5709 = vtanh.bf16 %v2138_v34  ;;  %v2158_v54 = vpack.c.bf16 %v2157_v39, %v2156_v41  ;;  %v2524_v38 = vadd.f32 %v2523_v37, %v8624_v0 }
 0x584   : > { %8617 = vst [vmem:[#allocation69_spill] sm:$0xff] %v7579_v48  ;;  %v7592_v32 = vpop.eup %5697  ;;  %v2525_v33 = vadd.f32 %v2523_v37, %v8625_v12  ;;  %v2486_v28 = vpack.c.bf16 %v2485_v47, %v2484_v53  ;;  %v2544_v4 = vadd.f32 %v2543_v21, %v8627_v16  ;;  %v7605_v58 = vadd.f32 %v7589_v15, %v8629_v60  ;;  %v8632_v60 = vld [vmem:[#allocation90_spill] sm:$0xff]  ;;  %v8635_v47 = vld [vmem:[#allocation57_spill] sm:$0xff]  ;;  %v8637_v12 = vld [vmem:[#allocation59_spill] sm:$0xff] }
 0x585   : > { %8620 = vst [vmem:[#allocation42_spill] sm:$0xff] %v7592_v32  ;;  %v7599_v30 = vpop.eup %5699  ;;  %v2506_v48 = vpack.c.bf16 %v2505_v23, %v2504_v59  ;;  %v8628_v32 = vld [vmem:[#allocation56_spill] sm:$0xff]  ;;  %v2563_v19 = vrot.slane %v1035_v13, %v7298_v62  ;;  %v2583_v41 = vrot.slane %v1035_v13, %v7300_v10  ;;  %v2603_v34 = vrot.slane %v1035_v13, %v7302_v9  ;;  %v7611_v23 = vpop.trf.xlu1 }
 0x586   : > { %8626 = vst [vmem:[#allocation70_spill] sm:$0xff] %v7599_v30  ;;  %v2545_v42 = vadd.f32 %v2543_v21, %v8628_v32  ;;  %v2526_v50 = vpack.c.bf16 %v2525_v33, %v2524_v38  ;;  %5711 = vtanh.bf16 %v2486_v28  ;;  %v2623_v39 = vrot.slane %v1035_v13, %v7304_v27  ;;  %8630 = vst [vmem:[#allocation31_spill] sm:$0xff] %v7611_v23  ;;  %v7613_v59 = vpop.permute.xlu0 %3239  ;;  %v8631_v21 = vld [vmem:[#allocation102_spill] sm:$0xff]  ;;  %v8633_v33 = vld [vmem:[#allocation103_spill] sm:$0xff] }
 0x587   : > { %5713 = vtanh.bf16 %v2506_v48  ;;  %v2564_v43 = vadd.f32 %v2563_v19, %v8631_v21  ;;  %v2565_v37 = vadd.f32 %v2563_v19, %v8632_v60  ;;  %v2584_v53 = vadd.f32 %v2583_v41, %v8633_v33  ;;  %v7618_v32 = vpop.eup %5701  ;;  %v8639_v48 = vld [vmem:[#allocation108_spill] sm:$0xff]  ;;  %v8640_v21 = vld [vmem:[#allocation94_spill] sm:$0xff]  ;;  %v8664_v30 = vld [vmem:[#allocation115_spill] sm:$0xff] }
 0x588   : > { %v2546_v0 = vpack.c.bf16 %v2545_v42, %v2544_v4  ;;  %8634 = vst [vmem:[#allocation71_spill] sm:$0xff] %v7618_v32  ;;  %5715 = vtanh.bf16 %v2526_v50  ;;  %v2585_v4 = vadd.f32 %v2583_v41, %v8635_v47  ;;  %v2604_v38 = vadd.f32 %v2603_v34, %v8636_v24  ;;  %v8643_v47 = vld [vmem:[#allocation112_spill] sm:$0xff] }
 0x589   : > { %v2605_v13 = vadd.f32 %v2603_v34, %v8637_v12  ;;  %v7623_v28 = vpop.eup %5703  ;;  %v2566_v16 = vpack.c.bf16 %v2565_v37, %v2564_v43  ;;  %v2624_v42 = vadd.f32 %v2623_v39, %v8639_v48  ;;  %v2625_v23 = vadd.f32 %v2623_v39, %v8640_v21  ;;  %v8642_v37 = vld [vmem:[#allocation62_spill] sm:$0xff]  ;;  %v7639_v24 = vpop.trf.xlu1 }
 0x58a   : > { %8638 = vst [vmem:[#allocation44_spill] sm:$0xff] %v7623_v28  ;;  %5717 = vtanh.bf16 %v2546_v0  ;;  %v2586_v19 = vpack.c.bf16 %v2585_v4, %v2584_v53  ;;  %v2643_v33 = vrot.slane %v7577_v3, %v7290_v2  ;;  %v2663_v50 = vrot.slane %v7577_v3, %v7292_v63  ;;  %v2694_v12 = vpop.permute.xlu0 %2693 }
 0x58b   : > { %v2606_v60 = vpack.c.bf16 %v2605_v13, %v2604_v38  ;;  %v7631_v41 = vpop.eup %5705  ;;  %5719 = vtanh.bf16 %v2158_v54  ;;  %v2626_v34 = vpack.c.bf16 %v2625_v23, %v2624_v42  ;;  %v2683_v0 = vrot.slane %v7577_v3, %v7294_v40  ;;  %v8645_v54 = vld [vmem:[#allocation63_spill] sm:$0xff]  ;;  %v8646_v13 = vld [vmem:[#allocation113_spill] sm:$0xff]  ;;  %v8647_v42 = vld [vmem:[#allocation98_spill] sm:$0xff] }
 0x58c   : > { %8641 = vst [vmem:[#allocation104_spill] sm:$0xff] %v7631_v41  ;;  %v2703_v43 = vrot.slane %v7577_v3, %v7296_v51  ;;  %5721 = vtanh.bf16 %v2566_v16  ;;  %v2644_v39 = vadd.f32 %v2643_v33, %v2634_v11  ;;  %v2645_v53 = vadd.f32 %v2643_v33, %v8642_v37  ;;  %v8649_v33 = vld [vmem:[#allocation66_spill] sm:$0xff] }
 0x58d   : > { %v2664_v4 = vadd.f32 %v2663_v50, %v8643_v47  ;;  %v7641_v38 = vpop.eup %5707  ;;  %5723 = vtanh.bf16 %v2586_v19  ;;  %v2665_v23 = vadd.f32 %v2663_v50, %v8645_v54  ;;  %v2684_v48 = vadd.f32 %v2683_v0, %v8646_v13  ;;  %v8650_v50 = vld [vmem:[#allocation50_spill] sm:$0xff]  ;;  %v7685_v32 = vpop.trf.xlu1 }
 0x58e   : > { %8644 = vst [vmem:[#allocation32_spill] sm:$0xff] %v7641_v38  ;;  %v2685_v21 = vadd.f32 %v2683_v0, %v8647_v42  ;;  %v7646_v41 = vpop.eup %5709  ;;  %5725 = vtanh.bf16 %v2606_v60  ;;  %v2646_v11 = vpack.c.bf16 %v2645_v53, %v2644_v39  ;;  %v2704_v16 = vadd.f32 %v2703_v43, %v2694_v12 }
 0x58f   : > { %8648 = vst [vmem:[#allocation72_spill] sm:$0xff] %v7646_v41  ;;  %v2705_v37 = vadd.f32 %v2703_v43, %v8649_v33  ;;  %5727 = vtanh.bf16 %v2626_v34  ;;  %v2666_v47 = vpack.c.bf16 %v2665_v23, %v2664_v4  ;;  %v2723_v38 = vrot.slane %v7577_v3, %v7298_v62  ;;  %v8651_v43 = vld [vmem:[#allocation118_spill] sm:$0xff]  ;;  %v8652_v4 = vld [vmem:[#allocation67_spill] sm:$0xff] }
 0x590   : > { %v3149_v19 = vrot.slane %v7639_v24, %v7290_v2  ;;  %v7655_v54 = vadd.f32 %v7589_v15, %v8650_v50  ;;  %5729 = vtanh.bf16 %v2646_v11  ;;  %v2686_v0 = vpack.c.bf16 %v2685_v21, %v2684_v48  ;;  %v8653_v33 = vld [vmem:[#allocation58_spill] sm:$0xff] }
 0x591   : > { %v3169_v60 = vrot.slane %v7639_v24, %v7292_v63  ;;  %v5712_v39 = vpop.eup %5711  ;;  %v2706_v53 = vpack.c.bf16 %v2705_v37, %v2704_v16  ;;  %v2724_v34 = vadd.f32 %v2723_v38, %v8651_v43  ;;  %v2725_v12 = vadd.f32 %v2723_v38, %v8652_v4  ;;  %v8654_v43 = vld [vmem:[#allocation105_spill] sm:$0xff]  ;;  %v8657_v38 = vld [vmem:[#allocation60_spill] sm:$0xff] }
 0x592   : > { %v3150_v23 = vadd.f32 %v3149_v19, %v7533_v20  ;;  %v5714_v13 = vpop.eup %5713  ;;  %v2488_v42 = vunpack.c.l.bf16 %v5712_v39  ;;  %5731 = vtanh.bf16 %v2666_v47  ;;  %v3151_v41 = vadd.f32 %v3149_v19, %v8653_v33 }
 0x593   : > { %v3189_v15 = vrot.slane %v7639_v24, %v7294_v40  ;;  %v7665_v48 = vpop.eup %5715  ;;  %v2489_v21 = vunpack.c.h.bf16 %v5712_v39  ;;  %v2508_v11 = vunpack.c.l.bf16 %v5714_v13  ;;  %v2509_v50 = vunpack.c.h.bf16 %v5714_v13 }
 0x594   : > { %v2726_v16 = vpack.c.bf16 %v2725_v12, %v2724_v34  ;;  %5733 = vtanh.bf16 %v2686_v0  ;;  %v3152_v20 = vpack.c.bf16 %v3151_v41, %v3150_v23  ;;  %v3170_v47 = vadd.f32 %v3169_v60, %v8654_v43  ;;  %v8656_v12 = vld [vmem:[#allocation92_spill] sm:$0xff] }
 0x595   : > { %v7667_v37 = vpop.eup %5717  ;;  %v2528_v4 = vunpack.c.l.bf16 %v7665_v48  ;;  %v2529_v33 = vunpack.c.h.bf16 %v7665_v48  ;;  %5735 = vtanh.bf16 %v2706_v53  ;;  %v2510_v34 = vadd.f32 %v2508_v11, %v2488_v42  ;;  %v8661_v43 = vld [vmem:[#allocation96_spill] sm:$0xff] }
 0x596   : > { %v7676_v39 = vpop.eup %5719  ;;  %v3171_v13 = vadd.f32 %v3169_v60, %v8656_v12  ;;  %v3190_v28 = vadd.f32 %v3189_v15, %v7553_v35  ;;  %v3191_v0 = vadd.f32 %v3189_v15, %v8657_v38  ;;  %v2511_v23 = vadd.f32 %v2509_v50, %v2489_v21 }
 0x597   : > { %8655 = vst [vmem:[#allocation33_spill] sm:$0xff] %v7676_v39  ;;  %v7681_v41 = vpop.eup %5721  ;;  %5737 = vtanh.bf16 %v2726_v16  ;;  %v3209_v35 = vrot.slane %v7639_v24, %v7296_v51  ;;  %v3229_v15 = vrot.slane %v7639_v24, %v7298_v62  ;;  %v3249_v21 = vrot.slane %v7639_v24, %v7300_v10  ;;  %v3300_v39 = vpop.permute.xlu0 %3299 }
 0x598   : > { %v7687_v53 = vpop.eup %5723  ;;  %5739 = vtanh.bf16 %v3152_v20  ;;  %v3172_v42 = vpack.c.bf16 %v3171_v13, %v3170_v47  ;;  %v3192_v48 = vpack.c.bf16 %v3191_v0, %v3190_v28  ;;  %v3269_v11 = vrot.slane %v7639_v24, %v7302_v9  ;;  %v8658_v28 = vld [vmem:[#allocation109_spill] sm:$0xff]  ;;  %v8660_v0 = vld [vmem:[#allocation111_spill] sm:$0xff] }
 0x599   : > { %v7691_v60 = vpop.eup %5725  ;;  %v3289_v50 = vrot.slane %v7639_v24, %v7304_v27  ;;  %v3210_v38 = vadd.f32 %v3209_v35, %v8658_v28  ;;  %v8659_v20 = vld [vmem:[#allocation61_spill] sm:$0xff]  ;;  %v3309_v12 = vrot.slane %v7685_v32, %v7290_v2  ;;  %v3230_v19 = vadd.f32 %v3229_v15, %v8660_v0  ;;  %v7712_v24 = vpop.trf.xlu1  ;;  %v8663_v27 = vld [vmem:[#allocation64_spill] sm:$0xff] }
 0x59a   : > { %v7701_v16 = vpop.eup %5727  ;;  %5741 = vtanh.bf16 %v3172_v42  ;;  %v3211_v47 = vadd.f32 %v3209_v35, %v8659_v20  ;;  %v3231_v51 = vadd.f32 %v3229_v15, %v8661_v43  ;;  %v3250_v62 = vadd.f32 %v3249_v21, %v7613_v59  ;;  %8662 = vst [vmem:[#allocation73_spill] sm:$0xff] %v7712_v24  ;;  %v8665_v20 = vld [vmem:[#allocation65_spill] sm:$0xff]  ;;  %v8667_v0 = vld [vmem:[#allocation100_spill] sm:$0xff] }
 0x59b   : > { %v7707_v13 = vpop.eup %5729  ;;  %5743 = vtanh.bf16 %v3192_v48  ;;  %v3251_v28 = vadd.f32 %v3249_v21, %v8663_v27  ;;  %v3270_v35 = vadd.f32 %v3269_v11, %v8664_v30  ;;  %v3271_v40 = vadd.f32 %v3269_v11, %v8665_v20  ;;  %v8666_v48 = vld [vmem:[#allocation116_spill] sm:$0xff] }
 0x59c   : > { %v3212_v42 = vpack.c.bf16 %v3211_v47, %v3210_v38  ;;  %v3232_v9 = vpack.c.bf16 %v3231_v51, %v3230_v19  ;;  %v3290_v56 = vadd.f32 %v3289_v50, %v8666_v48  ;;  %v3291_v18 = vadd.f32 %v3289_v50, %v8667_v0  ;;  %v8668_v24 = vld [vmem:[#allocation68_spill] sm:$0xff] }
 0x59d   : > { %v7717_v2 = vpop.eup %5731  ;;  %v3310_v43 = vadd.f32 %v3309_v12, %v3300_v39  ;;  %v3252_v59 = vpack.c.bf16 %v3251_v28, %v3250_v62  ;;  %v3272_v15 = vpack.c.bf16 %v3271_v40, %v3270_v35  ;;  %v3311_v29 = vadd.f32 %v3309_v12, %v8668_v24  ;;  %v2734_v47 = vpop.permute.xlu1 %2733 }
 0x59e   : > { %5745 = vtanh.bf16 %v3212_v42  ;;  %v2530_v27 = vadd.f32 %v2528_v4, %v2510_v34  ;;  %v2531_v21 = vadd.f32 %v2529_v33, %v2511_v23  ;;  %v3292_v30 = vpack.c.bf16 %v3291_v18, %v3290_v56 }
 0x59f   : > { %v7722_v38 = vpop.eup %5733  ;;  %5747 = vtanh.bf16 %v3232_v9  ;;  %v2568_v51 = vunpack.c.l.bf16 %v7681_v41  ;;  %v2569_v19 = vunpack.c.h.bf16 %v7681_v41  ;;  %v3312_v50 = vpack.c.bf16 %v3311_v29, %v3310_v43 }
 0x5a0   : > { %v7724_v11 = vpop.eup %5735  ;;  %5749 = vtanh.bf16 %v3252_v59  ;;  %v2588_v62 = vunpack.c.l.bf16 %v7687_v53  ;;  %v2589_v40 = vunpack.c.h.bf16 %v7687_v53  ;;  %v2608_v39 = vunpack.c.l.bf16 %v7691_v60  ;;  %v2738_v53 = vpop.permute.xlu0 %2737 }
 0x5a1   : > { %5751 = vtanh.bf16 %v3272_v15  ;;  %v2609_v9 = vunpack.c.h.bf16 %v7691_v60  ;;  %v2628_v18 = vunpack.c.l.bf16 %v7701_v16  ;;  %v2629_v56 = vunpack.c.h.bf16 %v7701_v16  ;;  %v3320_v41 = vpop.permute.xlu1 %3319 }
 0x5a2   : > { %v7731_v4 = vpop.eup %5737  ;;  %5753 = vtanh.bf16 %v3292_v30  ;;  %v2743_v23 = vrot.slane %v7577_v3, %v7300_v10  ;;  %v8669_v60 = vunpack.c.l.bf16 %v7667_v37  ;;  %v8670_v16 = vunpack.c.h.bf16 %v7667_v37 }
 0x5a3   : > { %v5740_v34 = vpop.eup %5739  ;;  %5755 = vtanh.bf16 %v3312_v50  ;;  %v2648_v30 = vunpack.c.l.bf16 %v7707_v13 }
 0x5a4   : > { %v2550_v24 = vadd.f32 %v8669_v60, %v2530_v27  ;;  %v2551_v42 = vadd.f32 %v8670_v16, %v2531_v21  ;;  %v2744_v48 = vadd.f32 %v2743_v23, %v2734_v47  ;;  %v2745_v0 = vadd.f32 %v2743_v23, %v2738_v53 }
 0x5a5   : > { %v5742_v28 = vpop.eup %5741  ;;  %v3154_v27 = vunpack.c.l.bf16 %v5740_v34  ;;  %v3155_v60 = vunpack.c.h.bf16 %v5740_v34  ;;  %v3329_v16 = vrot.slane %v7685_v32, %v7292_v63 }
 0x5a6   : > { %v5744_v43 = vpop.eup %5743  ;;  %v2570_v59 = vadd.f32 %v2568_v51, %v2550_v24  ;;  %v2571_v15 = vadd.f32 %v2569_v19, %v2551_v42  ;;  %v3174_v50 = vunpack.c.l.bf16 %v5742_v28  ;;  %v2746_v12 = vpack.c.bf16 %v2745_v0, %v2744_v48 }
 0x5a7   : > { %v3175_v29 = vunpack.c.h.bf16 %v5742_v28  ;;  %v3194_v35 = vunpack.c.l.bf16 %v5744_v43  ;;  %v3195_v51 = vunpack.c.h.bf16 %v5744_v43  ;;  %v2649_v42 = vunpack.c.h.bf16 %v7707_v13 }
 0x5a8   : > { %v2590_v37 = vadd.f32 %v2588_v62, %v2570_v59  ;;  %v2591_v21 = vadd.f32 %v2589_v40, %v2571_v15  ;;  %5757 = vtanh.bf16 %v2746_v12  ;;  %v3176_v47 = vadd.f32 %v3174_v50, %v3154_v27  ;;  %v3324_v27 = vpop.permute.xlu1 %3323 }
 0x5a9   : > { %v5746_v20 = vpop.eup %5745  ;;  %v3177_v23 = vadd.f32 %v3175_v29, %v3155_v60  ;;  %v2708_v28 = vunpack.c.l.bf16 %v7724_v11  ;;  %v2709_v12 = vunpack.c.h.bf16 %v7724_v11  ;;  %v3330_v50 = vadd.f32 %v3329_v16, %v3320_v41 }
 0x5aa   : > { %v5748_v19 = vpop.eup %5747  ;;  %v2610_v53 = vadd.f32 %v2608_v39, %v2590_v37  ;;  %v2611_v24 = vadd.f32 %v2609_v9, %v2591_v21  ;;  %v3214_v34 = vunpack.c.l.bf16 %v5746_v20  ;;  %v3215_v62 = vunpack.c.h.bf16 %v5746_v20 }
 0x5ab   : > { %v5750_v48 = vpop.eup %5749  ;;  %v3196_v40 = vadd.f32 %v3194_v35, %v3176_v47  ;;  %v3197_v0 = vadd.f32 %v3195_v51, %v3177_v23  ;;  %v3234_v29 = vunpack.c.l.bf16 %v5748_v19  ;;  %v3235_v43 = vunpack.c.h.bf16 %v5748_v19 }
 0x5ac   : > { %v5752_v59 = vpop.eup %5751  ;;  %v2630_v15 = vadd.f32 %v2628_v18, %v2610_v53  ;;  %v2631_v33 = vadd.f32 %v2629_v56, %v2611_v24  ;;  %v3254_v21 = vunpack.c.l.bf16 %v5750_v48  ;;  %v3255_v63 = vunpack.c.h.bf16 %v5750_v48 }
 0x5ad   : > { %v3216_v39 = vadd.f32 %v3214_v34, %v3196_v40  ;;  %v3217_v9 = vadd.f32 %v3215_v62, %v3197_v0  ;;  %v5754_v60 = vpop.eup %5753  ;;  %v3274_v20 = vunpack.c.l.bf16 %v5752_v59  ;;  %v3275_v35 = vunpack.c.h.bf16 %v5752_v59 }
 0x5ae   : > { %v2650_v13 = vadd.f32 %v2648_v30, %v2630_v15  ;;  %v2651_v37 = vadd.f32 %v2649_v42, %v2631_v33  ;;  %v5756_v10 = vpop.eup %5755  ;;  %v8671_v18 = vunpack.c.l.bf16 %v7717_v2  ;;  %v8672_v11 = vunpack.c.h.bf16 %v7717_v2 }
 0x5af   : > { %v3236_v47 = vadd.f32 %v3234_v29, %v3216_v39  ;;  %v3237_v23 = vadd.f32 %v3235_v43, %v3217_v9  ;;  %v3331_v51 = vadd.f32 %v3329_v16, %v3324_v27  ;;  %v8673_v19 = vunpack.c.l.bf16 %v7367_v46 }
 0x5b0   : > { %v2670_v56 = vadd.f32 %v8671_v18, %v2650_v13  ;;  %v2671_v41 = vadd.f32 %v8672_v11, %v2651_v37  ;;  %v3294_v30 = vunpack.c.l.bf16 %v5754_v60  ;;  %v1382_v42 = vunpack.c.l.bf16 %v7381_v44 }
 0x5b1   : > { %v1344_v53 = vadd.f32 %v8673_v19, %v7410_v6  ;;  %v3256_v33 = vadd.f32 %v3254_v21, %v3236_v47  ;;  %v3257_v24 = vadd.f32 %v3255_v63, %v3237_v23  ;;  %v8674_v48 = vunpack.c.l.bf16 %v7722_v38  ;;  %v2758_v19 = vpop.permute.xlu1 %2757 }
 0x5b2   : > { %v8675_v62 = vunpack.c.h.bf16 %v7722_v38  ;;  %v3332_v0 = vpack.c.bf16 %v3331_v51, %v3330_v50  ;;  %v8676_v2 = vunpack.c.l.bf16 %v7375_v25  ;;  %v3295_v16 = vunpack.c.h.bf16 %v5754_v60 }
 0x5b3   : > { %v2690_v34 = vadd.f32 %v8674_v48, %v2670_v56  ;;  %v3276_v15 = vadd.f32 %v3274_v20, %v3256_v33  ;;  %v3277_v29 = vadd.f32 %v3275_v35, %v3257_v24  ;;  %v1402_v6 = vunpack.c.l.bf16 %v7386_v36  ;;  %v5758_v43 = vpop.eup %5757 }
 0x5b4   : > { %v2691_v40 = vadd.f32 %v8675_v62, %v2671_v41  ;;  %v1364_v59 = vadd.f32 %v8676_v2, %v1344_v53  ;;  %v1422_v9 = vunpack.c.l.bf16 %v7396_v7  ;;  %v2748_v13 = vunpack.c.l.bf16 %v5758_v43 }
 0x5b5   : > { %v2710_v27 = vadd.f32 %v2708_v28, %v2690_v34  ;;  %v2749_v37 = vunpack.c.h.bf16 %v5758_v43  ;;  %v3296_v21 = vadd.f32 %v3294_v30, %v3276_v15  ;;  %5759 = vtanh.bf16 %v3332_v0  ;;  %v8688_v15 = vld [vmem:[#allocation85_spill] sm:$0xff] }
 0x5b6   : > { %v2711_v63 = vadd.f32 %v2709_v12, %v2691_v40  ;;  %v1384_v39 = vadd.f32 %v1382_v42, %v1364_v59  ;;  %v8677_v38 = vunpack.c.l.bf16 %v7731_v4  ;;  %v8678_v47 = vunpack.c.h.bf16 %v7731_v4 }
 0x5b7   : > { %v3297_v20 = vadd.f32 %v3295_v16, %v3277_v29  ;;  %v1981_v23 = vunpack.c.h.bf16 %v7542_v14  ;;  %v8679_v28 = vpack.c.bf16 %v7585_v8, %v7582_v55  ;;  %v3314_v12 = vunpack.c.l.bf16 %v5756_v10  ;;  %v2754_v8 = vpop.permute.xlu0 %2753 }
 0x5b8   : > { %v2730_v50 = vadd.f32 %v8677_v38, %v2710_v27  ;;  %v2731_v60 = vadd.f32 %v8678_v47, %v2711_v63  ;;  %v1404_v35 = vadd.f32 %v1402_v6, %v1384_v39  ;;  %v3315_v18 = vunpack.c.h.bf16 %v5756_v10  ;;  %v8689_v6 = vld [vmem:[#allocation84_spill] sm:$0xff] }
 0x5b9   : > { %5761 = vtanh.bf16 %v8679_v28  ;;  %v1442_v51 = vunpack.c.l.bf16 %v7408_v61  ;;  %v8680_v4 = vunpack.c.l.bf16 %v7531_v17  ;;  %v8681_v30 = vunpack.c.h.bf16 %v7531_v17 }
 0x5ba   : > { %v7778_v56 = vadd.f32 %v2748_v13, %v2730_v50  ;;  %v7780_v11 = vadd.f32 %v2749_v37, %v2731_v60  ;;  %v1424_v41 = vadd.f32 %v1422_v9, %v1404_v35  ;;  %v8682_v10 = vpack.c.bf16 %v7655_v54, %v7605_v58  ;;  %v8684_v54 = vld [vmem:[#allocation40_spill] sm:$0xff]  ;;  %v3340_v13 = vpop.permute.xlu1 %3339  ;;  %v8690_v37 = vld [vmem:[#allocation125_spill] sm:$0xff] }
 0x5bb   : > { %v1942_v53 = vadd.f32 %v8680_v4, %v7567_v22  ;;  %v7789_v33 = vadd.f32 %v8681_v30, %v7573_v26  ;;  %v1462_v55 = vunpack.c.l.bf16 %v7420_v49  ;;  %v3316_v24 = vadd.f32 %v3314_v12, %v3296_v21  ;;  %v8691_v21 = vld [vmem:[#allocation121_spill] sm:$0xff] }
 0x5bc   : > { %5763 = vtanh.bf16 %v8682_v10  ;;  %v3317_v42 = vadd.f32 %v3315_v18, %v3297_v20  ;;  %v1444_v48 = vadd.f32 %v1442_v51, %v1424_v41  ;;  %v8683_v34 = vunpack.c.h.bf16 %v7367_v46  ;;  %v8687_v46 = vld [vmem:[#allocation83_spill] sm:$0xff]  ;;  %v8692_v50 = vld [vmem:[#allocation41_spill] sm:$0xff] }
 0x5bd   : > { %v1482_v22 = vunpack.c.l.bf16 %v7453_v31  ;;  %v1502_v17 = vunpack.c.l.bf16 %v7458_v52  ;;  %v1522_v26 = vunpack.c.l.bf16 %v7465_v57  ;;  %v1542_v40 = vunpack.c.l.bf16 %v7478_v45 }
 0x5be   : > { %v1345_v62 = vadd.f32 %v8683_v34, %v7413_v1  ;;  %v1464_v58 = vadd.f32 %v1462_v55, %v1444_v48  ;;  %v8685_v0 = vpack.c.bf16 %v7499_v5, %v8684_v54  ;;  %v8686_v2 = vunpack.c.h.bf16 %v7375_v25  ;;  %v8694_v55 = vld [vmem:[#allocation69_spill] sm:$0xff] }
 0x5bf   : > { %v1383_v16 = vunpack.c.h.bf16 %v7381_v44  ;;  %v1562_v1 = vunpack.c.l.bf16 %v8687_v46  ;;  %v1582_v29 = vunpack.c.l.bf16 %v8688_v15  ;;  %v1602_v43 = vunpack.c.l.bf16 %v8689_v6 }
 0x5c0   : > { %5765 = vtanh.bf16 %v8685_v0  ;;  %v1365_v59 = vadd.f32 %v8686_v2, %v1345_v62  ;;  %v1403_v27 = vunpack.c.h.bf16 %v7386_v36  ;;  %v1484_v63 = vadd.f32 %v1482_v22, %v1464_v58  ;;  %v5760_v20 = vpop.eup %5759  ;;  %v3344_v36 = vpop.permute.xlu0 %3343 }
 0x5c1   : > { %v1423_v9 = vunpack.c.h.bf16 %v7396_v7  ;;  %v1443_v5 = vunpack.c.h.bf16 %v7408_v61  ;;  %v1463_v25 = vunpack.c.h.bf16 %v7420_v49  ;;  %v2763_v44 = vrot.slane %v7577_v3, %v8690_v37 }
 0x5c2   : > { %v1385_v39 = vadd.f32 %v1383_v16, %v1365_v59  ;;  %v3349_v38 = vrot.slane %v7685_v32, %v8691_v21  ;;  %v8693_v47 = vunpack.c.l.bf16 %v8692_v50  ;;  %v1504_v35 = vadd.f32 %v1502_v17, %v1484_v63  ;;  %v2774_v63 = vpop.permute.xlu1 %2773 }
 0x5c3   : > { %v1483_v7 = vunpack.c.h.bf16 %v7453_v31  ;;  %v1503_v61 = vunpack.c.h.bf16 %v7458_v52  ;;  %v2764_v12 = vadd.f32 %v2763_v44, %v2754_v8  ;;  %v2765_v18 = vadd.f32 %v2763_v44, %v2758_v19 }
 0x5c4   : > { %v1962_v60 = vadd.f32 %v8693_v47, %v1942_v53  ;;  %v1405_v28 = vadd.f32 %v1403_v27, %v1385_v39  ;;  %v3350_v49 = vadd.f32 %v3349_v38, %v3340_v13  ;;  %v3351_v41 = vadd.f32 %v3349_v38, %v3344_v36  ;;  %v7823_v51 = vpop.eup %5761  ;;  %v8698_v38 = vld [vmem:[#allocation71_spill] sm:$0xff] }
 0x5c5   : > { %v1524_v4 = vadd.f32 %v1522_v26, %v1504_v35  ;;  %v1523_v10 = vunpack.c.h.bf16 %v7465_v57  ;;  %v2000_v53 = vunpack.c.l.bf16 %v8694_v55  ;;  %v3334_v48 = vunpack.c.l.bf16 %v5760_v20  ;;  %v8696_v57 = vld [vmem:[#allocation42_spill] sm:$0xff] }
 0x5c6   : > { %v1425_v30 = vadd.f32 %v1423_v9, %v1405_v28  ;;  %v2766_v34 = vpack.c.bf16 %v2765_v18, %v2764_v12  ;;  %v3352_v62 = vpack.c.bf16 %v3351_v41, %v3350_v49  ;;  %v8695_v22 = vunpack.c.l.bf16 %v7542_v14  ;;  %v8703_v49 = vld [vmem:[#allocation126_spill] sm:$0xff] }
 0x5c7   : > { %v7829_v17 = vpop.eup %5763  ;;  %v3335_v52 = vunpack.c.h.bf16 %v5760_v20  ;;  %v1544_v19 = vadd.f32 %v1542_v40, %v1524_v4  ;;  %v1543_v58 = vunpack.c.h.bf16 %v7478_v45  ;;  %v1563_v26 = vunpack.c.h.bf16 %v8687_v46  ;;  %v8700_v20 = vld [vmem:[#allocation104_spill] sm:$0xff] }
 0x5c8   : > { %v1982_v31 = vadd.f32 %v8695_v22, %v1962_v60  ;;  %v1445_v8 = vadd.f32 %v1443_v5, %v1425_v30  ;;  %5767 = vtanh.bf16 %v2766_v34  ;;  %v2020_v0 = vunpack.c.l.bf16 %v8696_v57  ;;  %v8697_v5 = vld [vmem:[#allocation70_spill] sm:$0xff]  ;;  %v8705_v34 = vld [vmem:[#allocation33_spill] sm:$0xff] }
 0x5c9   : > { %v1564_v2 = vadd.f32 %v1562_v1, %v1544_v19  ;;  %v1583_v16 = vunpack.c.h.bf16 %v8688_v15  ;;  %v1603_v27 = vunpack.c.h.bf16 %v8689_v6  ;;  %v3336_v9 = vadd.f32 %v3334_v48, %v3316_v24  ;;  %v8699_v1 = vld [vmem:[#allocation44_spill] sm:$0xff] }
 0x5ca   : > { %v2002_v54 = vadd.f32 %v2000_v53, %v1982_v31  ;;  %v1465_v59 = vadd.f32 %v1463_v25, %v1445_v8  ;;  %5769 = vtanh.bf16 %v3352_v62  ;;  %v2040_v45 = vunpack.c.l.bf16 %v8697_v5  ;;  %v2778_v53 = vpop.permute.xlu1 %2777 }
 0x5cb   : > { %v7836_v39 = vpop.eup %5765  ;;  %v3337_v13 = vadd.f32 %v3335_v52, %v3317_v42  ;;  %v1584_v46 = vadd.f32 %v1582_v29, %v1564_v2  ;;  %v2060_v47 = vunpack.c.l.bf16 %v8698_v38  ;;  %v2080_v25 = vunpack.c.l.bf16 %v8699_v1 }
 0x5cc   : > { %v2022_v40 = vadd.f32 %v2020_v0, %v2002_v54  ;;  %v1485_v44 = vadd.f32 %v1483_v7, %v1465_v59  ;;  %v2100_v15 = vunpack.c.l.bf16 %v8700_v20  ;;  %v1622_v6 = vunpack.c.l.bf16 %v7836_v39  ;;  %v8702_v7 = vld [vmem:[#allocation32_spill] sm:$0xff] }
 0x5cd   : > { %v1604_v36 = vadd.f32 %v1602_v43, %v1584_v46  ;;  %v6187_v28 = vmov 83   ;;  %v8701_v24 = vunpack.c.h.bf16 %v8692_v50  ;;  %v1623_v42 = vunpack.c.h.bf16 %v7836_v39  ;;  %v8704_v50 = vld [vmem:[#allocation72_spill] sm:$0xff] }
 0x5ce   : > { %v2042_v60 = vadd.f32 %v2040_v45, %v2022_v40  ;;  %v1505_v35 = vadd.f32 %v1503_v61, %v1485_v44  ;;  %5574 = vset.pattern.permute.xlu1 %v6187_v28  ;;  %5573 = vset.pattern.permute.xlu0 %v6187_v28  ;;  %v2120_v18 = vunpack.c.l.bf16 %v8702_v7  ;;  %v2783_v41 = vrot.slane %v7577_v3, %v8703_v49 }
 0x5cf   : > { %v1963_v12 = vadd.f32 %v8701_v24, %v7789_v33  ;;  %v1624_v4 = vadd.f32 %v1622_v6, %v1604_v36  ;;  %v2001_v30 = vunpack.c.h.bf16 %v8694_v55  ;;  %v2140_v33 = vunpack.c.l.bf16 %v8704_v50 }
 0x5d0   : > { %v2062_v29 = vadd.f32 %v2060_v47, %v2042_v60  ;;  %v1525_v43 = vadd.f32 %v1523_v10, %v1505_v35  ;;  %v2160_v62 = vunpack.c.l.bf16 %v8705_v34  ;;  %v2180_v22 = vunpack.c.l.bf16 %v7823_v51 }
 0x5d1   : > { %v1983_v61 = vadd.f32 %v1981_v23, %v1963_v12  ;;  %v4579_v31 = vadd.f32 -24.0, %v1624_v4  ;;  %v2021_v3 = vunpack.c.h.bf16 %v8696_v57  ;;  %v2784_v10 = vadd.f32 %v2783_v41, %v2774_v63  ;;  %v5570_v63 = vpop.permute.xlu1 %5569 }
 0x5d2   : > { %v2082_v48 = vadd.f32 %v2080_v25, %v2062_v29  ;;  %v1545_v52 = vadd.f32 %v1543_v58, %v1525_v43  ;;  %v2041_v14 = vunpack.c.h.bf16 %v8697_v5  ;;  %v2061_v23 = vunpack.c.h.bf16 %v8698_v38 }
 0x5d3   : > { %v2003_v19 = vadd.f32 %v2001_v30, %v1983_v61  ;;  %v5768_v55 = vpop.eup %5767  ;;  %v1628_v54 = vmul.f32 1.442695, %v4579_v31  ;;  %v2785_v59 = vadd.f32 %v2783_v41, %v2778_v53  ;;  %v2081_v46 = vunpack.c.h.bf16 %v8699_v1 }
 0x5d4   : > { %v2102_v8 = vadd.f32 %v2100_v15, %v2082_v48  ;;  %v1565_v0 = vadd.f32 %v1563_v26, %v1545_v52  ;;  %v2768_v39 = vunpack.c.l.bf16 %v5768_v55  ;;  %v2769_v40 = vunpack.c.h.bf16 %v5768_v55 }
 0x5d5   : > { %v2023_v2 = vadd.f32 %v2021_v3, %v2003_v19  ;;  %v5770_v58 = vpop.eup %5769  ;;  %5771 = vpow2.f32 %v1628_v54  ;;  %v2786_v47 = vpack.c.bf16 %v2785_v59, %v2784_v10  ;;  %v5572_v1 = vunpack.i.h.bf16 %v5570_v63 }
 0x5d6   : > { %v2122_v45 = vadd.f32 %v2120_v18, %v2102_v8  ;;  %v1585_v44 = vadd.f32 %v1583_v16, %v1565_v0  ;;  %v2770_v5 = vadd.f32 %v2768_v39, %v7778_v56  ;;  %v2771_v38 = vadd.f32 %v2769_v40, %v7780_v11  ;;  %v8707_v39 = vld [vmem:[#allocation29_spill] sm:$0xff] }
 0x5d7   : > { %v2043_v57 = vadd.f32 %v2041_v14, %v2023_v2  ;;  %v3354_v60 = vunpack.c.l.bf16 %v5770_v58  ;;  %v3355_v25 = vunpack.c.h.bf16 %v5770_v58  ;;  %5773 = vtanh.bf16 %v2786_v47  ;;  %v8706_v2 = vld [vmem:[#allocation28_spill] sm:$0xff] }
 0x5d8   : > { %v1605_v26 = vadd.f32 %v1603_v27, %v1585_v44  ;;  %v2142_v15 = vadd.f32 %v2140_v33, %v2122_v45  ;;  %v5571_v28 = vunpack.i.l.bf16 %v5570_v63  ;;  %v2101_v29 = vunpack.c.h.bf16 %v8700_v20 }
 0x5d9   : > { %v2063_v36 = vadd.f32 %v2061_v23, %v2043_v57  ;;  %v7862_v6 = vadd.f32 %v3354_v60, %v3336_v9  ;;  %v7864_v35 = vadd.f32 %v3355_v25, %v3337_v13  ;;  %v2200_v56 = vunpack.c.l.bf16 %v7829_v17 }
 0x5da   : > { %v1625_v16 = vadd.f32 %v1623_v42, %v1605_v26  ;;  %v2162_v24 = vadd.f32 %v2160_v62, %v2142_v15  ;;  %v7868_v11 = vpack.c.bf16 %v5572_v1, %v5571_v28  ;;  %v2121_v4 = vunpack.c.h.bf16 %v8702_v7 }
 0x5db   : > { %v2083_v12 = vadd.f32 %v2081_v46, %v2063_v36  ;;  %v2141_v42 = vunpack.c.h.bf16 %v8704_v50  ;;  %v2161_v53 = vunpack.c.h.bf16 %v8705_v34  ;;  %v2181_v62 = vunpack.c.h.bf16 %v7823_v51 }
 0x5dc   : > { %v4580_v18 = vadd.f32 -24.0, %v1625_v16  ;;  %v2182_v27 = vadd.f32 %v2180_v22, %v2162_v24  ;;  %5050 = vmatprep.subr.bf16.mxu1 %v7868_v11  ;;  %v2201_v31 = vunpack.c.h.bf16 %v7829_v17  ;;  %v6188_v59 = vmov 64  }
 0x5dd   : > { %v2103_v41 = vadd.f32 %v2101_v29, %v2083_v12  ;;  %v6189_v40 = vmov 84   ;;  %v6190_v45 = vmov 65   ;;  %v6191_v46 = vmov 85  }
 0x5de   : > { %v1630_v9 = vmul.f32 1.442695, %v4580_v18  ;;  %v2202_v13 = vadd.f32 %v2200_v56, %v2182_v27  ;;  %v6192_v58 = vmov 66   ;;  %v6193_v44 = vmov 86  }
 0x5df   : > { %v2123_v43 = vadd.f32 %v2121_v4, %v2103_v41  ;;  %v7873_v61 = vpop.eup %5771  ;;  %v6194_v57 = vmov 67   ;;  %v6195_v47 = vmov 68   ;;  %v6196_v63 = vmov 87  }
 0x5e0   : > { %5775 = vpow2.f32 %v1630_v9  ;;  %v4583_v20 = vadd.f32 -24.0, %v2202_v13  ;;  %v1633_v48 = vsel %vm1632_vm2, %v7873_v61, 0.0  ;;  %v6199_v60 = vmov 70  }
 0x5e1   : > { %v2143_v30 = vadd.f32 %v2141_v42, %v2123_v43  ;;  %1634 = vadd.xlane.f32.xlu0 %v1633_v48  ;;  %v6200_v25 = vmov 69   ;;  %v6201_v26 = vmov 71   ;;  %v6202_v15 = vmov 91  }
 0x5e2   : > { %v2206_v7 = vmul.f32 1.442695, %v4583_v20  ;;  %v5774_v22 = vpop.eup %5773  ;;  %v6203_v36 = vmov 93   ;;  %v6204_v1 = vmov 94   ;;  %v6205_v28 = vmov 90  }
 0x5e3   : > { %v2163_v33 = vadd.f32 %v2161_v53, %v2143_v30  ;;  %v2788_v52 = vunpack.c.l.bf16 %v5774_v22  ;;  %v2789_v19 = vunpack.c.h.bf16 %v5774_v22  ;;  %v6206_v16 = vmov 95  }
 0x5e4   : > { %5777 = vpow2.f32 %v2206_v7  ;;  %v6207_v24 = vmov 92  }
 0x5e5   : > { %v2183_v50 = vadd.f32 %v2181_v62, %v2163_v33  ;;  %v7880_v8 = vadd.f32 %v2788_v52, %v2770_v5  ;;  %v7882_v10 = vadd.f32 %v2789_v19, %v2771_v38  ;;  %v6197_v5 = vmov 88   ;;  %v8709_v62 = vld [vmem:[#allocation122_spill] sm:$0xff] }
 0x5e6   : > { %v6198_v38 = vmov 89   ;;  %v3369_v22 = vrot.slane %v7685_v32, %v8709_v62 }
 0x5e7   : > { %v2203_v3 = vadd.f32 %v2201_v31, %v2183_v50 }
 0x5e9   : > { %v4584_v34 = vadd.f32 -24.0, %v2203_v3 }
 0x5ea   : > { %v7884_v14 = vpop.eup %5775 }
 0x5eb   : > { %v2208_v23 = vmul.f32 1.442695, %v4584_v34  ;;  %v1636_v55 = vsel %vm1632_vm2, %v7884_v14, 0.0 }
 0x5ec   : > { %1637 = vadd.xlane.f32.xlu1 %v1636_v55 }
 0x5ed   : > { %5779 = vpow2.f32 %v2208_v23 }
 0x5ee   : > { %v7888_v51 = vpop.eup %5777 }
 0x5ef   : > { %v2210_v17 = vsel %vm1632_vm2, %v7888_v51, 0.0 }
 0x5f0   : > { %2211 = vadd.xlane.f32.xlu0 %v2210_v17 }
 0x5f7   : > { %v7892_v54 = vpop.eup %5779 }
 0x5f8   : > { %v2213_v0 = vsel %vm1632_vm2, %v7892_v54, 0.0 }
 0x5f9   : > { %2214 = vadd.xlane.f32.xlu0 %v2213_v0  ;;  %v8710_v0 = vld [vmem:[#allocation124_spill] sm:$0xff] }
 0x5fd   : > { %3363 = vperm.xlu1 %5574, %v8706_v2  }
 0x601   : > { %5575 = vset.pattern.permute.xlu1 %v6188_v59 }
 0x602   : > { %2793 = vperm.xlu1 %5575, %v8707_v39  }
 0x606   : > { %5577 = vset.pattern.permute.xlu1 %v6189_v40 }
 0x607   : > { %3379 = vperm.xlu1 %5577, %v8707_v39  }
 0x60b   : > { %3383 = vperm.xlu1 %5577, %v8706_v2  }
 0x60f   : > { %3359 = vperm.xlu0 %5573, %v8707_v39   ;;  %5579 = vset.pattern.permute.xlu1 %v6190_v45 }
 0x610   : > { %2817 = vperm.xlu1 %5579, %v8706_v2  }
 0x613   : > { %5576 = vset.pattern.permute.xlu0 %v6188_v59 }
 0x614   : > { %2797 = vperm.xlu0 %5576, %v8706_v2   ;;  %5580 = vset.pattern.permute.xlu1 %v6191_v46 }
 0x615   : > { %3399 = vperm.xlu1 %5580, %v8707_v39  }
 0x618   : > { %5578 = vset.pattern.permute.xlu0 %v6190_v45 }
 0x619   : > { %2813 = vperm.xlu0 %5578, %v8707_v39   ;;  %5582 = vset.pattern.permute.xlu1 %v6192_v58 }
 0x61a   : > { %2833 = vperm.xlu1 %5582, %v8707_v39  }
 0x61d   : > { %5581 = vset.pattern.permute.xlu0 %v6191_v46 }
 0x61e   : > { %3403 = vperm.xlu0 %5581, %v8706_v2   ;;  %2837 = vperm.xlu1 %5582, %v8706_v2  }
 0x622   : > { %5583 = vset.pattern.permute.xlu0 %v6193_v44  ;;  %5584 = vset.pattern.permute.xlu1 %v6193_v44 }
 0x623   : > { %3419 = vperm.xlu0 %5583, %v8707_v39   ;;  %3423 = vperm.xlu1 %5584, %v8706_v2  }
 0x627   : > { %5586 = vset.pattern.permute.xlu0 %v6194_v57  ;;  %5585 = vset.pattern.permute.xlu1 %v6194_v57 }
 0x628   : > { %2857 = vperm.xlu0 %5586, %v8706_v2   ;;  %2853 = vperm.xlu1 %5585, %v8707_v39  }
 0x62c   : > { %5588 = vset.pattern.permute.xlu0 %v6195_v47  ;;  %5587 = vset.pattern.permute.xlu1 %v6196_v63 }
 0x62d   : > { %2873 = vperm.xlu0 %5588, %v8707_v39   ;;  %3439 = vperm.xlu1 %5587, %v8707_v39  }
 0x631   : > { %5591 = vset.pattern.permute.xlu0 %v6197_v5  ;;  %3443 = vperm.xlu1 %5587, %v8706_v2  }
 0x632   : > { %3463 = vperm.xlu0 %5591, %v8706_v2  }
 0x635   : > { %5589 = vset.pattern.permute.xlu1 %v6195_v47 }
 0x636   : > { %5593 = vset.pattern.permute.xlu0 %v6198_v38  ;;  %2877 = vperm.xlu1 %5589, %v8706_v2  }
 0x637   : > { %3479 = vperm.xlu0 %5593, %v8707_v39  }
 0x63a   : > { %5590 = vset.pattern.permute.xlu1 %v6197_v5 }
 0x63b   : > { %5596 = vset.pattern.permute.xlu0 %v6199_v60  ;;  %3459 = vperm.xlu1 %5590, %v8707_v39  }
 0x63c   : > { %2917 = vperm.xlu0 %5596, %v8706_v2  }
 0x63f   : > { %5592 = vset.pattern.permute.xlu1 %v6200_v25 }
 0x640   : > { %5598 = vset.pattern.permute.xlu0 %v6201_v26  ;;  %2893 = vperm.xlu1 %5592, %v8707_v39  }
 0x641   : > { %2933 = vperm.xlu0 %5598, %v8707_v39  }
 0x644   : > { %2897 = vperm.xlu1 %5592, %v8706_v2  }
 0x645   : > { %5601 = vset.pattern.permute.xlu0 %v6202_v15 }
 0x646   : > { %3523 = vperm.xlu0 %5601, %v8706_v2  }
 0x648   : > { %5594 = vset.pattern.permute.xlu1 %v6198_v38 }
 0x649   : > { %3483 = vperm.xlu1 %5594, %v8706_v2  }
 0x64a   : > { %5603 = vset.pattern.permute.xlu0 %v6203_v36 }
 0x64b   : > { %3559 = vperm.xlu0 %5603, %v8707_v39  }
 0x64d   : > { %5595 = vset.pattern.permute.xlu1 %v6199_v60 }
 0x64e   : > { %2913 = vperm.xlu1 %5595, %v8707_v39  }
 0x64f   : > { %5606 = vset.pattern.permute.xlu0 %v6204_v1 }
 0x650   : > { %3583 = vperm.xlu0 %5606, %v8706_v2  }
 0x652   : > { %5597 = vset.pattern.permute.xlu1 %v6205_v28 }
 0x653   : > { %3499 = vperm.xlu1 %5597, %v8707_v39  }
 0x654   : > { %5618 = vset.pattern.permute.xlu0 %v6206_v16 }
 0x657   : > { %3503 = vperm.xlu1 %5597, %v8706_v2  }
 0x65b   : > { %5599 = vset.pattern.permute.xlu1 %v6201_v26 }
 0x65c   : > { %2937 = vperm.xlu1 %5599, %v8706_v2  }
 0x660   : > { %5600 = vset.pattern.permute.xlu1 %v6202_v15 }
 0x661   : > { %3519 = vperm.xlu1 %5600, %v8707_v39  }
 0x665   : > { %5602 = vset.pattern.permute.xlu1 %v6207_v24 }
 0x666   : > { %3539 = vperm.xlu1 %5602, %v8707_v39  }
 0x66a   : > { %3543 = vperm.xlu1 %5602, %v8706_v2  }
 0x66e   : > { %5604 = vset.pattern.permute.xlu1 %v6203_v36  ;;  %v1635_v12 = vpop.xlane.xlu0 %1634 }
 0x66f   : > { %3563 = vperm.xlu1 %5604, %v8706_v2   ;;  %5781 = vrcp.f32 %v1635_v12 }
 0x673   : > { %5605 = vset.pattern.permute.xlu1 %v6204_v1 }
 0x674   : > { %3579 = vperm.xlu1 %5605, %v8707_v39  }
 0x678   : > { %5607 = vset.pattern.permute.xlu1 %v6206_v16 }
 0x679   : > { %3599 = vperm.xlu1 %5607, %v8707_v39   ;;  %v1638_v29 = vpop.xlane.xlu1 %1637  ;;  %v5782_v56 = vpop.eup %5781 }
 0x67a   : > { %5783 = vrcp.f32 %v1638_v29  ;;  %v1641_v18 = vmul.f32 %v5782_v56, %v7873_v61  ;;  %v8708_v61 = vld [vmem:[#allocation123_spill] sm:$0xff] }
 0x67b   : > { %v3389_v30 = vrot.slane %v7685_v32, %v8708_v61 }
 0x67c   : > { %4851 = vmatprep.mubr.msk.f32.mxu1 %vm1632_vm2, %v1641_v18 }
 0x67d   : > { %3603 = vperm.xlu1 %5607, %v8706_v2   ;;  %v3364_v27 = vpop.permute.xlu1 %3363  ;;  %v2212_v41 = vpop.xlane.xlu0 %2211  ;;  %v3409_v2 = vrot.slane %v7685_v32, %v8710_v0 }
 0x67e   : > { %5785 = vrcp.f32 %v2212_v41  ;;  %v3371_v52 = vadd.f32 %v3369_v22, %v3364_v27 }
 0x681   : > { %v7940_v4 = vpop.permute.xlu1 %2793 }
 0x684   : > { %v5784_v9 = vpop.eup %5783 }
 0x685   : > { %v1642_v13 = vmul.f32 %v5784_v9, %v7884_v14  ;;  %v8711_v9 = vld [vmem:[#allocation119_spill] sm:$0xff] }
 0x686   : > { %v2215_v43 = vpop.xlane.xlu0 %2214  ;;  %v3380_v42 = vpop.permute.xlu1 %3379 }
 0x687   : > { %5787 = vrcp.f32 %v2215_v43  ;;  %4852 = vmatmul.mubr.msk.f32.vlgmr.msra.gmra.mrb[2].mxu1 %vm1632_vm2, %v1642_v13  ;;  %v3390_v7 = vadd.f32 %v3389_v30, %v3380_v42  ;;  %v8712_v13 = vld [vmem:[#allocation31_spill] sm:$0xff]  ;;  %v8713_v42 = vld [vmem:[#allocation120_spill] sm:$0xff] }
 0x688   : > { %v5786_v20 = vpop.eup %5785  ;;  %5052 = vmatpush3.bf16.msra.mxu1 %v7868_v11  ;;  %v2803_v43 = vrot.slane %v8712_v13, %v8711_v9 }
 0x689   : > { %v2218_v53 = vmul.f32 %v5786_v20, %v7888_v51  ;;  %v2823_v20 = vrot.slane %v8712_v13, %v8713_v42 }
 0x68a   : > { %v3384_v48 = vpop.permute.xlu1 %3383 }
 0x68b   : > { %v3391_v33 = vadd.f32 %v3389_v30, %v3384_v48  ;;  %4858 = vmatprep.mubr.msk.f32.mxu1 %vm1632_vm2, %v2218_v53  ;;  %v2804_v48 = vadd.f32 %v2803_v43, %v7940_v4  ;;  %v2883_v4 = vrot.slane %v8712_v13, %v8708_v61 }
 0x68d   : > { %v3392_v31 = vpack.c.bf16 %v3391_v33, %v3390_v7 }
 0x68e   : > { %v3360_v50 = vpop.permute.xlu0 %3359 }
 0x68f   : > { %v3370_v19 = vadd.f32 %v3369_v22, %v3360_v50  ;;  %v2818_v3 = vpop.permute.xlu1 %2817  ;;  %5789 = vtanh.bf16 %v3392_v31  ;;  %v2843_v50 = vrot.slane %v8712_v13, %v8691_v21 }
 0x690   : > { %v2825_v22 = vadd.f32 %v2823_v20, %v2818_v3 }
 0x691   : > { %v5788_v34 = vpop.eup %5787  ;;  %v3372_v11 = vpack.c.bf16 %v3371_v52, %v3370_v19 }
 0x692   : > { %v2219_v14 = vmul.f32 %v5788_v34, %v7892_v54 }
 0x693   : > { %5791 = vtanh.bf16 %v3372_v11  ;;  %v2798_v23 = vpop.permute.xlu0 %2797  ;;  %v2863_v11 = vrot.slane %v8712_v13, %v8709_v62 }
 0x694   : > { %4859 = vmatmul.mubr.msk.f32.vlgmr.msra.gmra.mrb[4].mxu1 %vm1632_vm2, %v2219_v14  ;;  %v3400_v55 = vpop.permute.xlu1 %3399  ;;  %v2805_v30 = vadd.f32 %v2803_v43, %v2798_v23  ;;  %v1136_v43 = vld [vmem:[%s6643_s10 + $0x20] sm:$0xff] }
 0x695   : > { %v3410_v45 = vadd.f32 %v3409_v2, %v3400_v55 }
 0x696   : > { %v2806_v31 = vpack.c.bf16 %v2805_v30, %v2804_v48 }
 0x698   : > { %v2814_v51 = vpop.permute.xlu0 %2813 }
 0x699   : > { %v2834_v17 = vpop.permute.xlu1 %2833  ;;  %v2824_v7 = vadd.f32 %v2823_v20, %v2814_v51 }
 0x69a   : > { %v5790_v59 = vpop.eup %5789  ;;  %v2844_v14 = vadd.f32 %v2843_v50, %v2834_v17 }
 0x69b   : > { %v3394_v47 = vunpack.c.l.bf16 %v5790_v59  ;;  %v3395_v63 = vunpack.c.h.bf16 %v5790_v59  ;;  %v2826_v19 = vpack.c.bf16 %v2825_v22, %v2824_v7 }
 0x69d   : > { %v3404_v39 = vpop.permute.xlu0 %3403  ;;  %v2838_v46 = vpop.permute.xlu1 %2837 }
 0x69e   : > { %v5792_v40 = vpop.eup %5791  ;;  %v3411_v58 = vadd.f32 %v3409_v2, %v3404_v39  ;;  %v2845_v34 = vadd.f32 %v2843_v50, %v2838_v46  ;;  %v2903_v39 = vrot.slane %v8712_v13, %v8710_v0  ;;  %v2923_v46 = vrot.slane %v8712_v13, %v8690_v37 }
 0x69f   : > { %v3374_v44 = vunpack.c.l.bf16 %v5792_v40  ;;  %v3375_v57 = vunpack.c.h.bf16 %v5792_v40 }
 0x6a0   : > { %v3412_v54 = vpack.c.bf16 %v3411_v58, %v3410_v45  ;;  %v2846_v3 = vpack.c.bf16 %v2845_v34, %v2844_v14 }
 0x6a1   : > { %v3376_v5 = vadd.f32 %v3374_v44, %v7862_v6  ;;  %v3377_v38 = vadd.f32 %v3375_v57, %v7864_v35 }
 0x6a2   : > { %5793 = vtanh.bf16 %v3412_v54  ;;  %v7957_v26 = vpop.permute.xlu1 %3423  ;;  %v7967_v6 = vpop.permute.xlu0 %3419 }
 0x6a3   : > { %v3396_v60 = vadd.f32 %v3394_v47, %v3376_v5  ;;  %v3397_v25 = vadd.f32 %v3395_v63, %v3377_v38  ;;  %5795 = vtanh.bf16 %v2806_v31  ;;  %v3429_v31 = vrot.slane %v7685_v32, %v8690_v37 }
 0x6a4   : > { %5797 = vtanh.bf16 %v2826_v19 }
 0x6a5   : > { %5799 = vtanh.bf16 %v2846_v3  ;;  %v3430_v14 = vadd.f32 %v3429_v31, %v7967_v6 }
 0x6a7   : > { %v2854_v15 = vpop.permute.xlu1 %2853  ;;  %v2858_v56 = vpop.permute.xlu0 %2857 }
 0x6a8   : > { %v2865_v23 = vadd.f32 %v2863_v11, %v2858_v56  ;;  %v2864_v51 = vadd.f32 %v2863_v11, %v2854_v15 }
 0x6aa   : > { %v2866_v40 = vpack.c.bf16 %v2865_v23, %v2864_v51  ;;  %v3449_v23 = vrot.slane %v7685_v32, %v8703_v49  ;;  %v8714_v32 = vld [vmem:[#allocation73_spill] sm:$0xff] }
 0x6ac   : > { %v7959_v1 = vpop.permute.xlu1 %3439  ;;  %v2874_v27 = vpop.permute.xlu0 %2873  ;;  %5801 = vtanh.bf16 %v2866_v40 }
 0x6ad   : > { %v5794_v36 = vpop.eup %5793  ;;  %v2884_v45 = vadd.f32 %v2883_v4, %v2874_v27  ;;  %v3450_v6 = vadd.f32 %v3449_v23, %v7959_v1 }
 0x6ae   : > { %v3414_v28 = vunpack.c.l.bf16 %v5794_v36  ;;  %v3415_v16 = vunpack.c.h.bf16 %v5794_v36  ;;  %v5796_v38 = vpop.eup %5795 }
 0x6af   : > { %v5798_v15 = vpop.eup %5797  ;;  %v2808_v36 = vunpack.c.l.bf16 %v5796_v38 }
 0x6b0   : > { %v7961_v24 = vadd.f32 %v3414_v28, %v3396_v60  ;;  %v7963_v12 = vadd.f32 %v3415_v16, %v3397_v25  ;;  %v7965_v29 = vpop.permute.xlu1 %3443  ;;  %v2809_v16 = vunpack.c.h.bf16 %v5796_v38  ;;  %v2828_v56 = vunpack.c.l.bf16 %v5798_v15  ;;  %v5800_v20 = vpop.eup %5799 }
 0x6b1   : > { %v7976_v33 = vpop.permute.xlu0 %3463  ;;  %v2829_v30 = vunpack.c.h.bf16 %v5798_v15  ;;  %v2810_v22 = vadd.f32 %v2808_v36, %v7880_v8  ;;  %v2848_v11 = vunpack.c.l.bf16 %v5800_v20  ;;  %v2849_v3 = vunpack.c.h.bf16 %v5800_v20 }
 0x6b2   : > { %v2811_v19 = vadd.f32 %v2809_v16, %v7882_v10  ;;  %v3451_v10 = vadd.f32 %v3449_v23, %v7965_v29  ;;  %v3509_v16 = vrot.slane %v8714_v32, %v8691_v21 }
 0x6b5   : > { %v2878_v35 = vpop.permute.xlu1 %2877 }
 0x6b6   : > { %v7984_v55 = vpop.permute.xlu0 %3479  ;;  %v2885_v59 = vadd.f32 %v2883_v4, %v2878_v35  ;;  %v2943_v35 = vrot.slane %v8712_v13, %v8703_v49  ;;  %v2830_v13 = vadd.f32 %v2828_v56, %v2810_v22  ;;  %v2831_v4 = vadd.f32 %v2829_v30, %v2811_v19  ;;  %v1132_v22 = vld [vmem:[%s6643_s10] sm:$0xff] }
 0x6b7   : > { %v5802_v50 = vpop.eup %5801 }
 0x6b8   : > { %v2886_v44 = vpack.c.bf16 %v2885_v59, %v2884_v45  ;;  %v2868_v59 = vunpack.c.l.bf16 %v5802_v50  ;;  %v2850_v45 = vadd.f32 %v2848_v11, %v2830_v13 }
 0x6ba   : > { %v7969_v18 = vpop.permute.xlu1 %3459  ;;  %5803 = vtanh.bf16 %v2886_v44 }
 0x6bb   : > { %v2918_v58 = vpop.permute.xlu0 %2917 }
 0x6bc   : > { %v2925_v63 = vadd.f32 %v2923_v46, %v2918_v58  ;;  %v3469_v58 = vrot.slane %v8714_v32, %v8711_v9 }
 0x6be   : > { %v3470_v29 = vadd.f32 %v3469_v58, %v7969_v18  ;;  %v3471_v1 = vadd.f32 %v3469_v58, %v7976_v33  ;;  %v3529_v18 = vrot.slane %v8714_v32, %v8709_v62 }
 0x6bf   : > { %v2894_v41 = vpop.permute.xlu1 %2893 }
 0x6c0   : > { %v2904_v57 = vadd.f32 %v2903_v39, %v2894_v41  ;;  %v2934_v28 = vpop.permute.xlu0 %2933  ;;  %v1135_v41 = vld [vmem:[%s6643_s10 + $0x18] sm:$0xff]  ;;  %v3472_v30 = vpack.c.bf16 %v3471_v1, %v3470_v29 }
 0x6c1   : > { %v5053_v7 = vpack.c.bf16 %v1136_v43, %v1135_v41 }
 0x6c3   : > { %v2898_v53 = vpop.permute.xlu1 %2897  ;;  %5054 = vmatprep.subr.bf16.mxu1 %v5053_v7 }
 0x6c4   : > { %v2905_v17 = vadd.f32 %v2903_v39, %v2898_v53  ;;  %v2944_v53 = vadd.f32 %v2943_v35, %v2934_v28  ;;  %5056 = vmatpush3.bf16.msra.mxu1 %v5053_v7  ;;  %v2869_v39 = vunpack.c.h.bf16 %v5802_v50  ;;  %v3489_v28 = vrot.slane %v8714_v32, %v8713_v42 }
 0x6c5   : > { %v5804_v51 = vpop.eup %5803  ;;  %v3524_v36 = vpop.permute.xlu0 %3523 }
 0x6c6   : > { %v2906_v5 = vpack.c.bf16 %v2905_v17, %v2904_v57  ;;  %v2851_v17 = vadd.f32 %v2849_v3, %v2831_v4  ;;  %v2888_v44 = vunpack.c.l.bf16 %v5804_v51  ;;  %v2889_v57 = vunpack.c.h.bf16 %v5804_v51 }
 0x6c7   : > { %v3490_v19 = vadd.f32 %v3489_v28, %v7984_v55  ;;  %v3531_v3 = vadd.f32 %v3529_v18, %v3524_v36 }
 0x6c8   : > { %v7980_v52 = vpop.permute.xlu1 %3483  ;;  %5805 = vtanh.bf16 %v2906_v5  ;;  %v3452_v5 = vpack.c.bf16 %v3451_v10, %v3450_v6  ;;  %v2871_v38 = vadd.f32 %v2869_v39, %v2851_v17 }
 0x6c9   : > { %v3491_v33 = vadd.f32 %v3489_v28, %v7980_v52 }
 0x6ca   : > { %v3560_v62 = vpop.permute.xlu0 %3559 }
 0x6cb   : > { %v3492_v51 = vpack.c.bf16 %v3491_v33, %v3490_v19 }
 0x6cd   : > { %v2914_v2 = vpop.permute.xlu1 %2913 }
 0x6ce   : > { %v2924_v54 = vadd.f32 %v2923_v46, %v2914_v2  ;;  %v3431_v2 = vadd.f32 %v3429_v31, %v7957_v26  ;;  %v1133_v31 = vld [vmem:[%s6643_s10 + $0x8] sm:$0xff] }
 0x6cf   : > { %v8027_v11 = vpack.c.bf16 %v1133_v31, %v1132_v22  ;;  %v3584_v58 = vpop.permute.xlu0 %3583 }
 0x6d0   : > { %v2926_v60 = vpack.c.bf16 %v2925_v63, %v2924_v54  ;;  %v3432_v46 = vpack.c.bf16 %v3431_v2, %v3430_v14  ;;  %v2870_v63 = vadd.f32 %v2868_v59, %v2850_v45 }
 0x6d2   : > { %v7992_v47 = vpop.permute.xlu1 %3499  ;;  %5807 = vtanh.bf16 %v2926_v60  ;;  %v2890_v56 = vadd.f32 %v2888_v44, %v2870_v63 }
 0x6d3   : > { %v5806_v40 = vpop.eup %5805 }
 0x6d4   : > { %v2908_v60 = vunpack.c.l.bf16 %v5806_v40  ;;  %v2909_v15 = vunpack.c.h.bf16 %v5806_v40 }
 0x6d6   : > { %v7994_v25 = vpop.permute.xlu1 %3503 }
 0x6d7   : > { %v3511_v7 = vadd.f32 %v3509_v16, %v7994_v25  ;;  %v3549_v25 = vrot.slane %v8714_v32, %v8708_v61  ;;  %v3589_v61 = vrot.slane %v8714_v32, %v8690_v37 }
 0x6d9   : > { %v3591_v29 = vadd.f32 %v3589_v61, %v3584_v58 }
 0x6db   : > { %v2938_v27 = vpop.permute.xlu1 %2937 }
 0x6dc   : > { %v2945_v48 = vadd.f32 %v2943_v35, %v2938_v27  ;;  %v1137_v35 = vld [vmem:[%s6643_s10 + $0x28] sm:$0xff]  ;;  %v2891_v27 = vadd.f32 %v2889_v57, %v2871_v38 }
 0x6dd   : > { %v5808_v54 = vpop.eup %5807  ;;  %4865 = vmatprep.subr.mxu1 %v1137_v35 }
 0x6de   : > { %v2946_v34 = vpack.c.bf16 %v2945_v48, %v2944_v53  ;;  %v2928_v41 = vunpack.c.l.bf16 %v5808_v54  ;;  %v2929_v43 = vunpack.c.h.bf16 %v5808_v54  ;;  %4866 = vmatpush3.msra.mxu1 %v1137_v35  ;;  %v2910_v53 = vadd.f32 %v2908_v60, %v2890_v56 }
 0x6df   : > { %v2911_v48 = vadd.f32 %v2909_v15, %v2891_v27  ;;  %5058 = vmatprep.subr.bf16.mxu1 %v8027_v11  ;;  %v3609_v35 = vrot.slane %v8714_v32, %v8703_v49 }
 0x6e0   : > { %5809 = vtanh.bf16 %v2946_v34  ;;  %v3520_v8 = vpop.permute.xlu1 %3519  ;;  %v3510_v34 = vadd.f32 %v3509_v16, %v7992_v47  ;;  %v2930_v4 = vadd.f32 %v2928_v41, %v2910_v53 }
 0x6e1   : > { %5811 = vtanh.bf16 %v3432_v46  ;;  %v3530_v13 = vadd.f32 %v3529_v18, %v3520_v8  ;;  %v2931_v23 = vadd.f32 %v2929_v43, %v2911_v48  ;;  %v3569_v8 = vrot.slane %v8714_v32, %v8710_v0 }
 0x6e2   : > { %5813 = vtanh.bf16 %v3452_v5  ;;  %v3512_v2 = vpack.c.bf16 %v3511_v7, %v3510_v34 }
 0x6e3   : > { %5815 = vtanh.bf16 %v3472_v30  ;;  %v3532_v10 = vpack.c.bf16 %v3531_v3, %v3530_v13  ;;  %v3570_v54 = vadd.f32 %v3569_v8, %v3560_v62 }
 0x6e4   : > { %5817 = vtanh.bf16 %v3492_v51 }
 0x6e5   : > { %v3540_v26 = vpop.permute.xlu1 %3539  ;;  %5819 = vtanh.bf16 %v3512_v2 }
 0x6e6   : > { %v3550_v46 = vadd.f32 %v3549_v25, %v3540_v26  ;;  %5821 = vtanh.bf16 %v3532_v10 }
 0x6e9   : > { %v3544_v20 = vpop.permute.xlu1 %3543 }
 0x6ea   : > { %v3551_v39 = vadd.f32 %v3549_v25, %v3544_v20 }
 0x6eb   : > { %v5810_v50 = vpop.eup %5809 }
 0x6ec   : > { %v2948_v14 = vunpack.c.l.bf16 %v5810_v50  ;;  %v2949_v52 = vunpack.c.h.bf16 %v5810_v50  ;;  %v5812_v17 = vpop.eup %5811  ;;  %v3552_v63 = vpack.c.bf16 %v3551_v39, %v3550_v46 }
 0x6ed   : > { %v5814_v0 = vpop.eup %5813  ;;  %v3434_v15 = vunpack.c.l.bf16 %v5812_v17  ;;  %v3435_v36 = vunpack.c.h.bf16 %v5812_v17 }
 0x6ee   : > { %v3564_v55 = vpop.permute.xlu1 %3563  ;;  %v2951_v59 = vadd.f32 %v2949_v52, %v2931_v23  ;;  %v2950_v47 = vadd.f32 %v2948_v14, %v2930_v4  ;;  %v5816_v37 = vpop.eup %5815  ;;  %v3454_v28 = vunpack.c.l.bf16 %v5814_v0  ;;  %v3455_v16 = vunpack.c.h.bf16 %v5814_v0 }
 0x6ef   : > { %v3571_v6 = vadd.f32 %v3569_v8, %v3564_v55  ;;  %v5818_v56 = vpop.eup %5817  ;;  %v3436_v27 = vadd.f32 %v3434_v15, %v7961_v24  ;;  %v3437_v41 = vadd.f32 %v3435_v36, %v7963_v12  ;;  %v3474_v43 = vunpack.c.l.bf16 %v5816_v37 }
 0x6f0   : > { %v4592_v40 = vadd.f32 -24.0, %v2951_v59  ;;  %v4591_v45 = vadd.f32 -24.0, %v2950_v47  ;;  %v5820_v33 = vpop.eup %5819  ;;  %v3475_v20 = vunpack.c.h.bf16 %v5816_v37  ;;  %v3494_v19 = vunpack.c.l.bf16 %v5818_v56 }
 0x6f1   : > { %v3572_v60 = vpack.c.bf16 %v3571_v6, %v3570_v54  ;;  %v5822_v48 = vpop.eup %5821  ;;  %v3456_v22 = vadd.f32 %v3454_v28, %v3436_v27  ;;  %v3457_v31 = vadd.f32 %v3455_v16, %v3437_v41  ;;  %v3495_v49 = vunpack.c.h.bf16 %v5818_v56 }
 0x6f2   : > { %v2956_v44 = vmul.f32 1.442695, %v4592_v40  ;;  %v2954_v57 = vmul.f32 1.442695, %v4591_v45  ;;  %v3514_v62 = vunpack.c.l.bf16 %v5820_v33  ;;  %v3515_v14 = vunpack.c.h.bf16 %v5820_v33 }
 0x6f3   : > { %v3580_v5 = vpop.permute.xlu1 %3579  ;;  %v3476_v12 = vadd.f32 %v3474_v43, %v3456_v22  ;;  %v3477_v13 = vadd.f32 %v3475_v20, %v3457_v31  ;;  %v3534_v3 = vunpack.c.l.bf16 %v5822_v48  ;;  %v3535_v51 = vunpack.c.h.bf16 %v5822_v48  ;;  %v1139_v48 = vld [vmem:[%s6643_s10 + $0x38] sm:$0xff] }
 0x6f4   : > { %v3590_v38 = vadd.f32 %v3589_v61, %v3580_v5  ;;  %5823 = vpow2.f32 %v2956_v44 }
 0x6f5   : > { %5825 = vpow2.f32 %v2954_v57  ;;  %v3496_v23 = vadd.f32 %v3494_v19, %v3476_v12  ;;  %v3497_v4 = vadd.f32 %v3495_v49, %v3477_v13 }
 0x6f6   : > { %5827 = vtanh.bf16 %v3552_v63  ;;  %v3592_v26 = vpack.c.bf16 %v3591_v29, %v3590_v38 }
 0x6f7   : > { %5829 = vtanh.bf16 %v3572_v60  ;;  %v3516_v2 = vadd.f32 %v3514_v62, %v3496_v23  ;;  %v3517_v55 = vadd.f32 %v3515_v14, %v3497_v4  ;;  %v8715_v60 = vld [vmem:[#allocation30_spill] sm:$0xff] }
 0x6f8   : > { %v3600_v1 = vpop.permute.xlu1 %3599  ;;  %5831 = vtanh.bf16 %v3592_v26 }
 0x6f9   : > { %v3610_v30 = vadd.f32 %v3609_v35, %v3600_v1  ;;  %v3536_v10 = vadd.f32 %v3534_v3, %v3516_v2  ;;  %v3537_v39 = vadd.f32 %v3535_v51, %v3517_v55  ;;  %v1140_v51 = vld [vmem:[%s6643_s10 + $0x40] sm:$0xff]  ;;  %v1142_v2 = vld [vmem:[%s6643_s10 + $0x50] sm:$0xff] }
 0x6fc   : > { %v3604_v18 = vpop.permute.xlu1 %3603 }
 0x6fd   : > { %v3611_v53 = vadd.f32 %v3609_v35, %v3604_v18  ;;  %v1134_v18 = vld [vmem:[%s6643_s10 + $0x10] sm:$0xff] }
 0x6fe   : > { %v8040_v7 = vpop.eup %5823 }
 0x6ff   : > { %v8042_v50 = vpop.eup %5825  ;;  %v3612_v32 = vpack.c.bf16 %v3611_v53, %v3610_v30  ;;  %v2961_v24 = vsel %vm1632_vm2, %v8040_v7, 0.0  ;;  %v1138_v53 = vld [vmem:[%s6643_s10 + $0x30] sm:$0xff] }
 0x700   : > { %2962 = vadd.xlane.f32.xlu1 %v2961_v24  ;;  %v2958_v34 = vsel %vm1632_vm2, %v8042_v50, 0.0  ;;  %v5065_v49 = vpack.c.bf16 %v1139_v48, %v1138_v53  ;;  %v3865_v53 = vld [vmem:[%s6648_s27 + $0x30] sm:$0xff] }
 0x701   : > { %5833 = vtanh.bf16 %v3612_v32  ;;  %2959 = vadd.xlane.f32.xlu0 %v2958_v34  ;;  %v5828_v52 = vpop.eup %5827 }
 0x702   : > { %v5830_v25 = vpop.eup %5829  ;;  %v3554_v59 = vunpack.c.l.bf16 %v5828_v52  ;;  %v3555_v47 = vunpack.c.h.bf16 %v5828_v52 }
 0x703   : > { %v5832_v8 = vpop.eup %5831  ;;  %v3574_v40 = vunpack.c.l.bf16 %v5830_v25  ;;  %v3575_v45 = vunpack.c.h.bf16 %v5830_v25  ;;  %v1141_v25 = vld [vmem:[%s6643_s10 + $0x48] sm:$0xff] }
 0x704   : > { %v3556_v46 = vadd.f32 %v3554_v59, %v3536_v10  ;;  %v3557_v6 = vadd.f32 %v3555_v47, %v3537_v39  ;;  %v3594_v17 = vunpack.c.l.bf16 %v5832_v8  ;;  %v3595_v61 = vunpack.c.h.bf16 %v5832_v8  ;;  %v1143_v8 = vld [vmem:[%s6643_s10 + $0x58] sm:$0xff] }
 0x705   : > { %v5073_v55 = vpack.c.bf16 %v1142_v2, %v1141_v25  ;;  %v3880_v25 = vld [vmem:[%s6648_s27 + $0xa8] sm:$0xff]  ;;  %v3879_v2 = vld [vmem:[%s6648_s27 + $0xa0] sm:$0xff] }
 0x706   : > { %v3576_v58 = vadd.f32 %v3574_v40, %v3556_v46  ;;  %v3577_v44 = vadd.f32 %v3575_v45, %v3557_v6  ;;  %v4603_v45 = vld [vmem:[%s8716_s25] ss:$0 sm:$0xff] }
 0x707   : > { %v5851_v46 = vld [vmem:[%s6668_s4 + $0x8] sm:$0xff] }
 0x708   : > { %v3596_v5 = vadd.f32 %v3594_v17, %v3576_v58  ;;  %v3597_v0 = vadd.f32 %v3595_v61, %v3577_v44  ;;  %v5852_v61 = vld [vmem:[%s6668_s4] sm:$0xff] }
 0x70c   : > { %v5834_v57 = vpop.eup %5833 }
 0x70d   : > { %v3614_v54 = vunpack.c.l.bf16 %v5834_v57  ;;  %v3615_v63 = vunpack.c.h.bf16 %v5834_v57 }
 0x70f   : > { %v3616_v38 = vadd.f32 %v3614_v54, %v3596_v5  ;;  %v3617_v29 = vadd.f32 %v3615_v63, %v3597_v0  ;;  %v3860_v5 = vld [vmem:[%s6648_s27 + $0x8] sm:$0xff]  ;;  %v3863_v0 = vld [vmem:[%s6648_s27 + $0x20] sm:$0xff] }
 0x711   : > { %5609 = vrot.lane.b32.xlu1 %v8715_v60, %s6208_s5  ;;  %v4597_v26 = vadd.f32 -24.0, %v3616_v38  ;;  %v4598_v15 = vadd.f32 -24.0, %v3617_v29  ;;  %v3859_v38 = vld [vmem:[%s6648_s27] sm:$0xff]  ;;  %v5077_v29 = vpack.c.bf16 %v3863_v0, %v3860_v5  ;;  %s5979_s5 = scalar_lea.vmem %s5978_s19, 512 }
 0x713   : > { %v3620_v36 = vmul.f32 1.442695, %v4597_v26  ;;  %v3622_v1 = vmul.f32 1.442695, %v4598_v15  ;;  %v3861_v26 = vld [vmem:[%s6648_s27 + $0x10] sm:$0xff]  ;;  %v3864_v15 = vld [vmem:[%s6648_s27 + $0x28] sm:$0xff] }
 0x715   : > { %5835 = vpow2.f32 %v3620_v36 }
 0x716   : > { %5837 = vpow2.f32 %v3622_v1  ;;  %v5101_v1 = vpack.c.bf16 %v3864_v15, %v3861_v26  ;;  %v4092_v26 = vld [vmem:[%s6664_s14 + $0x80] sm:$0xff]  ;;  %v4093_v15 = vld [vmem:[%s6664_s14 + $0x88] sm:$0xff] }
 0x71f   : > { %v5836_v37 = vpop.eup %5835 }
 0x720   : > { %v3624_v28 = vsel %vm1632_vm2, %v5836_v37, 0.0  ;;  %v5838_v16 = vpop.eup %5837 }
 0x721   : > { %3625 = vadd.xlane.f32.xlu0 %v3624_v28  ;;  %v3627_v35 = vsel %vm1632_vm2, %v5838_v16, 0.0 }
 0x725   : > { %3628 = vadd.xlane.f32.xlu0 %v3627_v35 }
 0x73b   : > { %5614 = vrot.lane.b32.xlu0 %v8715_v60, %s6209_s20  ;;  %v3862_v60 = vld [vmem:[%s6648_s27 + $0x18] sm:$0xff] }
 0x73c   : > { %v5079_v36 = vpack.c.bf16 %v3862_v60, %v3859_v38  ;;  %v3889_v38 = vld [vmem:[%s6648_s27 + $0xf0] sm:$0xff] }
 0x75a   : > { %v4853_v56 = vpop.f32.mrb[2].mxu1 }
 0x75b   : > { %v1715_v27 = vpop.f32.mrb[3].mxu1 }
 0x767   : > { %v4860_v41 = vpop.f32.mrb[4].mxu1 }
 0x768   : > { %v2300_v43 = vpop.f32.mrb[5].mxu1 }
 0x769   : > { %4867 = vmatprep.mubr.msk.f32.mxu1 %vm2309_vm3, %v2300_v43 }
 0x76a   : > { %4868 = vmatmul.mubr.msk.f32.vlgmr.msra.gmra.mrb[6].mxu1 %vm2309_vm3, %v4860_v41 }
 0x76b   : > { %4876 = vmatprep.mubr.msk.f32.mxu1 %vm2309_vm3, %v1715_v27  ;;  %5060 = vmatpush3.bf16.msra.mxu1 %v8027_v11 }
 0x76c   : > { %4874 = vmatprep.subr.mxu1 %v1134_v18 }
 0x76f   : > { %4875 = vmatpush3.msra.mxu1 %v1134_v18 }
 0x772   : > { %4877 = vmatmul.mubr.msk.f32.vlgmr.msra.gmra.mrb[6].mxu1 %vm2309_vm3, %v4853_v56 }
 0x78d   : > { %v2963_v33 = vpop.xlane.xlu1 %2962 }
 0x78e   : > { %v2960_v20 = vpop.xlane.xlu0 %2959  ;;  %5839 = vrcp.f32 %v2963_v33 }
 0x78f   : > { %5841 = vrcp.f32 %v2960_v20  ;;  %v3866_v20 = vld [vmem:[%s6648_s27 + $0x38] sm:$0xff] }
 0x791   : > { %v5610_v30 = vpop.permute.xlu1 %5609 }
 0x792   : > { %v5612_v22 = vunpack.i.h.bf16 %v5610_v30  ;;  %v5611_v31 = vunpack.i.l.bf16 %v5610_v30  ;;  %v3869_v30 = vld [vmem:[%s6648_s27 + $0x50] sm:$0xff] }
 0x793   : > { %v5081_v48 = vpack.c.bf16 %v3869_v30, %v3866_v20 }
 0x794   : > { %v5061_v19 = vpack.c.bf16 %v5612_v22, %v5611_v31  ;;  %v3868_v22 = vld [vmem:[%s6648_s27 + $0x48] sm:$0xff]  ;;  %v3867_v31 = vld [vmem:[%s6648_s27 + $0x40] sm:$0xff] }
 0x796   : > { %5062 = vmatprep.subr.bf16.mxu1 %v5061_v19 }
 0x797   : > { %5064 = vmatpush3.bf16.msra.mxu1 %v5061_v19  ;;  %v3870_v19 = vld [vmem:[%s6648_s27 + $0x58] sm:$0xff] }
 0x798   : > { %v5840_v32 = vpop.eup %5839  ;;  %5066 = vmatprep.subr.bf16.mxu1 %v5065_v49 }
 0x799   : > { %v5842_v11 = vpop.eup %5841  ;;  %v2967_v24 = vmul.f32 %v5840_v32, %v8040_v7  ;;  %v5083_v32 = vpack.c.bf16 %v3868_v22, %v3865_v53  ;;  %v4604_v53 = vld [vmem:[%s8718_s6] ss:$0 sm:$0xff] }
 0x79a   : > { %v2966_v12 = vmul.f32 %v5842_v11, %v8042_v50  ;;  %v5105_v11 = vpack.c.bf16 %v3870_v19, %v3867_v31 }
 0x79c   : > { %4883 = vmatprep.mubr.msk.f32.mxu1 %vm1632_vm2, %v2966_v12  ;;  %v3875_v12 = vld [vmem:[%s6648_s27 + $0x80] sm:$0xff] }
 0x79d   : > { %4884 = vmatmul.mubr.msk.f32.vlgmr.msra.gmra.mrb[8].mxu1 %vm1632_vm2, %v2967_v24  ;;  %v3872_v24 = vld [vmem:[%s6648_s27 + $0x68] sm:$0xff] }
 0x79e   : > { %5068 = vmatpush3.bf16.msra.mxu1 %v5065_v49  ;;  %v6210_v49 = vmov 0.0  }
 0x79f   : > { %4890 = vmatprep.subr.mxu1 %v1140_v51 }
 0x7a2   : > { %4891 = vmatpush3.msra.mxu1 %v1140_v51 }
 0x7a3   : > { %5074 = vmatprep.subr.bf16.mxu1 %v5073_v55 }
 0x7ae   : > { %v3626_v34 = vpop.xlane.xlu0 %3625 }
 0x7af   : > { %5843 = vrcp.f32 %v3626_v34  ;;  %v3871_v34 = vld [vmem:[%s6648_s27 + $0x60] sm:$0xff] }
 0x7b2   : > { %v3629_v13 = vpop.xlane.xlu0 %3628 }
 0x7b3   : > { %5845 = vrcp.f32 %v3629_v13  ;;  %v5085_v13 = vpack.c.bf16 %v3875_v12, %v3872_v24  ;;  %v4077_v24 = vld [vmem:[%s6664_s14 + $0x8] sm:$0xff]  ;;  %v4094_v12 = vld [vmem:[%s6664_s14 + $0x90] sm:$0xff] }
 0x7b6   : > { %v5615_v62 = vpop.permute.xlu0 %5614 }
 0x7b7   : > { %v5617_v14 = vunpack.i.h.bf16 %v5615_v62  ;;  %v5616_v52 = vunpack.i.l.bf16 %v5615_v62  ;;  %v3874_v62 = vld [vmem:[%s6648_s27 + $0x78] sm:$0xff] }
 0x7b9   : > { %v5844_v23 = vpop.eup %5843  ;;  %v5069_v4 = vpack.c.bf16 %v5617_v14, %v5616_v52  ;;  %v3873_v14 = vld [vmem:[%s6648_s27 + $0x70] sm:$0xff]  ;;  %v3876_v52 = vld [vmem:[%s6648_s27 + $0x88] sm:$0xff] }
 0x7ba   : > { %v3632_v7 = vmul.f32 %v5844_v23, %v5836_v37  ;;  %v5087_v23 = vpack.c.bf16 %v3874_v62, %v3871_v34  ;;  %v4110_v62 = vld [vmem:[%s6664_s14 + $0x110] sm:$0xff] }
 0x7bb   : > { %5070 = vmatprep.subr.bf16.mxu0 %v5069_v4 }
 0x7bc   : > { %5072 = vmatpush3.bf16.msra.mxu0 %v5069_v4  ;;  %4899 = vmatprep.mubr.msk.f32.mxu0 %vm1632_vm2, %v3632_v7  ;;  %v5109_v4 = vpack.c.bf16 %v3876_v52, %v3873_v14  ;;  %v3878_v7 = vld [vmem:[%s6648_s27 + $0x98] sm:$0xff] }
 0x7bd   : > { %v5846_v50 = vpop.eup %5845  ;;  %5078 = vmatprep.subr.bf16.mxu0 %v5077_v29  ;;  %v3892_v29 = vld [vmem:[%s6648_s27 + $0x108] sm:$0xff] }
 0x7be   : > { %v3633_v3 = vmul.f32 %v5846_v50, %v5838_v16  ;;  %v3881_v50 = vld [vmem:[%s6648_s27 + $0xb0] sm:$0xff] }
 0x7bf   : > { %v5089_v51 = vpack.c.bf16 %v3881_v50, %v3878_v7  ;;  %v4079_v7 = vld [vmem:[%s6664_s14 + $0x18] sm:$0xff] }
 0x7c0   : > { %4900 = vmatmul.mubr.msk.f32.vlgmr.msra.gmra.mrb[4].mxu0 %vm1632_vm2, %v3633_v3  ;;  %v3877_v3 = vld [vmem:[%s6648_s27 + $0x90] sm:$0xff] }
 0x7c1   : > { %5080 = vmatpush1.bf16.msra.mxu0 %v5079_v36  ;;  %3982 = vmatprep.mubr.f32.mxu0 %v6210_v49  ;;  %v4108_v36 = vld [vmem:[%s6664_s14 + $0x100] sm:$0xff] }
 0x7c2   : > { %5082 = vmatprep.subr.bf16.mxu0 %v5081_v48 }
 0x7c5   : > { %5084 = vmatpush1.bf16.msra.mxu0 %v5083_v32 }
 0x7c6   : > { %5086 = vmatprep.subr.bf16.mxu0 %v5085_v13  ;;  %v4095_v13 = vld [vmem:[%s6664_s14 + $0x98] sm:$0xff] }
 0x7c9   : > { %5088 = vmatpush1.bf16.msra.mxu0 %v5087_v23  ;;  %v5129_v23 = vpack.c.bf16 %v4095_v13, %v4094_v12  ;;  %v4107_v12 = vld [vmem:[%s6664_s14 + $0xf8] sm:$0xff]  ;;  %v4090_v13 = vld [vmem:[%s6664_s14 + $0x70] sm:$0xff] }
 0x7ca   : > { %5090 = vmatprep.subr.bf16.mxu0 %v5089_v51  ;;  %v4097_v51 = vld [vmem:[%s6664_s14 + $0xa8] sm:$0xff] }
 0x870   : > { %v4885_v59 = vpop.f32.mrb[8].mxu1 }
 0x871   : > { %v3046_v47 = vpop.f32.mrb[9].mxu1 }
 0x872   : > { %4892 = vmatprep.mubr.msk.f32.mxu1 %vm2309_vm3, %v3046_v47  ;;  %v3884_v47 = vld [vmem:[%s6648_s27 + $0xc8] sm:$0xff] }
 0x873   : > { %4893 = vmatmul.mubr.msk.f32.vlgmr.msra.gmra.mrb[6].mxu1 %vm2309_vm3, %v4885_v59 }
 0x874   : > { %5076 = vmatpush3.bf16.msra.mxu1 %v5073_v55  ;;  %v3882_v55 = vld [vmem:[%s6648_s27 + $0xb8] sm:$0xff] }
 0x875   : > { %4906 = vmatprep.subr.mxu1 %v1143_v8  ;;  %v5113_v59 = vpack.c.bf16 %v3882_v55, %v3879_v2  ;;  %v4113_v2 = vld [vmem:[%s6664_s14 + $0x128] sm:$0xff] }
 0x878   : > { %4907 = vmatpush3.msra.mxu1 %v1143_v8  ;;  %v3887_v8 = vld [vmem:[%s6648_s27 + $0xe0] sm:$0xff] }
 0x879   : > { %5102 = vmatprep.subr.bf16.mxu1 %v5101_v1 }
 0x893   : > { %v4901_v10 = vpop.f32.mrb[4].mxu0 }
 0x894   : > { %v3712_v39 = vpop.f32.mrb[5].mxu0 }
 0x895   : > { %4908 = vmatprep.mubr.msk.f32.mxu1 %vm2309_vm3, %v3712_v39  ;;  %v3888_v39 = vld [vmem:[%s6648_s27 + $0xe8] sm:$0xff] }
 0x896   : > { %4909 = vmatmul.mubr.msk.f32.vlgmr.msra.gmra.mrb[6].mxu1 %vm2309_vm3, %v4901_v10  ;;  %v3885_v10 = vld [vmem:[%s6648_s27 + $0xd0] sm:$0xff] }
 0x897   : > { %5104 = vmatpush3.bf16.msra.mxu1 %v5101_v1  ;;  %v4109_v1 = vld [vmem:[%s6664_s14 + $0x108] sm:$0xff] }
 0x898   : > { %5106 = vmatprep.subr.bf16.mxu1 %v5105_v11 }
 0x89b   : > { %5108 = vmatpush3.bf16.msra.mxu1 %v5105_v11  ;;  %v4076_v11 = vld [vmem:[%s6664_s14] sm:$0xff] }
 0x89c   : > { %5110 = vmatprep.subr.bf16.mxu1 %v5109_v4  ;;  %v5127_v52 = vpack.c.bf16 %v4077_v24, %v4076_v11  ;;  %v4106_v24 = vld [vmem:[%s6664_s14 + $0xf0] sm:$0xff] }
 0x89f   : > { %5112 = vmatpush3.bf16.msra.mxu1 %v5109_v4  ;;  %v4078_v4 = vld [vmem:[%s6664_s14 + $0x10] sm:$0xff] }
 0x8a0   : > { %5114 = vmatprep.subr.bf16.mxu1 %v5113_v59  ;;  %v5131_v55 = vpack.c.bf16 %v4079_v7, %v4078_v4 }
 0x8a3   : > { %5116 = vmatpush3.bf16.msra.mxu1 %v5113_v59 }
 0x969   : > { %v4910_v40 = vpop.f32.mrb[6].mxu1 }
 0x96a   : > { %v3805_v6 = vadd.f32 %v5851_v46, %v4910_v40  ;;  %v3793_v17 = vpop.f32.mrb[7].mxu1  ;;  %v5091_v40 = vpack.c.bf16 %v3880_v25, %v3877_v3  ;;  %v3883_v46 = vld [vmem:[%s6648_s27 + $0xc0] sm:$0xff] }
 0x96b   : > { %v3804_v58 = vadd.f32 %v5852_v61, %v3793_v17  ;;  %v5117_v17 = vpack.c.bf16 %v3888_v39, %v3885_v10  ;;  %v3890_v61 = vld [vmem:[%s6648_s27 + $0xf8] sm:$0xff]  ;;  %v4096_v3 = vld [vmem:[%s6664_s14 + $0xa0] sm:$0xff]  ;;  %v4098_v39 = vld [vmem:[%s6664_s14 + $0xb0] sm:$0xff] }
 0x96c   : > { %v8078_v44 = vadd.f32 %v4603_v45, %v3805_v6  ;;  %v3886_v6 = vld [vmem:[%s6648_s27 + $0xd8] sm:$0xff]  ;;  %5092 = vmatpush1.bf16.msra.mxu0 %v5091_v40  ;;  %v4112_v25 = vld [vmem:[%s6664_s14 + $0x120] sm:$0xff]  ;;  %v5133_v59 = vpack.c.bf16 %v4097_v51, %v4096_v3 }
 0x96d   : > { %v8080_v57 = vadd.f32 %v4603_v45, %v3804_v58  ;;  %v5093_v45 = vpack.c.bf16 %v3887_v8, %v3884_v47  ;;  %v3893_v58 = vld [vmem:[%s6648_s27 + $0x110] sm:$0xff]  ;;  %v5095_v5 = vpack.c.bf16 %v3886_v6, %v3883_v46  ;;  %5118 = vmatprep.subr.bf16.mxu1 %v5117_v17  ;;  %v4080_v47 = vld [vmem:[%s6664_s14 + $0x20] sm:$0xff]  ;;  %v4081_v8 = vld [vmem:[%s6664_s14 + $0x28] sm:$0xff]  ;;  %v5165_v10 = vpack.c.bf16 %v4113_v2, %v4112_v25 }
 0x96e   : > { %v3820_v54 = vsel %vm789_vm1, %v8078_v44, 0.0  ;;  %v5097_v0 = vpack.c.bf16 %v3893_v58, %v3890_v61  ;;  %5120 = vmatpush3.bf16.msra.mxu1 %v5117_v17  ;;  %v4099_v40 = vld [vmem:[%s6664_s14 + $0xb8] sm:$0xff]  ;;  %v5135_v46 = vpack.c.bf16 %v4081_v8, %v4080_v47  ;;  %v4082_v17 = vld [vmem:[%s6664_s14 + $0x30] sm:$0xff] }
 0x96f   : > { %3821 = vadd.xlane.f32.xlu0 %v3820_v54  ;;  %v3817_v63 = vsel %vm789_vm1, %v8080_v57, 0.0  ;;  %v3891_v54 = vld [vmem:[%s6648_s27 + $0x100] sm:$0xff]  ;;  %5094 = vmatprep.subr.bf16.mxu0 %v5093_v45  ;;  %v4115_v45 = vld [vmem:[%s6664_s14 + $0x138] sm:$0xff]  ;;  %v5137_v6 = vpack.c.bf16 %v4099_v40, %v4098_v39 }
 0x970   : > { %3818 = vadd.xlane.f32.xlu1 %v3817_v63  ;;  %v3894_v63 = vld [vmem:[%s6648_s27 + $0x118] sm:$0xff]  ;;  %5096 = vmatpush1.bf16.msra.mxu0 %v5095_v5  ;;  %s8720_s27 = scalar_lea.vmem %s8719_s23, %s6613_s24  ;;  %v4116_v5 = vld [vmem:[%s6664_s14 + $0x140] sm:$0xff] }
 0x971   : > { %v5121_v60 = vpack.c.bf16 %v3894_v63, %v3891_v54  ;;  %5098 = vmatprep.subr.bf16.mxu0 %v5097_v0  ;;  %v4605_v19 = vld [vmem:[%s8720_s27] ss:$0 sm:$0xff]  ;;  %v4083_v61 = vld [vmem:[%s6664_s14 + $0x38] sm:$0xff]  ;;  %v4101_v63 = vld [vmem:[%s6664_s14 + $0xc8] sm:$0xff] }
 0x972   : > { %v4100_v54 = vld [vmem:[%s6664_s14 + $0xc0] sm:$0xff]  ;;  %v4117_v0 = vld [vmem:[%s6664_s14 + $0x148] sm:$0xff] }
 0x973   : > { %5122 = vmatprep.subr.bf16.mxu1 %v5121_v60 }
 0x974   : > { %5124 = vmatpush3.bf16.msra.mxu1 %v5121_v60  ;;  %v4084_v60 = vld [vmem:[%s6664_s14 + $0x40] sm:$0xff] }
 0x9fc   : > { %v3822_v37 = vpop.xlane.xlu0 %3821 }
 0x9fd   : > { %v3824_v28 = vmul.f32 0.010416667, %v3822_v37  ;;  %v3819_v16 = vpop.xlane.xlu1 %3818  ;;  %v5099_v37 = vpack.c.bf16 %v3892_v29, %v3889_v38  ;;  %v5139_v38 = vpack.c.bf16 %v4083_v61, %v4082_v17  ;;  %v5141_v29 = vpack.c.bf16 %v4101_v63, %v4100_v54  ;;  %v4610_v54 = vld [vmem:[%s775_s22] ss:$0 sm:$0xff] }
 0x9fe   : > { %v3823_v35 = vmul.f32 0.010416667, %v3819_v16  ;;  %v5157_v16 = vpack.c.bf16 %v4109_v1, %v4108_v36  ;;  %v4102_v36 = vld [vmem:[%s6664_s14 + $0xd0] sm:$0xff]  ;;  %v4103_v1 = vld [vmem:[%s6664_s14 + $0xd8] sm:$0xff] }
 0x9ff   : > { %v8093_v56 = vsub.f32 %v8078_v44, %v3824_v28  ;;  %v5125_v28 = vpack.c.bf16 %v4093_v15, %v4092_v26  ;;  %5100 = vmatpush1.bf16.msra.mxu0 %v5099_v37  ;;  %v4085_v26 = vld [vmem:[%s6664_s14 + $0x48] sm:$0xff]  ;;  %v5173_v15 = vpack.c.bf16 %v4117_v0, %v4116_v5  ;;  %v4118_v37 = vld [vmem:[%s6664_s14 + $0x150] sm:$0xff] }
 0xa00   : > { %v8096_v27 = vsub.f32 %v8080_v57, %v3823_v35  ;;  %5158 = vmatprep.subr.bf16.mxu1 %v5157_v16 }
 0xa01   : > { %v3828_v41 = vmul.f32 %v8093_v56, %v8093_v56  ;;  %5126 = vmatprep.subr.bf16.mxu0 %v5125_v28  ;;  %v4119_v28 = vld [vmem:[%s6664_s14 + $0x158] sm:$0xff] }
 0xa02   : > { %v3827_v43 = vmul.f32 %v8096_v27, %v8096_v27 }
 0xa03   : > { %v3832_v18 = vsel %vm789_vm1, %v3828_v41, 0.0 }
 0xa04   : > { %3833 = vadd.xlane.f32.xlu0 %v3832_v18  ;;  %v3829_v33 = vsel %vm789_vm1, %v3827_v43, 0.0 }
 0xa05   : > { %3830 = vadd.xlane.f32.xlu1 %v3829_v33 }
 0xa91   : > { %v3834_v35 = vpop.xlane.xlu0 %3833 }
 0xa92   : > { %v3836_v41 = vmul.f32 0.010416667, %v3834_v35  ;;  %v3831_v43 = vpop.xlane.xlu1 %3830  ;;  %v5145_v35 = vpack.c.bf16 %v4103_v1, %v4102_v36 }
 0xa93   : > { %v3835_v18 = vmul.f32 0.010416667, %v3831_v43  ;;  %v4087_v43 = vld [vmem:[%s6664_s14 + $0x58] sm:$0xff] }
 0xa94   : > { %v3838_v33 = vadd.f32 1e-05, %v3836_v41  ;;  %v4086_v41 = vld [vmem:[%s6664_s14 + $0x50] sm:$0xff] }
 0xa95   : > { %v3837_v20 = vadd.f32 1e-05, %v3835_v18  ;;  %v5177_v18 = vpack.c.bf16 %v4119_v28, %v4118_v37 }
 0xa96   : > { %5847 = vrsqrt.f32 %v3838_v33  ;;  %v4104_v33 = vld [vmem:[%s6664_s14 + $0xe0] sm:$0xff] }
 0xa97   : > { %5849 = vrsqrt.f32 %v3837_v20  ;;  %v4105_v20 = vld [vmem:[%s6664_s14 + $0xe8] sm:$0xff] }
 0xaa0   : > { %v5848_v30 = vpop.eup %5847 }
 0xaa1   : > { %v5850_v48 = vpop.eup %5849  ;;  %v3842_v22 = vmul.f32 %v5848_v30, %v8093_v56  ;;  %v4111_v56 = vld [vmem:[%s6664_s14 + $0x118] sm:$0xff]  ;;  %v5147_v30 = vpack.c.bf16 %v4087_v43, %v4086_v41 }
 0xaa2   : > { %v3841_v31 = vmul.f32 %v5850_v48, %v8096_v27  ;;  %v5161_v50 = vpack.c.bf16 %v4111_v56, %v4110_v62  ;;  %v4088_v48 = vld [vmem:[%s6664_s14 + $0x60] sm:$0xff]  ;;  %v4091_v62 = vld [vmem:[%s6664_s14 + $0x78] sm:$0xff]  ;;  %v4122_v56 = vld [vmem:[%s6664_s14 + $0x170] sm:$0xff] }
 0xaa3   : > { %v3850_v32 = vmul.f32 %v4604_v53, %v3842_v22  ;;  %v4089_v22 = vld [vmem:[%s6664_s14 + $0x68] sm:$0xff] }
 0xaa4   : > { %v3849_v34 = vmul.f32 %v4604_v53, %v3841_v31  ;;  %v5149_v53 = vpack.c.bf16 %v4105_v20, %v4104_v33  ;;  %v4120_v31 = vld [vmem:[%s6664_s14 + $0x160] sm:$0xff] }
 0xaa5   : > { %v3858_v27 = vadd.f32 %v4605_v19, %v3850_v32  ;;  %v4121_v32 = vld [vmem:[%s6664_s14 + $0x168] sm:$0xff] }
 0xaa6   : > { %v3857_v14 = vadd.f32 %v4605_v19, %v3849_v34  ;;  %v5151_v19 = vpack.c.bf16 %v4089_v22, %v4088_v48  ;;  %v5181_v11 = vpack.c.bf16 %v4121_v32, %v4120_v31  ;;  %v5153_v34 = vpack.c.bf16 %v4107_v12, %v4106_v24 }
 0xaa8   : > { %4606 = vmatmul.mubr.msk.f32.vlgmr.msra.gmra.mrb[6].mxu0 %vm789_vm1, %v3857_v14  ;;  %4935 = vmatprep.mubr.msk.f32.mxu1 %vm789_vm1, %v3857_v14  ;;  %v5155_v14 = vpack.c.bf16 %v4091_v62, %v4090_v13 }
 0xaa9   : > { %4936 = vmatmul.mubr.msk.f32.vlgmr.msra.gmra.mrb[10].mxu1 %vm789_vm1, %v3858_v27  ;;  %3988 = vmatprep.mubr.f32.mxu0 %v6210_v49  ;;  %v4114_v49 = vld [vmem:[%s6664_s14 + $0x130] sm:$0xff] }
 0xaaa   : > { %5128 = vmatpush3.bf16.msra.mxu0 %v5127_v52  ;;  %5160 = vmatpush3.bf16.msra.mxu1 %v5157_v16  ;;  %v5169_v58 = vpack.c.bf16 %v4115_v45, %v4114_v49  ;;  %v5143_v16 = vpack.c.bf16 %v4085_v26, %v4084_v60  ;;  %v4123_v52 = vld [vmem:[%s6664_s14 + $0x178] sm:$0xff]  ;;  %s8217_s14 = scalar_lea.hbm %s8724_s29, %s4617_s7 }
 0xaab   : > { %5130 = vmatprep.subr.bf16.mxu0 %v5129_v23  ;;  %5162 = vmatprep.subr.bf16.mxu1 %v5161_v50  ;;  %v3895_v23 = vld [vmem:[%s6659_s21] sm:$0x7]  ;;  %s4299_s21 = sshll.u32 %s6668_s4, 4  ;;  %s8219_s21 = int_to_ptr.vmem [resolvable:$true] %s4299_s21 }
 0xaac   : > { %4607 = vmatmul.mubr.msk.f32.gmra.mrb[8].mxu0 %vm789_vm1, %v3858_v27  ;;  %v5185_v27 = vpack.c.bf16 %v4123_v52, %v4122_v56  ;;  %v3900_v4 = vrot.slane %v3895_v23, %v8711_v9  ;;  %v3904_v7 = vrot.slane %v3895_v23, %v8713_v42  ;;  %s5973_s9 = scalar_lea.vmem %s8219_s21, 256  ;;  %p5980_p3 = scmp.lt.s32.totalorder %s8219_s21, %s5978_s19 }
 0xaad   : > { %p5974_p6 = scmp.ne.s32.totalorder %s8219_s21, %s5973_s9  ;;  %p5981_p9 = scmp.lt.s32.totalorder %s5979_s5, %s5973_s9 }
 0xaae   : > { %5132 = vmatpush3.bf16.msra.mxu0 %v5131_v55  ;;  %5164 = vmatpush3.bf16.msra.mxu1 %v5161_v50  ;;  %v3908_v50 = vrot.slane %v3895_v23, %v8691_v21 }
 0xaaf   : > { %5134 = vmatprep.subr.bf16.mxu0 %v5133_v59  ;;  %5166 = vmatprep.subr.bf16.mxu1 %v5165_v10  ;;  %p5975_p1 = pnand %p5974_p6, %p8726_p0  ;;  %p5982_p2 = por %p5981_p9, %p5980_p3 }
 0xab1   : > { %p5976_p11 = pneg %p5975_p1 }
 0xab2   : > { %5136 = vmatpush3.bf16.msra.mxu0 %v5135_v46  ;;  %5168 = vmatpush3.bf16.msra.mxu1 %v5165_v10 }
 0xab3   : > { %5138 = vmatprep.subr.bf16.mxu0 %v5137_v6  ;;  %5170 = vmatprep.subr.bf16.mxu1 %v5169_v58  ;;  %p5983_p4 = pnand %p5982_p2, %p5976_p11 }
 0xab6   : > { %5140 = vmatpush3.bf16.msra.mxu0 %v5139_v38  ;;  %5172 = vmatpush3.bf16.msra.mxu1 %v5169_v58 }
 0xab7   : > { %5142 = vmatprep.subr.bf16.mxu0 %v5141_v29  ;;  %5174 = vmatprep.subr.bf16.mxu1 %v5173_v15 }
 0xaba   : > { %5144 = vmatpush3.bf16.msra.mxu0 %v5143_v16  ;;  %5176 = vmatpush3.bf16.msra.mxu1 %v5173_v15 }
 0xabb   : > { %5146 = vmatprep.subr.bf16.mxu0 %v5145_v35  ;;  %5178 = vmatprep.subr.bf16.mxu1 %v5177_v18 }
 0xabe   : > { %5148 = vmatpush3.bf16.msra.mxu0 %v5147_v30  ;;  %5180 = vmatpush3.bf16.msra.mxu1 %v5177_v18 }
 0xabf   : > { %5150 = vmatprep.subr.bf16.mxu0 %v5149_v53  ;;  %5182 = vmatprep.subr.bf16.mxu1 %v5181_v11 }
 0xac2   : > { %5152 = vmatpush3.bf16.msra.mxu0 %v5151_v19  ;;  %5184 = vmatpush3.bf16.msra.mxu1 %v5181_v11 }
 0xac3   : > { %5154 = vmatprep.subr.bf16.mxu0 %v5153_v34  ;;  %5186 = vmatprep.subr.bf16.mxu1 %v5185_v27 }
 0xac6   : > { %5156 = vmatpush3.bf16.msra.mxu0 %v5155_v14  ;;  %5188 = vmatpush3.bf16.msra.mxu1 %v5185_v27 }
 0xb7b   : > { %v3984_v3 = vpop.f32.mrb[6].mxu0 }
 0xb7c   : > { %v3985_v51 = vadd.f32 %v3984_v3, %v3900_v4  ;;  %v3986_v25 = vpop.f32.mrb[7].mxu0  ;;  %v4937_v2 = vpop.f32.mrb[10].mxu1 }
 0xb7d   : > { %v3987_v55 = vadd.f32 %v3986_v25, %v3904_v7  ;;  %v4067_v59 = vadd.f32 %v4937_v2, %v3908_v50  ;;  %v4061_v47 = vpop.f32.mrb[11].mxu1 }
 0xb7e   : > { %v4062_v8 = vadd.f32 %v4061_v47, %v3908_v50  ;;  %v4070_v40 = vmax.f32 %v3985_v51, 0.0 }
 0xb7f   : > { %v4071_v10 = vmax.f32 %v3987_v55, 0.0  ;;  %v3990_v39 = vpop.f32.mrb[8].mxu0  ;;  %v4075_v9 = vmax.f32 %v4067_v59, 0.0 }
 0xb80   : > { %v4072_v49 = vmax.f32 %v4062_v8, 0.0  ;;  %v3991_v45 = vadd.f32 %v3990_v39, %v3900_v4  ;;  %v3992_v46 = vpop.f32.mrb[9].mxu0 }
 0xb81   : > { %v3993_v6 = vadd.f32 %v3992_v46, %v3904_v7  ;;  %4195 = vmatprep.mubr.f32.mxu0 %v4071_v10 }
 0xb82   : > { %4196 = vmatmul.mubr.f32.vlgmr.msra.gmra.mrb[10].mxu0 %v4070_v40  ;;  %4970 = vmatprep.mubr.f32.mxu1 %v4072_v49  ;;  %v4073_v42 = vmax.f32 %v3991_v45, 0.0 }
 0xb83   : > { %v4074_v21 = vmax.f32 %v3993_v6, 0.0  ;;  %4971 = vmatmul.mubr.f32.vlgmr.msra.gmra.mrb[12].mxu1 %v4075_v9 }
 0xb85   : > { %4200 = vmatprep.mubr.f32.mxu0 %v4074_v21 }
 0xb86   : > { %4201 = vmatmul.mubr.f32.gmra.mrb[12].mxu0 %v4073_v42 }
 0xc55   : > { %v4742_v17 = vpop.f32.mrb[10].mxu0 }
 0xc56   : > { %v4743_v61 = vpop.f32.mrb[11].mxu0  ;;  %v4972_v58 = vpop.f32.mrb[12].mxu1 }
 0xc57   : > { %v4744_v63 = vadd.f32 %v4743_v61, %v4742_v17  ;;  %v4272_v5 = vpop.f32.mrb[13].mxu1 }
 0xc59   : > { %v4198_v0 = vadd.f32 %v4744_v63, %v4610_v54  ;;  %v4745_v38 = vpop.f32.mrb[12].mxu0 }
 0xc5a   : > { %v4746_v29 = vpop.f32.mrb[13].mxu0 }
 0xc5b   : > { %v4273_v60 = vadd.f32 %v4272_v5, %v4198_v0  ;;  %v4747_v26 = vadd.f32 %v4746_v29, %v4745_v38 }
 0xc5d   : > { %v4281_v15 = vadd.f32 %v4273_v60, %v8080_v57  ;;  %v4203_v36 = vadd.f32 %v4747_v26, %v4610_v54 }
 0xc5f   : > { %4283 = vst.msk [vmem:[%s6668_s4] sm:$0xff] %vm789_vm1, %v4281_v15  ;;  %v4278_v1 = vadd.f32 %v4972_v58, %v4203_v36 }
 0xc61   : > { %v4282_v37 = vadd.f32 %v4278_v1, %v8078_v44 }
 0xc63   : > { %4284 = vst.msk [vmem:[%s6668_s4 + $0x8] sm:$0xff] %vm789_vm1, %v4282_v37 }
 0xc64   : > { %5986 = shalt.err (!%p5983_p4)
}
 0xc65   : > { %s5987_s4 = scalar_lea.hbm %s8217_s14, 256  ;;  %s5991_s15 = scalar_lea.hbm %s8725_s11, 512 }
 0xc66   : > { %p5988_p5 = scmp.ne.s32.totalorder %s8217_s14, %s5987_s4  ;;  %p5992_p7 = scmp.lt.u32.totalorder %s8217_s14, %s8725_s11 }
 0xc67   : > { %p5993_p13 = scmp.lt.u32.totalorder %s5991_s15, %s5987_s4  ;;  %p5995_p6 = scmp.lt.u32.totalorder %s5987_s4, %s8217_s14 }
 0xc68   : > { %p5989_p8 = pnand %p5988_p5, %p8726_p0 }
 0xc69   : > { %p5994_p10 = por %p5993_p13, %p5992_p7 }
 0xc6a   : > { %p5990_p12 = pneg %p5989_p8 }
 0xc6b   : > { %p5996_p1 = por %p5995_p6, %p5994_p10 }
 0xc6d   : > { %p5997_p11 = pnand %p5996_p1, %p5990_p12 }
 0xc6f   : > { %6000 = shalt.err (!%p5997_p11)
}
 0xc70   : > { %s6212_s6 = smov 128   ;;  %s6213_s10 = smov 8  }
 0xc71   : > { %5207 = dma.vmem_to_hbm [thread:$0]  (%p8726_p0), %s8219_s21, 256, %s8217_s14, %s4286_s26, %s6212_s6, %s6212_s6, %s6213_s10  }
 0xc72 PF: > { %s8727_s13 = sld [smem:[#allocation21_spill]]  ;;  %s8728_s23 = sld [smem:[#allocation16_spill]] }
 0xc73   : > { %s8729_s27 = sld [smem:[#allocation25_spill]] }
 0xc78   : > { %p5227_p3 = scmp.ge.s32.totalorder %s8727_s13, 2  ;;  %s4314_s3 = sand.u32 1, %s8728_s23  }
 0xc79   : > { %p8730_p9 = scmp.ne.s32.totalorder %s8729_s27, 0  ;;  %s4315_s12 = scalar_lea.sflag [#allocation4], %s4314_s3 }
 0xc7b   : > { %p5223_p2 = pnand %p5227_p3, %p8730_p9 }
 0xc7d   : > { %6058 = dma.done.wait (!%p5223_p2), %s4315_s12, 256  }
 0xc7e   : > { %6060 = vsyncadd (!%p5223_p2), %s4315_s12, 4294967040  ;;  %s36_s23 = sadd.s32 1, %s8727_s13   ;;  %s8731_s1 = sld [smem:[#allocation15_spill]] }
 0xc7f   : > { %p33_p4 = scmp.ge.s32.totalorder %s36_s23, 10   ;;  %s8732_s15 = sld [smem:[#allocation23_spill]] }
 0xc80   : > { %s8733_s28 = sld [smem:[#allocation17_spill]]  ;;  %s8734_s18 = sld [smem:[#allocation27_spill]] }
 0xc81   : > { %s8735_s19 = sld [smem:[#allocation19_spill]]  ;;  %s8736_s20 = sld [smem:[#allocation20_spill]] }
 0xc82   : > { %s8737_s21 = sld [smem:[#allocation22_spill]]  ;;  %s8738_s22 = sld [smem:[#allocation26_spill]] }
 0xc83   : > { %s8739_s29 = smov %s6067_s30  ;;  %s8741_s16 = smov %s6079_s17 }
 0xc84   : > { %s8740_s30 = smov %s8731_s1  ;;  %35 = sbr.rel (!%p33_p4) target bundleno = 29 (0x1d), region = 192 }
 0xc86   : > { %s8742_s17 = smov %s8733_s28 }
 0xc8b   :  { %4320 = vsyncpa [#allocation3], 1 }
 0xc8c   :  { %4322 = vsyncpa [#allocation3 + $0x1], 1 }
 0xc8d   :  { %4323 = vsyncpa [#allocation6], 1 }
 0xc8e   :  { %4325 = vsyncpa [#allocation6 + $0x1], 1 }
 0xc8f   :  { %4326 = vsyncpa [#allocation9], 1 }
 0xc90   :  { %4328 = vsyncpa [#allocation9 + $0x1], 1 }
 0xc91   :  { %4329 = vsyncpa [#allocation4], 1 }
 0xc92   :  { %4331 = vsyncpa [#allocation4 + $0x1], 1 }

</bundles_post_ra>
